<compile_context>
chip_gen: v7x
topology: tpu7x:2x2x1
jax: 0.10.0
libtpu: 0.0.40
codegen_flags: <defaults>
</compile_context>

<pallas_src>
import functools
import math

import jax
import jax.numpy as jnp
from jax import lax
from jax.experimental import pallas as pl
from jax.experimental.pallas import tpu as pltpu

# ----------------------------- config (small, synthetic) -----------------------------
VOCAB = 30
HIDDEN = 32
LAYERS = 2
HEADS = 2
HEAD_DIM = HIDDEN // HEADS
INTER = 64
MAX_POS = 32
TYPE_VOCAB = 2
IMG_DIM = 20
LN_EPS = 1e-12
NEG_INF = -10000.0


# ----------------------------- in-kernel helpers -----------------------------
def _layernorm(x, gamma, beta, eps=LN_EPS):
    mu = jnp.mean(x, axis=-1, keepdims=True)
    var = jnp.mean(jnp.square(x - mu), axis=-1, keepdims=True)
    return (x - mu) * lax.rsqrt(var + eps) * gamma + beta


def _gelu(x):  # exact (erf-based) gelu, as in BERT
    return 0.5 * x * (1.0 + lax.erf(x * (1.0 / math.sqrt(2.0))))


# ----------------------------- single fused kernel -----------------------------
def _fused_dual_kernel(emb_ref, img_ref, isimg_ref, mask_ref, pool_ref,
                       eg_ref, eb_ref, imgw_ref, imgb_ref,
                       qkvw_ref, qkvb_ref, aow_ref, aob_ref, aog_ref, aolb_ref,
                       iw_ref, ib_ref, ow_ref, ob_ref, og_ref, olb_ref,
                       out_ref, *, n_layers, heads, head_dim):
    H = heads * head_dim

    # ---- initial hidden state for the packed slab ----
    # text rows: LayerNorm(word+pos+token_type); img rows: img_feats @ W_img + b_img
    # (use_img_layernorm=None -> no image LN; dropout = identity in eval).
    ln = _layernorm(emb_ref[...], eg_ref[...], eb_ref[...])
    img_emb = jnp.dot(img_ref[...].astype(jnp.bfloat16), imgw_ref[...],
                      preferred_element_type=jnp.float32) + imgb_ref[...]
    is_img = isimg_ref[...]                                    # (N, 1)
    h = is_img * img_emb + (1.0 - is_img) * ln                 # (N, H) f32

    m = mask_ref[...]                                          # (N, N) additive block-diag mask

    # ---- encoder layers: static unroll, weights fully VMEM-resident ----
    for l in range(n_layers):
        x = h
        # fused QKV matmul (Q weights/bias pre-scaled by 1/sqrt(head_dim))
        qkv = jnp.dot(x.astype(jnp.bfloat16), qkvw_ref[l],
                      preferred_element_type=jnp.float32) + qkvb_ref[l]   # (N, 3H)
        ctx_heads = []
        for hh in range(heads):
            lo = hh * head_dim
            q = qkv[:, lo:lo + head_dim].astype(jnp.bfloat16)
            k = qkv[:, H + lo:H + lo + head_dim].astype(jnp.bfloat16)
            v = qkv[:, 2 * H + lo:2 * H + lo + head_dim].astype(jnp.bfloat16)
            # NT matmul q @ k^T, no explicit transpose of K
            s = lax.dot_general(q, k, (((1,), (1,)), ((), ())),
                                preferred_element_type=jnp.float32)
            s = s + m
            s = s - jnp.max(s, axis=-1, keepdims=True)          # stable softmax (f32)
            p = jnp.exp(s)
            p = p * pl.reciprocal(jnp.sum(p, axis=-1, keepdims=True), approx=True)
            ctx_heads.append(jnp.dot(p.astype(jnp.bfloat16), v,
                                     preferred_element_type=jnp.float32))  # (N, Dh)
        ctx = jnp.concatenate(ctx_heads, axis=-1)               # (N, H), lane concat
        ao = jnp.dot(ctx.astype(jnp.bfloat16), aow_ref[l],
                     preferred_element_type=jnp.float32) + aob_ref[l]      # BertSelfOutput.dense
        attn_out = _layernorm(ao + x, aog_ref[l], aolb_ref[l])             # BertSelfOutput LN
        inter = _gelu(jnp.dot(attn_out.astype(jnp.bfloat16), iw_ref[l],
                              preferred_element_type=jnp.float32) + ib_ref[l])  # BertIntermediate
        ffn = jnp.dot(inter.astype(jnp.bfloat16), ow_ref[l],
                      preferred_element_type=jnp.float32) + ob_ref[l]            # BertOutput.dense
        h = _layernorm(ffn + attn_out, og_ref[l], olb_ref[l])

    # ---- per-sequence mean pooling (pool matrix), dropout (identity), tanh ----
    pooled = jnp.dot(pool_ref[...], h, preferred_element_type=jnp.float32)  # (2B, H)
    out_ref[...] = jnp.tanh(pooled)                                          # single store


def fused_dual_forward(prep, emb_all, img_packed, is_img, mask_all, pool_mat):
    n_layers = prep["qkv_w"].shape[0]
    n_out = pool_mat.shape[0]
    kernel = functools.partial(_fused_dual_kernel, n_layers=n_layers,
                               heads=HEADS, head_dim=HEAD_DIM)
    # No grid: kernel runs once, every operand is a whole-array VMEM block
    # (total footprint << VMEM on v5e/v6e/v7x), so there is a single pipeline
    # prologue and zero per-step overhead.
    return pl.pallas_call(
        kernel,
        out_shape=jax.ShapeDtypeStruct((n_out, HIDDEN), jnp.float32),
    )(emb_all, img_packed, is_img, mask_all, pool_mat,
      prep["emb_ln_g"], prep["emb_ln_b"], prep["img_w"], prep["img_b"],
      prep["qkv_w"], prep["qkv_b"], prep["ao_w"], prep["ao_b"],
      prep["ao_ln_g"], prep["ao_ln_b"],
      prep["i_w"], prep["i_b"], prep["o_w"], prep["o_b"],
      prep["o_ln_g"], prep["o_ln_b"])


# ----------------------------- parameters -----------------------------
def init_params(key):
    keys = iter(jax.random.split(key, 64))

    def nrm(shape, scale=0.02):
        return (scale * jax.random.normal(next(keys), shape)).astype(jnp.float32)

    params = {
        "word_emb": nrm((VOCAB, HIDDEN)),
        "pos_emb": nrm((MAX_POS, HIDDEN)),
        "tok_emb": nrm((TYPE_VOCAB, HIDDEN)),
        "emb_ln_g": jnp.ones((HIDDEN,), jnp.float32),
        "emb_ln_b": jnp.zeros((HIDDEN,), jnp.float32),
        "img_w": nrm((IMG_DIM, HIDDEN)),
        "img_b": jnp.zeros((HIDDEN,), jnp.float32),
        "layers": [],
    }
    for _ in range(LAYERS):
        params["layers"].append({
            "q_w": nrm((HIDDEN, HIDDEN)), "q_b": jnp.zeros((HIDDEN,), jnp.float32),
            "k_w": nrm((HIDDEN, HIDDEN)), "k_b": jnp.zeros((HIDDEN,), jnp.float32),
            "v_w": nrm((HIDDEN, HIDDEN)), "v_b": jnp.zeros((HIDDEN,), jnp.float32),
            "ao_w": nrm((HIDDEN, HIDDEN)), "ao_b": jnp.zeros((HIDDEN,), jnp.float32),
            "ao_ln_g": jnp.ones((HIDDEN,), jnp.float32),
            "ao_ln_b": jnp.zeros((HIDDEN,), jnp.float32),
            "i_w": nrm((HIDDEN, INTER)), "i_b": jnp.zeros((INTER,), jnp.float32),
            "o_w": nrm((INTER, HIDDEN)), "o_b": jnp.zeros((HIDDEN,), jnp.float32),
            "o_ln_g": jnp.ones((HIDDEN,), jnp.float32),
            "o_ln_b": jnp.zeros((HIDDEN,), jnp.float32),
        })
    return params


def prepare_params(params):
    """Repack per-layer (PyTorch-style) parameters into the kernel layout:
    Q/K/V concatenated into one (H, 3H) slab with the 1/sqrt(head_dim) attention
    scale folded into the Q weights and bias, everything stacked along a leading
    LAYERS axis.  Matmul weights are stored bf16 (MXU operands); biases / LayerNorm
    parameters stay f32."""
    L = params["layers"]
    scale = 1.0 / math.sqrt(HEAD_DIM)
    row = lambda v: v.reshape(1, -1)
    bf16 = lambda a: a.astype(jnp.bfloat16)
    return {
        "word_emb": params["word_emb"],
        "pos_emb": params["pos_emb"],
        "tok_emb": params["tok_emb"],
        "emb_ln_g": row(params["emb_ln_g"]),
        "emb_ln_b": row(params["emb_ln_b"]),
        "img_w": bf16(params["img_w"]),
        "img_b": row(params["img_b"]),
        "qkv_w": bf16(jnp.stack([jnp.concatenate(
            [lp["q_w"] * scale, lp["k_w"], lp["v_w"]], axis=1) for lp in L])),
        "qkv_b": jnp.stack([row(jnp.concatenate(
            [lp["q_b"] * scale, lp["k_b"], lp["v_b"]])) for lp in L]),
        "ao_w": bf16(jnp.stack([lp["ao_w"] for lp in L])),
        "ao_b": jnp.stack([row(lp["ao_b"]) for lp in L]),
        "ao_ln_g": jnp.stack([row(lp["ao_ln_g"]) for lp in L]),
        "ao_ln_b": jnp.stack([row(lp["ao_ln_b"]) for lp in L]),
        "i_w": bf16(jnp.stack([lp["i_w"] for lp in L])),
        "i_b": jnp.stack([row(lp["i_b"]) for lp in L]),
        "o_w": bf16(jnp.stack([lp["o_w"] for lp in L])),
        "o_b": jnp.stack([row(lp["o_b"]) for lp in L]),
        "o_ln_g": jnp.stack([row(lp["o_ln_g"]) for lp in L]),
        "o_ln_b": jnp.stack([row(lp["o_ln_b"]) for lp in L]),
    }


# ----------------------------- forward_dual -----------------------------
def contrastive_two_level_forward_dual(prep, input_ids, token_type_ids,
                                       attention_mask, img_feats):
    B = input_ids.shape[0]
    text_len = input_ids.shape[1] // 2
    n_img = img_feats.shape[1]
    s_pad = text_len + n_img          # packed per-sequence row count (= img-branch length)
    n_tot = 2 * B * s_pad
    H = HIDDEN

    def emb_sum(ids, tok_ids):        # embedding gathers stay in XLA
        Lq = ids.shape[1]
        we = jnp.take(prep["word_emb"], ids, axis=0)
        pe = jnp.take(prep["pos_emb"], jnp.arange(Lq), axis=0)[None, :, :]
        te = jnp.take(prep["tok_emb"], tok_ids, axis=0)
        return we + pe + te           # (B, Lq, H) pre-LayerNorm sum

    emb_t = emb_sum(input_ids[:, :text_len], token_type_ids[:, :text_len])   # (B, L, H)
    emb_i = emb_sum(input_ids[:, text_len:], token_type_ids[:, text_len:])   # (B, L, H)

    # ---- pack both branches + batch into one (N, H) slab ----
    pad = ((0, 0), (0, n_img), (0, 0))
    emb_all = jnp.concatenate([jnp.pad(emb_t, pad), jnp.pad(emb_i, pad)],
                              axis=0).reshape(n_tot, H)

    img_packed = jnp.concatenate(
        [jnp.zeros((B, s_pad, IMG_DIM), jnp.float32),
         jnp.concatenate([jnp.zeros((B, text_len, IMG_DIM), jnp.float32),
                          img_feats.astype(jnp.float32)], axis=1)],
        axis=0).reshape(n_tot, IMG_DIM)

    is_img = jnp.concatenate(
        [jnp.zeros((B, s_pad), jnp.float32),
         jnp.concatenate([jnp.zeros((B, text_len), jnp.float32),
                          jnp.ones((B, n_img), jnp.float32)], axis=1)],
        axis=0).reshape(n_tot, 1)

    # ---- block-diagonal additive attention mask (reference: (1-mask)*-10000 over keys) ----
    am = attention_mask.astype(jnp.float32)
    key_valid = jnp.concatenate(
        [jnp.concatenate([am[:, :text_len], jnp.zeros((B, n_img), jnp.float32)], axis=1),
         am[:, text_len:]], axis=0).reshape(-1)                              # (N,)
    seq_id = jnp.repeat(jnp.arange(2 * B), s_pad)                            # (N,)
    same_seq = seq_id[:, None] == seq_id[None, :]
    mask_all = jnp.where(same_seq & (key_valid[None, :] > 0.5),
                         0.0, NEG_INF).astype(jnp.float32)                   # (N, N)

    # ---- pooling matrix: mean over the real positions of each sequence ----
    # (reference mean-pools the raw sequence output, no attention-mask weighting)
    pool_w = jnp.concatenate(
        [jnp.concatenate([jnp.full((B, text_len), 1.0 / text_len, jnp.float32),
                          jnp.zeros((B, n_img), jnp.float32)], axis=1),
         jnp.full((B, s_pad), 1.0 / s_pad, jnp.float32)], axis=0).reshape(-1)
    pool_mat = (seq_id[None, :] == jnp.arange(2 * B)[:, None]
                ).astype(jnp.float32) * pool_w[None, :]                      # (2B, N)

    pooled = fused_dual_forward(prep, emb_all, img_packed, is_img, mask_all, pool_mat)
    t_feature = pooled[:B]            # rows 0..B-1  -> text branch
    i_feature = pooled[B:]            # rows B..2B-1 -> img branch
    # dropout (identity in eval) and tanh are fused inside the kernel.
    return i_feature, t_feature


# ----------------------------- main -----------------------------
if __name__ == "__main__":
    key = jax.random.PRNGKey(0)
    pkey, ikey, fkey = jax.random.split(key, 3)

    params = init_params(pkey)
    prep = prepare_params(params)

    B, L, NIMG = 2, 8, 4  # batch, per-branch text length, image regions
    input_ids = jax.random.randint(ikey, (B, 2 * L), 0, VOCAB, dtype=jnp.int32)
    token_type_ids = jnp.concatenate(
        [jnp.zeros((B, L), jnp.int32), jnp.ones((B, L), jnp.int32)], axis=1)
    # attention_mask covers: [text branch (L)] + [img branch: text (L) + img regions (NIMG)]
    attention_mask = jnp.ones((B, 2 * L + NIMG), jnp.float32)
    img_feats = jax.random.normal(fkey, (B, NIMG, IMG_DIM), dtype=jnp.float32)

    fwd = jax.jit(contrastive_two_level_forward_dual)
    i_feat, t_feat = fwd(prep, input_ids, token_type_ids, attention_mask, img_feats)
    jax.block_until_ready((i_feat, t_feat))

    assert i_feat.shape == (B, HIDDEN) and t_feat.shape == (B, HIDDEN)
    assert bool(jnp.all(jnp.isfinite(i_feat))) and bool(jnp.all(jnp.isfinite(t_feat)))
    print("KERNEL_OK")
</pallas_src>

<mosaic_0001>
module attributes {stable_mosaic.version = 11 : i64} {
  func.func @_fused_dual_kernel(%arg0: memref<48x32xf32, #tpu.memory_space<vmem>>, %arg1: memref<48x20xf32, #tpu.memory_space<vmem>>, %arg2: memref<48x1xf32, #tpu.memory_space<vmem>>, %arg3: memref<48x48xf32, #tpu.memory_space<vmem>>, %arg4: memref<4x48xf32, #tpu.memory_space<vmem>>, %arg5: memref<1x32xf32, #tpu.memory_space<vmem>>, %arg6: memref<1x32xf32, #tpu.memory_space<vmem>>, %arg7: memref<20x32xbf16, #tpu.memory_space<vmem>>, %arg8: memref<1x32xf32, #tpu.memory_space<vmem>>, %arg9: memref<2x32x96xbf16, #tpu.memory_space<vmem>>, %arg10: memref<2x1x96xf32, #tpu.memory_space<vmem>>, %arg11: memref<2x32x32xbf16, #tpu.memory_space<vmem>>, %arg12: memref<2x1x32xf32, #tpu.memory_space<vmem>>, %arg13: memref<2x1x32xf32, #tpu.memory_space<vmem>>, %arg14: memref<2x1x32xf32, #tpu.memory_space<vmem>>, %arg15: memref<2x32x64xbf16, #tpu.memory_space<vmem>>, %arg16: memref<2x1x64xf32, #tpu.memory_space<vmem>>, %arg17: memref<2x64x32xbf16, #tpu.memory_space<vmem>>, %arg18: memref<2x1x32xf32, #tpu.memory_space<vmem>>, %arg19: memref<2x1x32xf32, #tpu.memory_space<vmem>>, %arg20: memref<2x1x32xf32, #tpu.memory_space<vmem>>, %arg21: memref<4x32xf32, #tpu.memory_space<vmem>>) attributes {dimension_semantics = [], scalar_prefetch = 0 : i64, scratch_operands = 0 : i64, tpu.core_type = #tpu.core_type<tc>} {
    %c0 = arith.constant 0 : index
    %c0_0 = arith.constant 0 : index
    %0 = vector.load %arg0[%c0, %c0_0] : memref<48x32xf32, #tpu.memory_space<vmem>>, vector<48x32xf32>
    %c0_1 = arith.constant 0 : index
    %c0_2 = arith.constant 0 : index
    %1 = vector.load %arg5[%c0_1, %c0_2] : memref<1x32xf32, #tpu.memory_space<vmem>>, vector<1x32xf32>
    %c0_3 = arith.constant 0 : index
    %c0_4 = arith.constant 0 : index
    %2 = vector.load %arg6[%c0_3, %c0_4] : memref<1x32xf32, #tpu.memory_space<vmem>>, vector<1x32xf32>
    %cst = arith.constant dense<0.000000e+00> : vector<48xf32>
    %3 = vector.multi_reduction <add>, %0, %cst [1] : vector<48x32xf32> to vector<48xf32>
    %4 = vector.shape_cast %3 : vector<48xf32> to vector<48x1xf32>
    %cst_5 = arith.constant 3.200000e+01 : f32
    %5 = vector.broadcast %cst_5 : f32 to vector<48x1xf32>
    %6 = arith.divf %4, %5 : vector<48x1xf32>
    %7 = vector.broadcast %6 : vector<48x1xf32> to vector<48x32xf32>
    %8 = arith.subf %0, %7 : vector<48x32xf32>
    %9 = arith.mulf %8, %8 : vector<48x32xf32>
    %cst_6 = arith.constant dense<0.000000e+00> : vector<48xf32>
    %10 = vector.multi_reduction <add>, %9, %cst_6 [1] : vector<48x32xf32> to vector<48xf32>
    %11 = vector.shape_cast %10 : vector<48xf32> to vector<48x1xf32>
    %cst_7 = arith.constant 3.200000e+01 : f32
    %12 = vector.broadcast %cst_7 : f32 to vector<48x1xf32>
    %13 = arith.divf %11, %12 : vector<48x1xf32>
    %14 = vector.broadcast %6 : vector<48x1xf32> to vector<48x32xf32>
    %15 = arith.subf %0, %14 : vector<48x32xf32>
    %cst_8 = arith.constant 9.99999996E-13 : f32
    %16 = vector.broadcast %cst_8 : f32 to vector<48x1xf32>
    %17 = arith.addf %13, %16 : vector<48x1xf32>
    %18 = math.rsqrt %17 : vector<48x1xf32>
    %19 = vector.broadcast %18 : vector<48x1xf32> to vector<48x32xf32>
    %20 = arith.mulf %15, %19 : vector<48x32xf32>
    %21 = vector.broadcast %1 : vector<1x32xf32> to vector<48x32xf32>
    %22 = arith.mulf %20, %21 : vector<48x32xf32>
    %23 = vector.broadcast %2 : vector<1x32xf32> to vector<48x32xf32>
    %24 = arith.addf %22, %23 : vector<48x32xf32>
    %c0_9 = arith.constant 0 : index
    %c0_10 = arith.constant 0 : index
    %25 = vector.load %arg1[%c0_9, %c0_10] : memref<48x20xf32, #tpu.memory_space<vmem>>, vector<48x20xf32>
    %26 = arith.truncf %25 : vector<48x20xf32> to vector<48x20xbf16>
    %c0_11 = arith.constant 0 : index
    %c0_12 = arith.constant 0 : index
    %27 = vector.load %arg7[%c0_11, %c0_12] : memref<20x32xbf16, #tpu.memory_space<vmem>>, vector<20x32xbf16>
    %cst_13 = arith.constant dense<0.000000e+00> : vector<48x32xf32>
    %28 = tpu.matmul %26, %27, %cst_13 {dimension_numbers = #tpu.dot_dimension_numbers<[1], [0], [0], [1], [0, 0, 1, 1], [], []>} : vector<48x20xbf16>, vector<20x32xbf16>, vector<48x32xf32> -> vector<48x32xf32>
    %c0_14 = arith.constant 0 : index
    %c0_15 = arith.constant 0 : index
    %29 = vector.load %arg8[%c0_14, %c0_15] : memref<1x32xf32, #tpu.memory_space<vmem>>, vector<1x32xf32>
    %30 = vector.broadcast %29 : vector<1x32xf32> to vector<48x32xf32>
    %31 = arith.addf %28, %30 : vector<48x32xf32>
    %c0_16 = arith.constant 0 : index
    %c0_17 = arith.constant 0 : index
    %32 = vector.load %arg2[%c0_16, %c0_17] : memref<48x1xf32, #tpu.memory_space<vmem>>, vector<48x1xf32>
    %33 = vector.broadcast %32 : vector<48x1xf32> to vector<48x32xf32>
    %34 = arith.mulf %33, %31 : vector<48x32xf32>
    %cst_18 = arith.constant 1.000000e+00 : f32
    %35 = vector.broadcast %cst_18 : f32 to vector<48x1xf32>
    %36 = arith.subf %35, %32 : vector<48x1xf32>
    %37 = vector.broadcast %36 : vector<48x1xf32> to vector<48x32xf32>
    %38 = arith.mulf %37, %24 : vector<48x32xf32>
    %39 = arith.addf %34, %38 : vector<48x32xf32>
    %c0_19 = arith.constant 0 : index
    %c0_20 = arith.constant 0 : index
    %40 = vector.load %arg3[%c0_19, %c0_20] : memref<48x48xf32, #tpu.memory_space<vmem>>, vector<48x48xf32>
    %41 = arith.truncf %39 : vector<48x32xf32> to vector<48x32xbf16>
    %c0_21 = arith.constant 0 : index
    %c0_22 = arith.constant 0 : index
    %c0_23 = arith.constant 0 : index
    %42 = vector.load %arg9[%c0_21, %c0_22, %c0_23] : memref<2x32x96xbf16, #tpu.memory_space<vmem>>, vector<1x32x96xbf16>
    %43 = vector.shape_cast %42 : vector<1x32x96xbf16> to vector<32x96xbf16>
    %cst_24 = arith.constant dense<0.000000e+00> : vector<48x96xf32>
    %44 = tpu.matmul %41, %43, %cst_24 {dimension_numbers = #tpu.dot_dimension_numbers<[1], [0], [0], [1], [0, 0, 1, 1], [], []>} : vector<48x32xbf16>, vector<32x96xbf16>, vector<48x96xf32> -> vector<48x96xf32>
    %c0_25 = arith.constant 0 : index
    %c0_26 = arith.constant 0 : index
    %c0_27 = arith.constant 0 : index
    %45 = vector.load %arg10[%c0_25, %c0_26, %c0_27] : memref<2x1x96xf32, #tpu.memory_space<vmem>>, vector<1x1x96xf32>
    %46 = vector.shape_cast %45 : vector<1x1x96xf32> to vector<1x96xf32>
    %47 = vector.broadcast %46 : vector<1x96xf32> to vector<48x96xf32>
    %48 = arith.addf %44, %47 : vector<48x96xf32>
    %49 = vector.extract_strided_slice %48 {offsets = [0, 0], sizes = [48, 16], strides = [1, 1]} : vector<48x96xf32> to vector<48x16xf32>
    %50 = arith.truncf %49 : vector<48x16xf32> to vector<48x16xbf16>
    %51 = vector.extract_strided_slice %48 {offsets = [0, 32], sizes = [48, 16], strides = [1, 1]} : vector<48x96xf32> to vector<48x16xf32>
    %52 = arith.truncf %51 : vector<48x16xf32> to vector<48x16xbf16>
    %53 = vector.extract_strided_slice %48 {offsets = [0, 64], sizes = [48, 16], strides = [1, 1]} : vector<48x96xf32> to vector<48x16xf32>
    %54 = arith.truncf %53 : vector<48x16xf32> to vector<48x16xbf16>
    %cst_28 = arith.constant dense<0.000000e+00> : vector<48x48xf32>
    %55 = tpu.matmul %50, %52, %cst_28 {dimension_numbers = #tpu.dot_dimension_numbers<[1], [1], [0], [0], [0, 0, 1, 0], [], []>} : vector<48x16xbf16>, vector<48x16xbf16>, vector<48x48xf32> -> vector<48x48xf32>
    %56 = arith.addf %55, %40 : vector<48x48xf32>
    %cst_29 = arith.constant dense<0xFF800000> : vector<48xf32>
    %57 = vector.multi_reduction <maximumf>, %56, %cst_29 [1] : vector<48x48xf32> to vector<48xf32>
    %58 = vector.shape_cast %57 : vector<48xf32> to vector<48x1xf32>
    %59 = vector.broadcast %58 : vector<48x1xf32> to vector<48x48xf32>
    %60 = arith.subf %56, %59 : vector<48x48xf32>
    %61 = math.exp %60 : vector<48x48xf32>
    %cst_30 = arith.constant dense<0.000000e+00> : vector<48xf32>
    %62 = vector.multi_reduction <add>, %61, %cst_30 [1] : vector<48x48xf32> to vector<48xf32>
    %63 = vector.shape_cast %62 : vector<48xf32> to vector<48x1xf32>
    %64 = tpu.reciprocal %63 {approx = true} : vector<48x1xf32> -> vector<48x1xf32>
    %65 = vector.broadcast %64 : vector<48x1xf32> to vector<48x48xf32>
    %66 = arith.mulf %61, %65 : vector<48x48xf32>
    %67 = arith.truncf %66 : vector<48x48xf32> to vector<48x48xbf16>
    %cst_31 = arith.constant dense<0.000000e+00> : vector<48x16xf32>
    %68 = tpu.matmul %67, %54, %cst_31 {dimension_numbers = #tpu.dot_dimension_numbers<[1], [0], [0], [1], [0, 0, 1, 1], [], []>} : vector<48x48xbf16>, vector<48x16xbf16>, vector<48x16xf32> -> vector<48x16xf32>
    %69 = vector.extract_strided_slice %48 {offsets = [0, 16], sizes = [48, 16], strides = [1, 1]} : vector<48x96xf32> to vector<48x16xf32>
    %70 = arith.truncf %69 : vector<48x16xf32> to vector<48x16xbf16>
    %71 = vector.extract_strided_slice %48 {offsets = [0, 48], sizes = [48, 16], strides = [1, 1]} : vector<48x96xf32> to vector<48x16xf32>
    %72 = arith.truncf %71 : vector<48x16xf32> to vector<48x16xbf16>
    %73 = vector.extract_strided_slice %48 {offsets = [0, 80], sizes = [48, 16], strides = [1, 1]} : vector<48x96xf32> to vector<48x16xf32>
    %74 = arith.truncf %73 : vector<48x16xf32> to vector<48x16xbf16>
    %cst_32 = arith.constant dense<0.000000e+00> : vector<48x48xf32>
    %75 = tpu.matmul %70, %72, %cst_32 {dimension_numbers = #tpu.dot_dimension_numbers<[1], [1], [0], [0], [0, 0, 1, 0], [], []>} : vector<48x16xbf16>, vector<48x16xbf16>, vector<48x48xf32> -> vector<48x48xf32>
    %76 = arith.addf %75, %40 : vector<48x48xf32>
    %cst_33 = arith.constant dense<0xFF800000> : vector<48xf32>
    %77 = vector.multi_reduction <maximumf>, %76, %cst_33 [1] : vector<48x48xf32> to vector<48xf32>
    %78 = vector.shape_cast %77 : vector<48xf32> to vector<48x1xf32>
    %79 = vector.broadcast %78 : vector<48x1xf32> to vector<48x48xf32>
    %80 = arith.subf %76, %79 : vector<48x48xf32>
    %81 = math.exp %80 : vector<48x48xf32>
    %cst_34 = arith.constant dense<0.000000e+00> : vector<48xf32>
    %82 = vector.multi_reduction <add>, %81, %cst_34 [1] : vector<48x48xf32> to vector<48xf32>
    %83 = vector.shape_cast %82 : vector<48xf32> to vector<48x1xf32>
    %84 = tpu.reciprocal %83 {approx = true} : vector<48x1xf32> -> vector<48x1xf32>
    %85 = vector.broadcast %84 : vector<48x1xf32> to vector<48x48xf32>
    %86 = arith.mulf %81, %85 : vector<48x48xf32>
    %87 = arith.truncf %86 : vector<48x48xf32> to vector<48x48xbf16>
    %cst_35 = arith.constant dense<0.000000e+00> : vector<48x16xf32>
    %88 = tpu.matmul %87, %74, %cst_35 {dimension_numbers = #tpu.dot_dimension_numbers<[1], [0], [0], [1], [0, 0, 1, 1], [], []>} : vector<48x48xbf16>, vector<48x16xbf16>, vector<48x16xf32> -> vector<48x16xf32>
    %89 = tpu.concatenate %68, %88 in 1 : vector<48x16xf32>, vector<48x16xf32> -> vector<48x32xf32>
    %90 = arith.truncf %89 : vector<48x32xf32> to vector<48x32xbf16>
    %c0_36 = arith.constant 0 : index
    %c0_37 = arith.constant 0 : index
    %c0_38 = arith.constant 0 : index
    %91 = vector.load %arg11[%c0_36, %c0_37, %c0_38] : memref<2x32x32xbf16, #tpu.memory_space<vmem>>, vector<1x32x32xbf16>
    %92 = vector.shape_cast %91 : vector<1x32x32xbf16> to vector<32x32xbf16>
    %cst_39 = arith.constant dense<0.000000e+00> : vector<48x32xf32>
    %93 = tpu.matmul %90, %92, %cst_39 {dimension_numbers = #tpu.dot_dimension_numbers<[1], [0], [0], [1], [0, 0, 1, 1], [], []>} : vector<48x32xbf16>, vector<32x32xbf16>, vector<48x32xf32> -> vector<48x32xf32>
    %c0_40 = arith.constant 0 : index
    %c0_41 = arith.constant 0 : index
    %c0_42 = arith.constant 0 : index
    %94 = vector.load %arg12[%c0_40, %c0_41, %c0_42] : memref<2x1x32xf32, #tpu.memory_space<vmem>>, vector<1x1x32xf32>
    %95 = vector.shape_cast %94 : vector<1x1x32xf32> to vector<1x32xf32>
    %96 = vector.broadcast %95 : vector<1x32xf32> to vector<48x32xf32>
    %97 = arith.addf %93, %96 : vector<48x32xf32>
    %98 = arith.addf %97, %39 : vector<48x32xf32>
    %c0_43 = arith.constant 0 : index
    %c0_44 = arith.constant 0 : index
    %c0_45 = arith.constant 0 : index
    %99 = vector.load %arg13[%c0_43, %c0_44, %c0_45] : memref<2x1x32xf32, #tpu.memory_space<vmem>>, vector<1x1x32xf32>
    %100 = vector.shape_cast %99 : vector<1x1x32xf32> to vector<1x32xf32>
    %c0_46 = arith.constant 0 : index
    %c0_47 = arith.constant 0 : index
    %c0_48 = arith.constant 0 : index
    %101 = vector.load %arg14[%c0_46, %c0_47, %c0_48] : memref<2x1x32xf32, #tpu.memory_space<vmem>>, vector<1x1x32xf32>
    %102 = vector.shape_cast %101 : vector<1x1x32xf32> to vector<1x32xf32>
    %cst_49 = arith.constant dense<0.000000e+00> : vector<48xf32>
    %103 = vector.multi_reduction <add>, %98, %cst_49 [1] : vector<48x32xf32> to vector<48xf32>
    %104 = vector.shape_cast %103 : vector<48xf32> to vector<48x1xf32>
    %cst_50 = arith.constant 3.200000e+01 : f32
    %105 = vector.broadcast %cst_50 : f32 to vector<48x1xf32>
    %106 = arith.divf %104, %105 : vector<48x1xf32>
    %107 = vector.broadcast %106 : vector<48x1xf32> to vector<48x32xf32>
    %108 = arith.subf %98, %107 : vector<48x32xf32>
    %109 = arith.mulf %108, %108 : vector<48x32xf32>
    %cst_51 = arith.constant dense<0.000000e+00> : vector<48xf32>
    %110 = vector.multi_reduction <add>, %109, %cst_51 [1] : vector<48x32xf32> to vector<48xf32>
    %111 = vector.shape_cast %110 : vector<48xf32> to vector<48x1xf32>
    %cst_52 = arith.constant 3.200000e+01 : f32
    %112 = vector.broadcast %cst_52 : f32 to vector<48x1xf32>
    %113 = arith.divf %111, %112 : vector<48x1xf32>
    %114 = vector.broadcast %106 : vector<48x1xf32> to vector<48x32xf32>
    %115 = arith.subf %98, %114 : vector<48x32xf32>
    %cst_53 = arith.constant 9.99999996E-13 : f32
    %116 = vector.broadcast %cst_53 : f32 to vector<48x1xf32>
    %117 = arith.addf %113, %116 : vector<48x1xf32>
    %118 = math.rsqrt %117 : vector<48x1xf32>
    %119 = vector.broadcast %118 : vector<48x1xf32> to vector<48x32xf32>
    %120 = arith.mulf %115, %119 : vector<48x32xf32>
    %121 = vector.broadcast %100 : vector<1x32xf32> to vector<48x32xf32>
    %122 = arith.mulf %120, %121 : vector<48x32xf32>
    %123 = vector.broadcast %102 : vector<1x32xf32> to vector<48x32xf32>
    %124 = arith.addf %122, %123 : vector<48x32xf32>
    %125 = arith.truncf %124 : vector<48x32xf32> to vector<48x32xbf16>
    %c0_54 = arith.constant 0 : index
    %c0_55 = arith.constant 0 : index
    %c0_56 = arith.constant 0 : index
    %126 = vector.load %arg15[%c0_54, %c0_55, %c0_56] : memref<2x32x64xbf16, #tpu.memory_space<vmem>>, vector<1x32x64xbf16>
    %127 = vector.shape_cast %126 : vector<1x32x64xbf16> to vector<32x64xbf16>
    %cst_57 = arith.constant dense<0.000000e+00> : vector<48x64xf32>
    %128 = tpu.matmul %125, %127, %cst_57 {dimension_numbers = #tpu.dot_dimension_numbers<[1], [0], [0], [1], [0, 0, 1, 1], [], []>} : vector<48x32xbf16>, vector<32x64xbf16>, vector<48x64xf32> -> vector<48x64xf32>
    %c0_58 = arith.constant 0 : index
    %c0_59 = arith.constant 0 : index
    %c0_60 = arith.constant 0 : index
    %129 = vector.load %arg16[%c0_58, %c0_59, %c0_60] : memref<2x1x64xf32, #tpu.memory_space<vmem>>, vector<1x1x64xf32>
    %130 = vector.shape_cast %129 : vector<1x1x64xf32> to vector<1x64xf32>
    %131 = vector.broadcast %130 : vector<1x64xf32> to vector<48x64xf32>
    %132 = arith.addf %128, %131 : vector<48x64xf32>
    %cst_61 = arith.constant 5.000000e-01 : f32
    %133 = vector.broadcast %cst_61 : f32 to vector<48x64xf32>
    %134 = arith.mulf %133, %132 : vector<48x64xf32>
    %cst_62 = arith.constant 0.707106769 : f32
    %135 = vector.broadcast %cst_62 : f32 to vector<48x64xf32>
    %136 = arith.mulf %132, %135 : vector<48x64xf32>
    %137 = math.erf %136 : vector<48x64xf32>
    %cst_63 = arith.constant 1.000000e+00 : f32
    %138 = vector.broadcast %cst_63 : f32 to vector<48x64xf32>
    %139 = arith.addf %138, %137 : vector<48x64xf32>
    %140 = arith.mulf %134, %139 : vector<48x64xf32>
    %141 = arith.truncf %140 : vector<48x64xf32> to vector<48x64xbf16>
    %c0_64 = arith.constant 0 : index
    %c0_65 = arith.constant 0 : index
    %c0_66 = arith.constant 0 : index
    %142 = vector.load %arg17[%c0_64, %c0_65, %c0_66] : memref<2x64x32xbf16, #tpu.memory_space<vmem>>, vector<1x64x32xbf16>
    %143 = vector.shape_cast %142 : vector<1x64x32xbf16> to vector<64x32xbf16>
    %cst_67 = arith.constant dense<0.000000e+00> : vector<48x32xf32>
    %144 = tpu.matmul %141, %143, %cst_67 {dimension_numbers = #tpu.dot_dimension_numbers<[1], [0], [0], [1], [0, 0, 1, 1], [], []>} : vector<48x64xbf16>, vector<64x32xbf16>, vector<48x32xf32> -> vector<48x32xf32>
    %c0_68 = arith.constant 0 : index
    %c0_69 = arith.constant 0 : index
    %c0_70 = arith.constant 0 : index
    %145 = vector.load %arg18[%c0_68, %c0_69, %c0_70] : memref<2x1x32xf32, #tpu.memory_space<vmem>>, vector<1x1x32xf32>
    %146 = vector.shape_cast %145 : vector<1x1x32xf32> to vector<1x32xf32>
    %147 = vector.broadcast %146 : vector<1x32xf32> to vector<48x32xf32>
    %148 = arith.addf %144, %147 : vector<48x32xf32>
    %149 = arith.addf %148, %124 : vector<48x32xf32>
    %c0_71 = arith.constant 0 : index
    %c0_72 = arith.constant 0 : index
    %c0_73 = arith.constant 0 : index
    %150 = vector.load %arg19[%c0_71, %c0_72, %c0_73] : memref<2x1x32xf32, #tpu.memory_space<vmem>>, vector<1x1x32xf32>
    %151 = vector.shape_cast %150 : vector<1x1x32xf32> to vector<1x32xf32>
    %c0_74 = arith.constant 0 : index
    %c0_75 = arith.constant 0 : index
    %c0_76 = arith.constant 0 : index
    %152 = vector.load %arg20[%c0_74, %c0_75, %c0_76] : memref<2x1x32xf32, #tpu.memory_space<vmem>>, vector<1x1x32xf32>
    %153 = vector.shape_cast %152 : vector<1x1x32xf32> to vector<1x32xf32>
    %cst_77 = arith.constant dense<0.000000e+00> : vector<48xf32>
    %154 = vector.multi_reduction <add>, %149, %cst_77 [1] : vector<48x32xf32> to vector<48xf32>
    %155 = vector.shape_cast %154 : vector<48xf32> to vector<48x1xf32>
    %cst_78 = arith.constant 3.200000e+01 : f32
    %156 = vector.broadcast %cst_78 : f32 to vector<48x1xf32>
    %157 = arith.divf %155, %156 : vector<48x1xf32>
    %158 = vector.broadcast %157 : vector<48x1xf32> to vector<48x32xf32>
    %159 = arith.subf %149, %158 : vector<48x32xf32>
    %160 = arith.mulf %159, %159 : vector<48x32xf32>
    %cst_79 = arith.constant dense<0.000000e+00> : vector<48xf32>
    %161 = vector.multi_reduction <add>, %160, %cst_79 [1] : vector<48x32xf32> to vector<48xf32>
    %162 = vector.shape_cast %161 : vector<48xf32> to vector<48x1xf32>
    %cst_80 = arith.constant 3.200000e+01 : f32
    %163 = vector.broadcast %cst_80 : f32 to vector<48x1xf32>
    %164 = arith.divf %162, %163 : vector<48x1xf32>
    %165 = vector.broadcast %157 : vector<48x1xf32> to vector<48x32xf32>
    %166 = arith.subf %149, %165 : vector<48x32xf32>
    %cst_81 = arith.constant 9.99999996E-13 : f32
    %167 = vector.broadcast %cst_81 : f32 to vector<48x1xf32>
    %168 = arith.addf %164, %167 : vector<48x1xf32>
    %169 = math.rsqrt %168 : vector<48x1xf32>
    %170 = vector.broadcast %169 : vector<48x1xf32> to vector<48x32xf32>
    %171 = arith.mulf %166, %170 : vector<48x32xf32>
    %172 = vector.broadcast %151 : vector<1x32xf32> to vector<48x32xf32>
    %173 = arith.mulf %171, %172 : vector<48x32xf32>
    %174 = vector.broadcast %153 : vector<1x32xf32> to vector<48x32xf32>
    %175 = arith.addf %173, %174 : vector<48x32xf32>
    %176 = arith.truncf %175 : vector<48x32xf32> to vector<48x32xbf16>
    %c1 = arith.constant 1 : index
    %c0_82 = arith.constant 0 : index
    %c0_83 = arith.constant 0 : index
    %177 = vector.load %arg9[%c1, %c0_82, %c0_83] : memref<2x32x96xbf16, #tpu.memory_space<vmem>>, vector<1x32x96xbf16>
    %178 = vector.shape_cast %177 : vector<1x32x96xbf16> to vector<32x96xbf16>
    %cst_84 = arith.constant dense<0.000000e+00> : vector<48x96xf32>
    %179 = tpu.matmul %176, %178, %cst_84 {dimension_numbers = #tpu.dot_dimension_numbers<[1], [0], [0], [1], [0, 0, 1, 1], [], []>} : vector<48x32xbf16>, vector<32x96xbf16>, vector<48x96xf32> -> vector<48x96xf32>
    %c1_85 = arith.constant 1 : index
    %c0_86 = arith.constant 0 : index
    %c0_87 = arith.constant 0 : index
    %180 = vector.load %arg10[%c1_85, %c0_86, %c0_87] : memref<2x1x96xf32, #tpu.memory_space<vmem>>, vector<1x1x96xf32>
    %181 = vector.shape_cast %180 : vector<1x1x96xf32> to vector<1x96xf32>
    %182 = vector.broadcast %181 : vector<1x96xf32> to vector<48x96xf32>
    %183 = arith.addf %179, %182 : vector<48x96xf32>
    %184 = vector.extract_strided_slice %183 {offsets = [0, 0], sizes = [48, 16], strides = [1, 1]} : vector<48x96xf32> to vector<48x16xf32>
    %185 = arith.truncf %184 : vector<48x16xf32> to vector<48x16xbf16>
    %186 = vector.extract_strided_slice %183 {offsets = [0, 32], sizes = [48, 16], strides = [1, 1]} : vector<48x96xf32> to vector<48x16xf32>
    %187 = arith.truncf %186 : vector<48x16xf32> to vector<48x16xbf16>
    %188 = vector.extract_strided_slice %183 {offsets = [0, 64], sizes = [48, 16], strides = [1, 1]} : vector<48x96xf32> to vector<48x16xf32>
    %189 = arith.truncf %188 : vector<48x16xf32> to vector<48x16xbf16>
    %cst_88 = arith.constant dense<0.000000e+00> : vector<48x48xf32>
    %190 = tpu.matmul %185, %187, %cst_88 {dimension_numbers = #tpu.dot_dimension_numbers<[1], [1], [0], [0], [0, 0, 1, 0], [], []>} : vector<48x16xbf16>, vector<48x16xbf16>, vector<48x48xf32> -> vector<48x48xf32>
    %191 = arith.addf %190, %40 : vector<48x48xf32>
    %cst_89 = arith.constant dense<0xFF800000> : vector<48xf32>
    %192 = vector.multi_reduction <maximumf>, %191, %cst_89 [1] : vector<48x48xf32> to vector<48xf32>
    %193 = vector.shape_cast %192 : vector<48xf32> to vector<48x1xf32>
    %194 = vector.broadcast %193 : vector<48x1xf32> to vector<48x48xf32>
    %195 = arith.subf %191, %194 : vector<48x48xf32>
    %196 = math.exp %195 : vector<48x48xf32>
    %cst_90 = arith.constant dense<0.000000e+00> : vector<48xf32>
    %197 = vector.multi_reduction <add>, %196, %cst_90 [1] : vector<48x48xf32> to vector<48xf32>
    %198 = vector.shape_cast %197 : vector<48xf32> to vector<48x1xf32>
    %199 = tpu.reciprocal %198 {approx = true} : vector<48x1xf32> -> vector<48x1xf32>
    %200 = vector.broadcast %199 : vector<48x1xf32> to vector<48x48xf32>
    %201 = arith.mulf %196, %200 : vector<48x48xf32>
    %202 = arith.truncf %201 : vector<48x48xf32> to vector<48x48xbf16>
    %cst_91 = arith.constant dense<0.000000e+00> : vector<48x16xf32>
    %203 = tpu.matmul %202, %189, %cst_91 {dimension_numbers = #tpu.dot_dimension_numbers<[1], [0], [0], [1], [0, 0, 1, 1], [], []>} : vector<48x48xbf16>, vector<48x16xbf16>, vector<48x16xf32> -> vector<48x16xf32>
    %204 = vector.extract_strided_slice %183 {offsets = [0, 16], sizes = [48, 16], strides = [1, 1]} : vector<48x96xf32> to vector<48x16xf32>
    %205 = arith.truncf %204 : vector<48x16xf32> to vector<48x16xbf16>
    %206 = vector.extract_strided_slice %183 {offsets = [0, 48], sizes = [48, 16], strides = [1, 1]} : vector<48x96xf32> to vector<48x16xf32>
    %207 = arith.truncf %206 : vector<48x16xf32> to vector<48x16xbf16>
    %208 = vector.extract_strided_slice %183 {offsets = [0, 80], sizes = [48, 16], strides = [1, 1]} : vector<48x96xf32> to vector<48x16xf32>
    %209 = arith.truncf %208 : vector<48x16xf32> to vector<48x16xbf16>
    %cst_92 = arith.constant dense<0.000000e+00> : vector<48x48xf32>
    %210 = tpu.matmul %205, %207, %cst_92 {dimension_numbers = #tpu.dot_dimension_numbers<[1], [1], [0], [0], [0, 0, 1, 0], [], []>} : vector<48x16xbf16>, vector<48x16xbf16>, vector<48x48xf32> -> vector<48x48xf32>
    %211 = arith.addf %210, %40 : vector<48x48xf32>
    %cst_93 = arith.constant dense<0xFF800000> : vector<48xf32>
    %212 = vector.multi_reduction <maximumf>, %211, %cst_93 [1] : vector<48x48xf32> to vector<48xf32>
    %213 = vector.shape_cast %212 : vector<48xf32> to vector<48x1xf32>
    %214 = vector.broadcast %213 : vector<48x1xf32> to vector<48x48xf32>
    %215 = arith.subf %211, %214 : vector<48x48xf32>
    %216 = math.exp %215 : vector<48x48xf32>
    %cst_94 = arith.constant dense<0.000000e+00> : vector<48xf32>
    %217 = vector.multi_reduction <add>, %216, %cst_94 [1] : vector<48x48xf32> to vector<48xf32>
    %218 = vector.shape_cast %217 : vector<48xf32> to vector<48x1xf32>
    %219 = tpu.reciprocal %218 {approx = true} : vector<48x1xf32> -> vector<48x1xf32>
    %220 = vector.broadcast %219 : vector<48x1xf32> to vector<48x48xf32>
    %221 = arith.mulf %216, %220 : vector<48x48xf32>
    %222 = arith.truncf %221 : vector<48x48xf32> to vector<48x48xbf16>
    %cst_95 = arith.constant dense<0.000000e+00> : vector<48x16xf32>
    %223 = tpu.matmul %222, %209, %cst_95 {dimension_numbers = #tpu.dot_dimension_numbers<[1], [0], [0], [1], [0, 0, 1, 1], [], []>} : vector<48x48xbf16>, vector<48x16xbf16>, vector<48x16xf32> -> vector<48x16xf32>
    %224 = tpu.concatenate %203, %223 in 1 : vector<48x16xf32>, vector<48x16xf32> -> vector<48x32xf32>
    %225 = arith.truncf %224 : vector<48x32xf32> to vector<48x32xbf16>
    %c1_96 = arith.constant 1 : index
    %c0_97 = arith.constant 0 : index
    %c0_98 = arith.constant 0 : index
    %226 = vector.load %arg11[%c1_96, %c0_97, %c0_98] : memref<2x32x32xbf16, #tpu.memory_space<vmem>>, vector<1x32x32xbf16>
    %227 = vector.shape_cast %226 : vector<1x32x32xbf16> to vector<32x32xbf16>
    %cst_99 = arith.constant dense<0.000000e+00> : vector<48x32xf32>
    %228 = tpu.matmul %225, %227, %cst_99 {dimension_numbers = #tpu.dot_dimension_numbers<[1], [0], [0], [1], [0, 0, 1, 1], [], []>} : vector<48x32xbf16>, vector<32x32xbf16>, vector<48x32xf32> -> vector<48x32xf32>
    %c1_100 = arith.constant 1 : index
    %c0_101 = arith.constant 0 : index
    %c0_102 = arith.constant 0 : index
    %229 = vector.load %arg12[%c1_100, %c0_101, %c0_102] : memref<2x1x32xf32, #tpu.memory_space<vmem>>, vector<1x1x32xf32>
    %230 = vector.shape_cast %229 : vector<1x1x32xf32> to vector<1x32xf32>
    %231 = vector.broadcast %230 : vector<1x32xf32> to vector<48x32xf32>
    %232 = arith.addf %228, %231 : vector<48x32xf32>
    %233 = arith.addf %232, %175 : vector<48x32xf32>
    %c1_103 = arith.constant 1 : index
    %c0_104 = arith.constant 0 : index
    %c0_105 = arith.constant 0 : index
    %234 = vector.load %arg13[%c1_103, %c0_104, %c0_105] : memref<2x1x32xf32, #tpu.memory_space<vmem>>, vector<1x1x32xf32>
    %235 = vector.shape_cast %234 : vector<1x1x32xf32> to vector<1x32xf32>
    %c1_106 = arith.constant 1 : index
    %c0_107 = arith.constant 0 : index
    %c0_108 = arith.constant 0 : index
    %236 = vector.load %arg14[%c1_106, %c0_107, %c0_108] : memref<2x1x32xf32, #tpu.memory_space<vmem>>, vector<1x1x32xf32>
    %237 = vector.shape_cast %236 : vector<1x1x32xf32> to vector<1x32xf32>
    %cst_109 = arith.constant dense<0.000000e+00> : vector<48xf32>
    %238 = vector.multi_reduction <add>, %233, %cst_109 [1] : vector<48x32xf32> to vector<48xf32>
    %239 = vector.shape_cast %238 : vector<48xf32> to vector<48x1xf32>
    %cst_110 = arith.constant 3.200000e+01 : f32
    %240 = vector.broadcast %cst_110 : f32 to vector<48x1xf32>
    %241 = arith.divf %239, %240 : vector<48x1xf32>
    %242 = vector.broadcast %241 : vector<48x1xf32> to vector<48x32xf32>
    %243 = arith.subf %233, %242 : vector<48x32xf32>
    %244 = arith.mulf %243, %243 : vector<48x32xf32>
    %cst_111 = arith.constant dense<0.000000e+00> : vector<48xf32>
    %245 = vector.multi_reduction <add>, %244, %cst_111 [1] : vector<48x32xf32> to vector<48xf32>
    %246 = vector.shape_cast %245 : vector<48xf32> to vector<48x1xf32>
    %cst_112 = arith.constant 3.200000e+01 : f32
    %247 = vector.broadcast %cst_112 : f32 to vector<48x1xf32>
    %248 = arith.divf %246, %247 : vector<48x1xf32>
    %249 = vector.broadcast %241 : vector<48x1xf32> to vector<48x32xf32>
    %250 = arith.subf %233, %249 : vector<48x32xf32>
    %cst_113 = arith.constant 9.99999996E-13 : f32
    %251 = vector.broadcast %cst_113 : f32 to vector<48x1xf32>
    %252 = arith.addf %248, %251 : vector<48x1xf32>
    %253 = math.rsqrt %252 : vector<48x1xf32>
    %254 = vector.broadcast %253 : vector<48x1xf32> to vector<48x32xf32>
    %255 = arith.mulf %250, %254 : vector<48x32xf32>
    %256 = vector.broadcast %235 : vector<1x32xf32> to vector<48x32xf32>
    %257 = arith.mulf %255, %256 : vector<48x32xf32>
    %258 = vector.broadcast %237 : vector<1x32xf32> to vector<48x32xf32>
    %259 = arith.addf %257, %258 : vector<48x32xf32>
    %260 = arith.truncf %259 : vector<48x32xf32> to vector<48x32xbf16>
    %c1_114 = arith.constant 1 : index
    %c0_115 = arith.constant 0 : index
    %c0_116 = arith.constant 0 : index
    %261 = vector.load %arg15[%c1_114, %c0_115, %c0_116] : memref<2x32x64xbf16, #tpu.memory_space<vmem>>, vector<1x32x64xbf16>
    %262 = vector.shape_cast %261 : vector<1x32x64xbf16> to vector<32x64xbf16>
    %cst_117 = arith.constant dense<0.000000e+00> : vector<48x64xf32>
    %263 = tpu.matmul %260, %262, %cst_117 {dimension_numbers = #tpu.dot_dimension_numbers<[1], [0], [0], [1], [0, 0, 1, 1], [], []>} : vector<48x32xbf16>, vector<32x64xbf16>, vector<48x64xf32> -> vector<48x64xf32>
    %c1_118 = arith.constant 1 : index
    %c0_119 = arith.constant 0 : index
    %c0_120 = arith.constant 0 : index
    %264 = vector.load %arg16[%c1_118, %c0_119, %c0_120] : memref<2x1x64xf32, #tpu.memory_space<vmem>>, vector<1x1x64xf32>
    %265 = vector.shape_cast %264 : vector<1x1x64xf32> to vector<1x64xf32>
    %266 = vector.broadcast %265 : vector<1x64xf32> to vector<48x64xf32>
    %267 = arith.addf %263, %266 : vector<48x64xf32>
    %cst_121 = arith.constant 5.000000e-01 : f32
    %268 = vector.broadcast %cst_121 : f32 to vector<48x64xf32>
    %269 = arith.mulf %268, %267 : vector<48x64xf32>
    %cst_122 = arith.constant 0.707106769 : f32
    %270 = vector.broadcast %cst_122 : f32 to vector<48x64xf32>
    %271 = arith.mulf %267, %270 : vector<48x64xf32>
    %272 = math.erf %271 : vector<48x64xf32>
    %cst_123 = arith.constant 1.000000e+00 : f32
    %273 = vector.broadcast %cst_123 : f32 to vector<48x64xf32>
    %274 = arith.addf %273, %272 : vector<48x64xf32>
    %275 = arith.mulf %269, %274 : vector<48x64xf32>
    %276 = arith.truncf %275 : vector<48x64xf32> to vector<48x64xbf16>
    %c1_124 = arith.constant 1 : index
    %c0_125 = arith.constant 0 : index
    %c0_126 = arith.constant 0 : index
    %277 = vector.load %arg17[%c1_124, %c0_125, %c0_126] : memref<2x64x32xbf16, #tpu.memory_space<vmem>>, vector<1x64x32xbf16>
    %278 = vector.shape_cast %277 : vector<1x64x32xbf16> to vector<64x32xbf16>
    %cst_127 = arith.constant dense<0.000000e+00> : vector<48x32xf32>
    %279 = tpu.matmul %276, %278, %cst_127 {dimension_numbers = #tpu.dot_dimension_numbers<[1], [0], [0], [1], [0, 0, 1, 1], [], []>} : vector<48x64xbf16>, vector<64x32xbf16>, vector<48x32xf32> -> vector<48x32xf32>
    %c1_128 = arith.constant 1 : index
    %c0_129 = arith.constant 0 : index
    %c0_130 = arith.constant 0 : index
    %280 = vector.load %arg18[%c1_128, %c0_129, %c0_130] : memref<2x1x32xf32, #tpu.memory_space<vmem>>, vector<1x1x32xf32>
    %281 = vector.shape_cast %280 : vector<1x1x32xf32> to vector<1x32xf32>
    %282 = vector.broadcast %281 : vector<1x32xf32> to vector<48x32xf32>
    %283 = arith.addf %279, %282 : vector<48x32xf32>
    %284 = arith.addf %283, %259 : vector<48x32xf32>
    %c1_131 = arith.constant 1 : index
    %c0_132 = arith.constant 0 : index
    %c0_133 = arith.constant 0 : index
    %285 = vector.load %arg19[%c1_131, %c0_132, %c0_133] : memref<2x1x32xf32, #tpu.memory_space<vmem>>, vector<1x1x32xf32>
    %286 = vector.shape_cast %285 : vector<1x1x32xf32> to vector<1x32xf32>
    %c1_134 = arith.constant 1 : index
    %c0_135 = arith.constant 0 : index
    %c0_136 = arith.constant 0 : index
    %287 = vector.load %arg20[%c1_134, %c0_135, %c0_136] : memref<2x1x32xf32, #tpu.memory_space<vmem>>, vector<1x1x32xf32>
    %288 = vector.shape_cast %287 : vector<1x1x32xf32> to vector<1x32xf32>
    %cst_137 = arith.constant dense<0.000000e+00> : vector<48xf32>
    %289 = vector.multi_reduction <add>, %284, %cst_137 [1] : vector<48x32xf32> to vector<48xf32>
    %290 = vector.shape_cast %289 : vector<48xf32> to vector<48x1xf32>
    %cst_138 = arith.constant 3.200000e+01 : f32
    %291 = vector.broadcast %cst_138 : f32 to vector<48x1xf32>
    %292 = arith.divf %290, %291 : vector<48x1xf32>
    %293 = vector.broadcast %292 : vector<48x1xf32> to vector<48x32xf32>
    %294 = arith.subf %284, %293 : vector<48x32xf32>
    %295 = arith.mulf %294, %294 : vector<48x32xf32>
    %cst_139 = arith.constant dense<0.000000e+00> : vector<48xf32>
    %296 = vector.multi_reduction <add>, %295, %cst_139 [1] : vector<48x32xf32> to vector<48xf32>
    %297 = vector.shape_cast %296 : vector<48xf32> to vector<48x1xf32>
    %cst_140 = arith.constant 3.200000e+01 : f32
    %298 = vector.broadcast %cst_140 : f32 to vector<48x1xf32>
    %299 = arith.divf %297, %298 : vector<48x1xf32>
    %300 = vector.broadcast %292 : vector<48x1xf32> to vector<48x32xf32>
    %301 = arith.subf %284, %300 : vector<48x32xf32>
    %cst_141 = arith.constant 9.99999996E-13 : f32
    %302 = vector.broadcast %cst_141 : f32 to vector<48x1xf32>
    %303 = arith.addf %299, %302 : vector<48x1xf32>
    %304 = math.rsqrt %303 : vector<48x1xf32>
    %305 = vector.broadcast %304 : vector<48x1xf32> to vector<48x32xf32>
    %306 = arith.mulf %301, %305 : vector<48x32xf32>
    %307 = vector.broadcast %286 : vector<1x32xf32> to vector<48x32xf32>
    %308 = arith.mulf %306, %307 : vector<48x32xf32>
    %309 = vector.broadcast %288 : vector<1x32xf32> to vector<48x32xf32>
    %310 = arith.addf %308, %309 : vector<48x32xf32>
    %c0_142 = arith.constant 0 : index
    %c0_143 = arith.constant 0 : index
    %311 = vector.load %arg4[%c0_142, %c0_143] : memref<4x48xf32, #tpu.memory_space<vmem>>, vector<4x48xf32>
    %cst_144 = arith.constant dense<0.000000e+00> : vector<4x32xf32>
    %312 = tpu.matmul %311, %310, %cst_144 {dimension_numbers = #tpu.dot_dimension_numbers<[1], [0], [0], [1], [0, 0, 1, 1], [], []>} : vector<4x48xf32>, vector<48x32xf32>, vector<4x32xf32> -> vector<4x32xf32>
    %313 = math.tanh %312 : vector<4x32xf32>
    %c0_145 = arith.constant 0 : index
    %c0_146 = arith.constant 0 : index
    %314 = vector.load %arg21[%c0_145, %c0_146] : memref<4x32xf32, #tpu.memory_space<vmem>>, vector<4x32xf32>
    tpu.vector_store %arg21[%c0_145, %c0_146], %313 {strides = array<i32>} : memref<4x32xf32, #tpu.memory_space<vmem>>, vector<4x32xf32>,
    return
  }
}

</mosaic_0001>

<bundles_post_ra>
// kernel: eq.15
= control target key start
LH: loop header
LB: loop body
LE: loop exit
PB: predicated region body
PF: predicated region fallthrough
CT: control target
= control target key end

     0   :  { %vm7_vm0 = vcmask 97280   ;;  %s37_s8 = smov 12   ;;  %s38_s9 = smov 24   ;;  %vm13_vm1 = vcmask 392480   ;;  %vm19_vm2 = vcmask 294080   ;;  %vm25_vm3 = vcmask 195680   ;;  %s55_s0 = inlined_call_operand.vmem [shape: s32[4,12], index: 0, kind: input, shape index: {}]   ;;  %s56_s1 = inlined_call_operand.vmem [shape: s32[48], index: 1, kind: output, shape index: {}]  }
   0x1   :  { %v4_v0 = vld [vmem:[%s55_s0] sm:$0xf]  ;;  %s36_s0 = smov 36  }
   0x2   :  { %5 = vst [vmem:[#allocation1] sm:$0xf] %v4_v0 }
   0x9   :  { %v10_v1 = vld [vmem:[#allocation1 + $0x3] sm:$0x1]   ;;  %v22_v2 = vld [vmem:[#allocation1 + $0x1] sm:$0x1]   ;;  %v6_v3 = vld [vmem:[#allocation1] sm:$0x1]  }
   0xa   :  { %11 = vrot.lane.b32.xlu0 %v10_v1, %s36_s0  ;;  %23 = vrot.lane.b32.xlu1 %v22_v2, %s37_s8  ;;  %v16_v4 = vld [vmem:[#allocation1 + $0x2] sm:$0x1]   ;;  %8 = vst.msk [vmem:[#allocation0] sm:$0x1] %vm7_vm0, %v6_v3  }
   0xe   :  { %17 = vrot.lane.b32.xlu0 %v16_v4, %s38_s9 }
  0x7c   :  { %v12_v5 = vpop.permute.xlu0 %11   ;;  %v24_v6 = vpop.permute.xlu1 %23  }
  0x7d   :  { %14 = vst.msk [vmem:[#allocation0] sm:$0x1] %vm13_vm1, %v12_v5  }
  0x80   :  { %v18_v7 = vpop.permute.xlu0 %17  }
  0x81   :  { %20 = vst.msk [vmem:[#allocation0] sm:$0x1] %vm19_vm2, %v18_v7  }
  0x82   :  { %26 = vst.msk [vmem:[#allocation0] sm:$0x1] %vm25_vm3, %v24_v6  }
  0x89   :  { %v30_v8 = vld [vmem:[#allocation0] sm:$0x1] }
  0x8a   :  { %32 = vst [vmem:[%s56_s1] sm:$0x1] %v30_v8 }

// kernel: contrastive_two_level_forward_dual.1
= control target key start
LH: loop header
LB: loop body
LE: loop exit
PB: predicated region body
PF: predicated region fallthrough
CT: control target
= control target key end

     0   :  { %vm77_vm0 = vcmask 261120   ;;  %v3525_v3 = vmov 0.0   ;;  %vm3526_vm1 = vmmov 0   ;;  %vm219_vm2 = vcmask 1041408   ;;  %s3529_s23 = smov 80   ;;  %s3531_s24 = smov 64   ;;  %s4604_s0 = inlined_call_operand.vmem [shape: f32[48,32], index: 0, kind: input, shape index: {}]   ;;  %s4605_s7 = inlined_call_operand.vmem [shape: bf16[20,32], index: 7, kind: input, shape index: {}]   ;;  %s4606_s1 = inlined_call_operand.vmem [shape: f32[48,20], index: 1, kind: input, shape index: {}]   ;;  %s4607_s2 = inlined_call_operand.vmem [shape: f32[48,1], index: 2, kind: input, shape index: {}]   ;;  %s4608_s9 = inlined_call_operand.vmem [shape: bf16[2,32,96], index: 9, kind: input, shape index: {}]   ;;  %s4609_s5 = inlined_call_operand.vmem [shape: f32[1,32], index: 5, kind: input, shape index: {}]   ;;  %s4610_s6 = inlined_call_operand.vmem [shape: f32[1,32], index: 6, kind: input, shape index: {}]   ;;  %s4611_s8 = inlined_call_operand.vmem [shape: f32[1,32], index: 8, kind: input, shape index: {}]   ;;  %s4612_s10 = inlined_call_operand.vmem [shape: f32[2,1,96], index: 10, kind: input, shape index: {}]   ;;  %s4613_s3 = inlined_call_operand.vmem [shape: f32[48,48], index: 3, kind: input, shape index: {}]   ;;  %s4614_s11 = inlined_call_operand.vmem [shape: bf16[2,32,32], index: 11, kind: input, shape index: {}]   ;;  %s4615_s12 = inlined_call_operand.vmem [shape: f32[2,1,32], index: 12, kind: input, shape index: {}]   ;;  %s4616_s15 = inlined_call_operand.vmem [shape: bf16[2,32,64], index: 15, kind: input, shape index: {}]   ;;  %s4617_s13 = inlined_call_operand.vmem [shape: f32[2,1,32], index: 13, kind: input, shape index: {}]   ;;  %s4618_s14 = inlined_call_operand.vmem [shape: f32[2,1,32], index: 14, kind: input, shape index: {}]   ;;  %s4619_s17 = inlined_call_operand.vmem [shape: bf16[2,64,32], index: 17, kind: input, shape index: {}]   ;;  %s4620_s16 = inlined_call_operand.vmem [shape: f32[2,1,64], index: 16, kind: input, shape index: {}]   ;;  %s4621_s18 = inlined_call_operand.vmem [shape: f32[2,1,32], index: 18, kind: input, shape index: {}]   ;;  %s4622_s19 = inlined_call_operand.vmem [shape: f32[2,1,32], index: 19, kind: input, shape index: {}]   ;;  %s4623_s20 = inlined_call_operand.vmem [shape: f32[2,1,32], index: 20, kind: input, shape index: {}]   ;;  %s4624_s4 = inlined_call_operand.vmem [shape: f32[4,48], index: 4, kind: input, shape index: {}]   ;;  %s4625_s21 = inlined_call_operand.vmem [shape: f32[4,32], index: 21, kind: output, shape index: {}]  }
   0x1   :  { %4631 = sst [smem:[#allocation2_spill]] %s4604_s0  ;;  %2949 = vmatprep.subr.bf16.mxu0 %v3525_v3  ;;  %2953 = vmatprep.mubr.msk.bf16.mxu0 %vm3526_vm1, %v3525_v3  ;;  %v3527_v8 = vmov 0   ;;  %vm209_vm3 = vcmask 162816   ;;  %vm480_vm4 = vcmask 130048   ;;  %vm556_vm5 = vcmask 392192  }
   0x2   :  { %4632 = sst [smem:[#allocation3_spill]] %s4605_s7  ;;  %s4637_s26 = sld [smem:[#allocation2_spill]]  ;;  %3284 = vset.pattern.permute.xlu1 %v3527_v8  ;;  %3283 = vset.pattern.permute.xlu0 %v3527_v8  ;;  %vm1328_vm6 = vcmask 523264   ;;  %vm2718_vm7 = vcmask 257024  }
   0x3   :  { %4633 = sst [smem:[#allocation4_spill]] %s4606_s1  ;;  %s4638_s22 = sld [smem:[#allocation3_spill]]  ;;  %2965 = vmatprep.subr.bf16.mxu1 %v3525_v3  ;;  %2969 = vmatprep.mubr.msk.bf16.mxu1 %vm3526_vm1, %v3525_v3 }
   0x4   :  { %4634 = sst [smem:[#allocation5_spill]] %s4607_s2  ;;  %s4639_s25 = sld [smem:[#allocation4_spill]] }
   0x5   :  { %4635 = sst [smem:[#allocation6_spill]] %s4608_s9  ;;  %s4640_s28 = sld [smem:[#allocation5_spill]] }
   0x6   :  { %4636 = sst [smem:[#allocation7_spill]] %s4609_s5  ;;  %s4641_s27 = sld [smem:[#allocation6_spill]] }
   0x7   :  { %s3530_s7 = smov 112   ;;  %s3532_s1 = smov 48  }
   0x8   :  { %v3648_v0 = vld [vmem:[%s4637_s26] sm:$0xff]  ;;  %v3653_v1 = vld [vmem:[%s4637_s26 + $0x10] sm:$0xff]  ;;  %v3658_v2 = vld [vmem:[%s4637_s26 + $0x8] sm:$0xff] }
   0x9   :  { %v78_v4 = vsel %vm77_vm0, %v3648_v0, 0.0  ;;  %v84_v5 = vsel %vm77_vm0, %v3653_v1, 0.0  ;;  %v3670_v6 = vld [vmem:[%s4637_s26 + $0x18] sm:$0xff]  ;;  %v3315_v7 = vld [vmem:[%s4638_s22] sm:$0xff]   ;;  %v81_v9 = vsel %vm77_vm0, %v3658_v2, 0.0  ;;  %v3689_v13 = vld [vmem:[%s4637_s26 + $0x28] sm:$0xff] }
   0xa   :  { %79 = vadd.xlane.f32.xlu0 %v78_v4  ;;  %85 = vadd.xlane.f32.xlu1 %v84_v5  ;;  %v87_v10 = vsel %vm77_vm0, %v3670_v6, 0.0  ;;  %v3316_v11 = vld [vmem:[%s4638_s22 + $0x8] ss:$0 sps:$4 sm:$0x33]   ;;  %v181_v12 = vld [vmem:[%s4639_s25] sm:$0xff]  ;;  %v93_v18 = vsel %vm77_vm0, %v3689_v13, 0.0 }
   0xb   :  { %2950 = vmatpush3.bf16.msra.mxu0 %v3315_v7  ;;  %v182_v14 = vld [vmem:[%s4639_s25 + $0x8] sm:$0xff]  ;;  %v221_v15 = vsel %vm219_vm2, %v3316_v11, 0  ;;  %v3701_v16 = vld [vmem:[%s4637_s26 + $0x20] sm:$0xff]  ;;  %v183_v20 = vld [vmem:[%s4639_s25 + $0x10] sm:$0xff]  ;;  %s3528_s22 = smov 96  }
   0xc   :  { %2951 = vmatprep.subr.bf16.mxu0 %v3525_v3  ;;  %v187_v17 = vpack.c.bf16 %v182_v14, %v181_v12  ;;  %v90_v19 = vsel %vm77_vm0, %v3701_v16, 0.0  ;;  %v184_v21 = vld [vmem:[%s4639_s25 + $0x18] sm:$0xff]  ;;  %v185_v23 = vld [vmem:[%s4639_s25 + $0x20] sm:$0xff]  ;;  %v186_v24 = vld [vmem:[%s4639_s25 + $0x28] sm:$0xff]  ;;  %s4642_s25 = sld [smem:[#allocation7_spill]] }
   0xd   :  { %v188_v22 = vpack.c.bf16 %v184_v21, %v183_v20  ;;  %v189_v25 = vpack.c.bf16 %v186_v24, %v185_v23  ;;  %v281_v26 = vld [vmem:[%s4640_s28 + $0x8] sm:$0xff]  ;;  %v280_v27 = vld [vmem:[%s4640_s28] sm:$0xff]  ;;  %v282_v30 = vld [vmem:[%s4640_s28 + $0x10] sm:$0xff] }
   0xe   :  { %82 = vadd.xlane.f32.xlu0 %v81_v9  ;;  %88 = vadd.xlane.f32.xlu1 %v87_v10  ;;  %v322_v28 = vsub.f32 1.0, %v280_v27  ;;  %v323_v29 = vsub.f32 1.0, %v281_v26  ;;  %v283_v31 = vld [vmem:[%s4640_s28 + $0x18] sm:$0xff]  ;;  %v324_v32 = vsub.f32 1.0, %v282_v30  ;;  %v284_v34 = vld [vmem:[%s4640_s28 + $0x20] sm:$0xff]  ;;  %v285_v60 = vld [vmem:[%s4640_s28 + $0x28] sm:$0xff] }
   0xf   :  { %2952 = vmatpush3.bf16.msra.mxu0 %v221_v15  ;;  %v325_v33 = vsub.f32 1.0, %v283_v31  ;;  %v326_v61 = vsub.f32 1.0, %v284_v34  ;;  %v3317_v62 = vld [vmem:[%s4641_s27] sm:$0xff]   ;;  %v3318_v63 = vld [vmem:[%s4641_s27 + $0x8] sm:$0xff]   ;;  %v327_v10 = vsub.f32 1.0, %v285_v60 }
  0x10   :  { %2981 = vmatprep.subr.bf16.mxu0 %v3525_v3  ;;  %2966 = vmatpush3.bf16.msra.mxu1 %v3317_v62 }
  0x11   :  { %2967 = vmatprep.subr.bf16.mxu1 %v3525_v3 }
  0x12   :  { %94 = vadd.xlane.f32.xlu1 %v93_v18  ;;  %2954 = vmatmul.mubr.msk.bf16.vlgmr.msra.gmra.mrb[0].mxu0 %vm209_vm3, %v187_v17 }
  0x13   :  { %2957 = vmatprep.mubr.msk.bf16.mxu0 %vm3526_vm1, %v3525_v3  ;;  %91 = vadd.xlane.f32.xlu0 %v90_v19 }
  0x14   :  { %2968 = vmatpush3.bf16.msra.mxu1 %v3318_v63 }
  0x15   :  { %2999 = vmatprep.subr.bf16.mxu1 %v3525_v3 }
  0x1a   :  { %2958 = vmatmul.mubr.msk.bf16.gmra.mrb[4].mxu0 %vm209_vm3, %v188_v22 }
  0x1b   :  { %2961 = vmatprep.mubr.msk.bf16.mxu0 %vm3526_vm1, %v3525_v3 }
  0x22   :  { %2962 = vmatmul.mubr.msk.bf16.gmra.mrb[8].mxu0 %vm209_vm3, %v189_v25 }
  0x23   :  { %293 = vperm.xlu1 %3284, %v281_v26   ;;  %2987 = vmatprep.mubr.msk.bf16.mxu0 %vm3526_vm1, %v3525_v3 }
  0x27   :  { %330 = vperm.xlu1 %3284, %v322_v28  }
  0x29   :  { %288 = vperm.xlu0 %3283, %v280_v27  }
  0x2b   :  { %335 = vperm.xlu1 %3284, %v323_v29  }
  0x2f   :  { %298 = vperm.xlu1 %3284, %v282_v30  }
  0x33   :  { %303 = vperm.xlu1 %3284, %v283_v31  }
  0x37   :  { %340 = vperm.xlu1 %3284, %v324_v32  }
  0x3b   :  { %345 = vperm.xlu1 %3284, %v325_v33  }
  0x3f   :  { %308 = vperm.xlu1 %3284, %v284_v34  }
  0x97   :  { %v80_v35 = vpop.xlane.xlu0 %79  ;;  %v86_v36 = vpop.xlane.xlu1 %85 }
  0x98   :  { %v97_v37 = vmul.f32 0.03125, %v80_v35  ;;  %v99_v38 = vmul.f32 0.03125, %v86_v36 }
  0x9a   :  { %v3745_v39 = vsub.f32 %v3648_v0, %v97_v37  ;;  %v3748_v40 = vsub.f32 %v3653_v1, %v99_v38 }
  0x9b   :  { %v83_v41 = vpop.xlane.xlu0 %82  ;;  %v89_v42 = vpop.xlane.xlu1 %88 }
  0x9c   :  { %v98_v43 = vmul.f32 0.03125, %v83_v41  ;;  %v100_v44 = vmul.f32 0.03125, %v89_v42  ;;  %v109_v45 = vmul.f32 %v3745_v39, %v3745_v39  ;;  %v111_v46 = vmul.f32 %v3748_v40, %v3748_v40 }
  0x9e   :  { %v3755_v47 = vsub.f32 %v3658_v2, %v98_v43  ;;  %v3758_v48 = vsub.f32 %v3670_v6, %v100_v44  ;;  %v115_v49 = vsel %vm77_vm0, %v109_v45, 0.0  ;;  %v121_v52 = vsel %vm77_vm0, %v111_v46, 0.0  ;;  %v2724_v43 = vld [vmem:[%s4642_s25] ss:$0 sm:$0xff]  ;;  %s3533_s25 = smov 16  }
  0x9f   :  { %116 = vadd.xlane.f32.xlu0 %v115_v49  ;;  %v95_v50 = vpop.xlane.xlu1 %94  ;;  %v2725_v45 = vld [vmem:[%s4610_s6] ss:$0 sm:$0xff] }
  0xa0   :  { %v102_v51 = vmul.f32 0.03125, %v95_v50  ;;  %v110_v53 = vmul.f32 %v3755_v47, %v3755_v47  ;;  %v112_v54 = vmul.f32 %v3758_v48, %v3758_v48  ;;  %v92_v0 = vpop.xlane.xlu0 %91  ;;  %v2726_v50 = vld [vmem:[%s4611_s8] ss:$0 sm:$0xff] }
  0xa1   :  { %v101_v1 = vmul.f32 0.03125, %v92_v0 }
  0xa2   :  { %v3767_v55 = vsub.f32 %v3689_v13, %v102_v51  ;;  %v118_v56 = vsel %vm77_vm0, %v110_v53, 0.0  ;;  %v124_v57 = vsel %vm77_vm0, %v112_v54, 0.0 }
  0xa3   :  { %122 = vadd.xlane.f32.xlu0 %v121_v52  ;;  %119 = vadd.xlane.f32.xlu1 %v118_v56  ;;  %v3786_v2 = vsub.f32 %v3701_v16, %v101_v1  ;;  %v294_v19 = vpop.permute.xlu1 %293 }
  0xa4   :  { %v114_v58 = vmul.f32 %v3767_v55, %v3767_v55 }
  0xa5   :  { %v113_v4 = vmul.f32 %v3786_v2, %v3786_v2 }
  0xa6   :  { %v130_v59 = vsel %vm77_vm0, %v114_v58, 0.0 }
  0xa7   :  { %125 = vadd.xlane.f32.xlu1 %v124_v57  ;;  %v127_v5 = vsel %vm77_vm0, %v113_v4, 0.0  ;;  %v331_v20 = vpop.permute.xlu1 %330 }
  0xa8   :  { %v289_v26 = vpop.permute.xlu0 %288 }
  0xab   :  { %131 = vadd.xlane.f32.xlu1 %v130_v59  ;;  %v336_v21 = vpop.permute.xlu1 %335 }
  0xaf   :  { %v299_v22 = vpop.permute.xlu1 %298 }
  0xb3   :  { %v304_v23 = vpop.permute.xlu1 %303 }
  0xb7   :  { %v341_v24 = vpop.permute.xlu1 %340 }
  0xb9   :  { %313 = vperm.xlu0 %3283, %v285_v60  }
  0xbb   :  { %v346_v25 = vpop.permute.xlu1 %345 }
  0xbc   :  { %350 = vperm.xlu1 %3284, %v326_v61  }
  0xbf   :  { %v3797_v27 = vpop.permute.xlu1 %308 }
  0xd8   :  { %128 = vadd.xlane.f32.xlu0 %v127_v5 }
  0xe5   :  { %v257_v6 = vpop.f32.mrb[0].mxu0 }
  0xe6   :  { %v2955_v7 = vpop.f32.mrb[1].mxu0  ;;  %v258_v56 = vadd.f32 %v2726_v50, %v257_v6 }
  0xe7   :  { %v260_v8 = vpop.f32.mrb[2].mxu0 }
  0xe8   :  { %v2956_v9 = vpop.f32.mrb[3].mxu0  ;;  %v261_v57 = vadd.f32 %v2726_v50, %v260_v8  ;;  %v316_v0 = vmul.f32 %v289_v26, %v258_v56 }
  0xea   :  { %v317_v63 = vmul.f32 %v294_v19, %v261_v57 }
  0xed   :  { %v3791_v11 = vpop.f32.mrb[4].mxu0 }
  0xee   :  { %355 = vperm.xlu0 %3283, %v327_v10   ;;  %v2959_v12 = vpop.f32.mrb[5].mxu0  ;;  %v266_v6 = vadd.f32 %v2726_v50, %v3791_v11 }
  0xef   :  { %v268_v13 = vpop.f32.mrb[6].mxu0 }
  0xf0   :  { %v2960_v14 = vpop.f32.mrb[7].mxu0  ;;  %v269_v5 = vadd.f32 %v2726_v50, %v268_v13  ;;  %v318_v13 = vmul.f32 %v299_v22, %v266_v6 }
  0xf2   :  { %v319_v10 = vmul.f32 %v304_v23, %v269_v5 }
  0xf5   :  { %v3793_v15 = vpop.f32.mrb[8].mxu0 }
  0xf6   :  { %v2963_v16 = vpop.f32.mrb[9].mxu0 }
  0xf7   :  { %v3795_v17 = vpop.f32.mrb[10].mxu0 }
  0xf8   :  { %v2964_v18 = vpop.f32.mrb[11].mxu0 }
 0x12c   :  { %v117_v28 = vpop.xlane.xlu0 %116 }
 0x12d   :  { %v133_v29 = vmul.f32 0.03125, %v117_v28 }
 0x12f   :  { %v139_v30 = vadd.f32 1e-12, %v133_v29 }
 0x130   :  { %v120_v31 = vpop.xlane.xlu1 %119  ;;  %v123_v32 = vpop.xlane.xlu0 %122 }
 0x131   :  { %3337 = vrsqrt.f32 %v139_v30  ;;  %v134_v33 = vmul.f32 0.03125, %v120_v31  ;;  %v135_v34 = vmul.f32 0.03125, %v123_v32  ;;  %v274_v32 = vadd.f32 %v2726_v50, %v3793_v15  ;;  %v2732_v15 = vld [vmem:[%s4612_s10] ss:$0 sm:$0xff] }
 0x133   :  { %v140_v35 = vadd.f32 1e-12, %v134_v33  ;;  %v141_v36 = vadd.f32 1e-12, %v135_v34  ;;  %v277_v33 = vadd.f32 %v2726_v50, %v3795_v17 }
 0x134   :  { %v126_v37 = vpop.xlane.xlu1 %125 }
 0x135   :  { %3339 = vrsqrt.f32 %v140_v35  ;;  %v136_v38 = vmul.f32 0.03125, %v126_v37 }
 0x136   :  { %3341 = vrsqrt.f32 %v141_v36 }
 0x137   :  { %v142_v41 = vadd.f32 1e-12, %v136_v38 }
 0x138   :  { %v132_v11 = vpop.xlane.xlu1 %131 }
 0x139   :  { %3343 = vrsqrt.f32 %v142_v41  ;;  %v138_v19 = vmul.f32 0.03125, %v132_v11  ;;  %v320_v41 = vmul.f32 %v3797_v27, %v274_v32 }
 0x13b   :  { %v3338_v42 = vpop.eup %3337 }
 0x13c   :  { %v151_v44 = vmul.f32 %v3338_v42, %v3745_v39  ;;  %v351_v38 = vpop.permute.xlu1 %350 }
 0x13e   :  { %v163_v46 = vmul.f32 %v2724_v43, %v151_v44 }
 0x13f   :  { %v3340_v49 = vpop.eup %3339 }
 0x140   :  { %v3342_v51 = vpop.eup %3341  ;;  %v152_v52 = vmul.f32 %v3340_v49, %v3755_v47  ;;  %v175_v53 = vadd.f32 %v2725_v45, %v163_v46 }
 0x141   :  { %v153_v54 = vmul.f32 %v3342_v51, %v3748_v40 }
 0x142   :  { %v164_v58 = vmul.f32 %v2724_v43, %v152_v52  ;;  %v358_v61 = vmul.f32 %v331_v20, %v175_v53  ;;  %v144_v20 = vadd.f32 1e-12, %v138_v19 }
 0x143   :  { %v3344_v39 = vpop.eup %3343  ;;  %v165_v62 = vmul.f32 %v2724_v43, %v153_v54 }
 0x144   :  { %v154_v59 = vmul.f32 %v3344_v39, %v3758_v48  ;;  %v176_v60 = vadd.f32 %v2725_v45, %v164_v58  ;;  %v3812_v7 = vadd.f32 %v358_v61, %v316_v0  ;;  %3345 = vrsqrt.f32 %v144_v20 }
 0x145   :  { %v177_v9 = vadd.f32 %v2725_v45, %v165_v62 }
 0x146   :  { %v359_v1 = vmul.f32 %v336_v21, %v176_v60  ;;  %v166_v4 = vmul.f32 %v2724_v43, %v154_v59  ;;  %v314_v21 = vpop.permute.xlu0 %313 }
 0x147   :  { %v360_v12 = vmul.f32 %v341_v24, %v177_v9  ;;  %v321_v42 = vmul.f32 %v314_v21, %v277_v33 }
 0x148   :  { %v3814_v47 = vadd.f32 %v359_v1, %v317_v63  ;;  %v178_v40 = vadd.f32 %v2725_v45, %v166_v4 }
 0x149   :  { %v3824_v16 = vadd.f32 %v360_v12, %v318_v13 }
 0x14a   :  { %v376_v8 = vpack.c.bf16 %v3814_v47, %v3812_v7  ;;  %v361_v48 = vmul.f32 %v346_v25, %v178_v40 }
 0x14c   :  { %2970 = vmatmul.mubr.msk.bf16.vlgmr.msra.gmra.mrb[0].mxu1 %vm77_vm0, %v376_v8  ;;  %v3822_v14 = vadd.f32 %v361_v48, %v319_v10 }
 0x14d   :  { %2973 = vmatprep.mubr.msk.bf16.mxu1 %vm3526_vm1, %v3525_v3 }
 0x14e   :  { %v377_v18 = vpack.c.bf16 %v3822_v14, %v3824_v16  ;;  %v3346_v25 = vpop.eup %3345 }
 0x14f   :  { %v156_v26 = vmul.f32 %v3346_v25, %v3767_v55  ;;  %v371_v25 = vld [vmem:[%s4613_s3 + $0x8] sm:$0xff] }
 0x151   :  { %v168_v28 = vmul.f32 %v2724_v43, %v156_v26 }
 0x153   :  { %v180_v35 = vadd.f32 %v2725_v45, %v168_v28 }
 0x154   :  { %2974 = vmatmul.mubr.msk.bf16.gmra.mrb[4].mxu1 %vm77_vm0, %v377_v18 }
 0x155   :  { %2977 = vmatprep.mubr.msk.bf16.mxu1 %vm3526_vm1, %v3525_v3 }
 0x165   :  { %v129_v23 = vpop.xlane.xlu0 %128 }
 0x166   :  { %v137_v24 = vmul.f32 0.03125, %v129_v23 }
 0x168   :  { %v143_v22 = vadd.f32 1e-12, %v137_v24  ;;  %v370_v24 = vld [vmem:[%s4613_s3] sm:$0xff] }
 0x16a   :  { %3347 = vrsqrt.f32 %v143_v22 }
 0x16d   :  { %v356_v31 = vpop.permute.xlu0 %355 }
 0x16e   :  { %v363_v37 = vmul.f32 %v356_v31, %v180_v35 }
 0x170   :  { %v3838_v55 = vadd.f32 %v363_v37, %v321_v42 }
 0x174   :  { %v3348_v29 = vpop.eup %3347 }
 0x175   :  { %v155_v30 = vmul.f32 %v3348_v29, %v3786_v2 }
 0x177   :  { %v167_v34 = vmul.f32 %v2724_v43, %v155_v30 }
 0x179   :  { %v179_v36 = vadd.f32 %v2725_v45, %v167_v34  ;;  %v372_v34 = vld [vmem:[%s4613_s3 + $0x10] sm:$0xff] }
 0x17b   :  { %v362_v44 = vmul.f32 %v351_v38, %v179_v36  ;;  %v373_v36 = vld [vmem:[%s4613_s3 + $0x18] sm:$0xff] }
 0x17d   :  { %v3836_v46 = vadd.f32 %v362_v44, %v320_v41 }
 0x17f   :  { %v378_v2 = vpack.c.bf16 %v3838_v55, %v3836_v46 }
 0x181   :  { %2978 = vmatmul.mubr.msk.bf16.gmra.mrb[8].mxu1 %vm77_vm0, %v378_v2 }
 0x182   :  { %3005 = vmatprep.mubr.msk.bf16.mxu1 %vm3526_vm1, %v3525_v3 }
 0x21f   :  { %v445_v17 = vpop.f32.mrb[0].mxu1 }
 0x220   :  { %v2971_v27 = vpop.f32.mrb[1].mxu1  ;;  %v446_v45 = vadd.f32 %v2732_v15, %v445_v17 }
 0x221   :  { %v448_v43 = vpop.f32.mrb[2].mxu1 }
 0x222   :  { %v449_v49 = vadd.f32 %v2732_v15, %v448_v43  ;;  %v2972_v50 = vpop.f32.mrb[3].mxu1  ;;  %v375_v43 = vld [vmem:[%s4613_s3 + $0x28] sm:$0xff] }
 0x224   :  { %v3848_v51 = vpack.c.bf16 %v449_v49, %v446_v45 }
 0x226   :  { %474 = vrot.lane.b32.xlu1 %v3848_v51, %s3528_s22 }
 0x227   :  { %v453_v52 = vpop.f32.mrb[4].mxu1 }
 0x228   :  { %v2975_v53 = vpop.f32.mrb[5].mxu1  ;;  %v454_v56 = vadd.f32 %v2732_v15, %v453_v52 }
 0x229   :  { %v456_v54 = vpop.f32.mrb[6].mxu1 }
 0x22a   :  { %v457_v57 = vadd.f32 %v2732_v15, %v456_v54  ;;  %v2976_v58 = vpop.f32.mrb[7].mxu1 }
 0x22c   :  { %v3852_v39 = vpack.c.bf16 %v457_v57, %v454_v56 }
 0x22e   :  { %476 = vrot.lane.b32.xlu0 %v3852_v39, %s3528_s22 }
 0x232   :  { %707 = vrot.lane.b32.xlu0 %v3848_v51, %s3529_s23 }
 0x254   :  { %v461_v59 = vpop.f32.mrb[8].mxu1 }
 0x255   :  { %v2979_v60 = vpop.f32.mrb[9].mxu1  ;;  %v462_v62 = vadd.f32 %v2732_v15, %v461_v59 }
 0x256   :  { %v464_v61 = vpop.f32.mrb[10].mxu1 }
 0x257   :  { %v465_v63 = vadd.f32 %v2732_v15, %v464_v61  ;;  %v2980_v0 = vpop.f32.mrb[11].mxu1  ;;  %v374_v15 = vld [vmem:[%s4613_s3 + $0x20] sm:$0xff] }
 0x259   :  { %v3858_v1 = vpack.c.bf16 %v465_v63, %v462_v62 }
 0x25b   :  { %711 = vrot.lane.b32.xlu0 %v3858_v1, %s3529_s23  ;;  %478 = vrot.lane.b32.xlu1 %v3858_v1, %s3528_s22 }
 0x25f   :  { %703 = vrot.lane.b32.xlu0 %v3852_v39, %s3530_s7  ;;  %709 = vrot.lane.b32.xlu1 %v3852_v39, %s3529_s23 }
 0x263   :  { %701 = vrot.lane.b32.xlu1 %v3848_v51, %s3530_s7 }
 0x267   :  { %705 = vrot.lane.b32.xlu1 %v3858_v1, %s3530_s7 }
 0x26b   :  { %626 = vrot.lane.b32.xlu1 %v3848_v51, %s3531_s24 }
 0x298   :  { %v475_v4 = vpop.permute.xlu1 %474 }
 0x299   :  { %v491_v5 = vsel %vm480_vm4, %v475_v4, 0 }
 0x29a   :  { %2982 = vmatpush3.bf16.xpose.msra.mxu0 %v491_v5 }
 0x29b   :  { %2983 = vmatprep.subr.bf16.mxu0 %v3525_v3 }
 0x2a0   :  { %v477_v9 = vpop.permute.xlu0 %476 }
 0x2a1   :  { %v494_v40 = vsel %vm480_vm4, %v477_v9, 0 }
 0x2a2   :  { %2984 = vmatpush3.bf16.xpose.msra.mxu0 %v494_v40 }
 0x2a3   :  { %2985 = vmatprep.subr.bf16.mxu0 %v3525_v3 }
 0x2a4   :  { %v708_v10 = vpop.permute.xlu0 %707 }
 0x2a5   :  { %v723_v13 = vsel %vm480_vm4, %v708_v10, 0 }
 0x2cd   :  { %v479_v6 = vpop.permute.xlu1 %478  ;;  %v712_v20 = vpop.permute.xlu0 %711 }
 0x2ce   :  { %v497_v8 = vsel %vm480_vm4, %v479_v6, 0  ;;  %v729_v21 = vsel %vm480_vm4, %v712_v20, 0 }
 0x2cf   :  { %2986 = vmatpush3.bf16.xpose.msra.mxu0 %v497_v8 }
 0x2d0   :  { %3017 = vmatprep.subr.bf16.mxu0 %v3525_v3 }
 0x2d1   :  { %v710_v48 = vpop.permute.xlu1 %709  ;;  %v704_v23 = vpop.permute.xlu0 %703 }
 0x2d2   :  { %v726_v19 = vsel %vm480_vm4, %v710_v48, 0 }
 0x2d5   :  { %v702_v12 = vpop.permute.xlu1 %701 }
 0x2d6   :  { %2988 = vmatmul.mubr.msk.bf16.vlgmr.msra.gmra.mrb[12].mxu0 %vm480_vm4, %v3848_v51 }
 0x2d7   :  { %3018 = vmatpush3.bf16.xpose.msra.mxu0 %v723_v13  ;;  %2991 = vmatprep.mubr.msk.bf16.mxu0 %vm3526_vm1, %v3525_v3 }
 0x2d8   :  { %3019 = vmatprep.subr.bf16.mxu0 %v3525_v3 }
 0x2d9   :  { %v706_v18 = vpop.permute.xlu1 %705 }
 0x2dd   :  { %v627_v11 = vpop.permute.xlu1 %626 }
 0x2de   :  { %2992 = vmatmul.mubr.msk.bf16.gmra.mrb[16].mxu0 %vm480_vm4, %v3852_v39  ;;  %3000 = vmatpush3.bf16.msra.mxu1 %v627_v11 }
 0x2df   :  { %3020 = vmatpush3.bf16.xpose.msra.mxu0 %v726_v19  ;;  %2995 = vmatprep.mubr.msk.bf16.mxu0 %vm3526_vm1, %v3525_v3 }
 0x2e0   :  { %3021 = vmatprep.subr.bf16.mxu0 %v3525_v3  ;;  %3001 = vmatprep.subr.bf16.mxu1 %v3525_v3 }
 0x2e6   :  { %2996 = vmatmul.mubr.msk.bf16.gmra.mrb[20].mxu0 %vm480_vm4, %v3858_v1 }
 0x2e7   :  { %3022 = vmatpush3.bf16.xpose.msra.mxu0 %v729_v21  ;;  %3023 = vmatprep.mubr.msk.bf16.mxu0 %vm3526_vm1, %v3525_v3 }
 0x2e8   :  { %3053 = vmatprep.subr.bf16.mxu0 %v3525_v3 }
 0x2ee   :  { %3024 = vmatmul.mubr.msk.bf16.vlgmr.msra.gmra.mrb[24].mxu0 %vm480_vm4, %v702_v12 }
 0x2ef   :  { %3027 = vmatprep.mubr.msk.bf16.mxu0 %vm3526_vm1, %v3525_v3 }
 0x2f6   :  { %3028 = vmatmul.mubr.msk.bf16.gmra.mrb[28].mxu0 %vm480_vm4, %v704_v23 }
 0x2f7   :  { %3031 = vmatprep.mubr.msk.bf16.mxu0 %vm3526_vm1, %v3525_v3 }
 0x2fe   :  { %3032 = vmatmul.mubr.msk.bf16.gmra.mrb[32].mxu0 %vm480_vm4, %v706_v18 }
 0x2ff   :  { %3057 = vmatprep.mubr.msk.bf16.mxu0 %vm3526_vm1, %v3525_v3 }
 0x3a9   :  { %v533_v22 = vpop.f32.mrb[12].mxu0 }
 0x3aa   :  { %v3914_v26 = vadd.f32 %v533_v22, %v370_v24  ;;  %v2989_v28 = vpop.f32.mrb[13].mxu0 }
 0x3ab   :  { %v536_v29 = vpop.f32.mrb[14].mxu0 }
 0x3ac   :  { %v3916_v30 = vadd.f32 %v536_v29, %v371_v25  ;;  %v2990_v31 = vpop.f32.mrb[15].mxu0  ;;  %v557_v32 = vsel %vm556_vm5, %v3914_v26, -inf }
 0x3ad   :  { %558 = vmax.xlane.f32.xlu0 %v557_v32 }
 0x3ae   :  { %v560_v33 = vsel %vm556_vm5, %v3916_v30, -inf }
 0x3af   :  { %561 = vmax.xlane.f32.xlu1 %v560_v33 }
 0x3b1   :  { %v541_v35 = vpop.f32.mrb[16].mxu0 }
 0x3b2   :  { %v3928_v37 = vadd.f32 %v541_v35, %v372_v34  ;;  %v2993_v38 = vpop.f32.mrb[17].mxu0 }
 0x3b3   :  { %v544_v41 = vpop.f32.mrb[18].mxu0 }
 0x3b4   :  { %v545_v42 = vadd.f32 %v544_v41, %v373_v36  ;;  %v2994_v44 = vpop.f32.mrb[19].mxu0  ;;  %v563_v2 = vsel %vm556_vm5, %v3928_v37, -inf }
 0x3b5   :  { %564 = vmax.xlane.f32.xlu0 %v563_v2 }
 0x3b6   :  { %v566_v17 = vsel %vm556_vm5, %v545_v42, -inf }
 0x3b9   :  { %567 = vmax.xlane.f32.xlu0 %v566_v17  ;;  %v549_v27 = vpop.f32.mrb[20].mxu0 }
 0x3ba   :  { %v3939_v45 = vadd.f32 %v549_v27, %v374_v15  ;;  %v2997_v49 = vpop.f32.mrb[21].mxu0 }
 0x3bb   :  { %v552_v50 = vpop.f32.mrb[22].mxu0 }
 0x3bc   :  { %v553_v52 = vadd.f32 %v552_v50, %v375_v43  ;;  %v2998_v53 = vpop.f32.mrb[23].mxu0  ;;  %v569_v54 = vsel %vm556_vm5, %v3939_v45, -inf }
 0x3bd   :  { %570 = vmax.xlane.f32.xlu1 %v569_v54 }
 0x3be   :  { %v572_v56 = vsel %vm556_vm5, %v553_v52, -inf }
 0x3bf   :  { %573 = vmax.xlane.f32.xlu0 %v572_v56 }
 0x3c1   :  { %v765_v57 = vpop.f32.mrb[24].mxu0 }
 0x3c2   :  { %v3944_v58 = vadd.f32 %v765_v57, %v370_v24  ;;  %v3025_v59 = vpop.f32.mrb[25].mxu0 }
 0x3c3   :  { %v768_v60 = vpop.f32.mrb[26].mxu0 }
 0x3c4   :  { %v769_v61 = vadd.f32 %v768_v60, %v371_v25  ;;  %v3026_v62 = vpop.f32.mrb[27].mxu0  ;;  %v788_v63 = vsel %vm556_vm5, %v3944_v58, -inf }
 0x3c5   :  { %789 = vmax.xlane.f32.xlu1 %v788_v63 }
 0x3c6   :  { %v791_v0 = vsel %vm556_vm5, %v769_v61, -inf }
 0x3c7   :  { %792 = vmax.xlane.f32.xlu0 %v791_v0 }
 0x3c9   :  { %v773_v4 = vpop.f32.mrb[28].mxu0 }
 0x3ca   :  { %v774_v5 = vadd.f32 %v773_v4, %v372_v34  ;;  %v3029_v9 = vpop.f32.mrb[29].mxu0 }
 0x3cb   :  { %v776_v40 = vpop.f32.mrb[30].mxu0 }
 0x3cc   :  { %v777_v6 = vadd.f32 %v776_v40, %v373_v36  ;;  %v3030_v8 = vpop.f32.mrb[31].mxu0  ;;  %v794_v48 = vsel %vm556_vm5, %v774_v5, -inf }
 0x3cd   :  { %795 = vmax.xlane.f32.xlu1 %v794_v48 }
 0x3ce   :  { %v797_v10 = vsel %vm556_vm5, %v777_v6, -inf }
 0x3cf   :  { %798 = vmax.xlane.f32.xlu0 %v797_v10 }
 0x3d1   :  { %v781_v12 = vpop.f32.mrb[32].mxu0 }
 0x3d2   :  { %v782_v13 = vadd.f32 %v781_v12, %v374_v15  ;;  %v3033_v18 = vpop.f32.mrb[33].mxu0 }
 0x3d3   :  { %v784_v11 = vpop.f32.mrb[34].mxu0 }
 0x3d4   :  { %v785_v19 = vadd.f32 %v784_v11, %v375_v43  ;;  %v3034_v20 = vpop.f32.mrb[35].mxu0  ;;  %v800_v21 = vsel %vm556_vm5, %v782_v13, -inf }
 0x3d5   :  { %801 = vmax.xlane.f32.xlu1 %v800_v21 }
 0x3d6   :  { %v803_v23 = vsel %vm556_vm5, %v785_v19, -inf }
 0x3d7   :  { %804 = vmax.xlane.f32.xlu0 %v803_v23 }
 0x3e6   :  { %630 = vrot.lane.b32.xlu1 %v3858_v1, %s3531_s24 }
 0x3ed   :  { %628 = vrot.lane.b32.xlu0 %v3852_v39, %s3531_s24 }
 0x43a   :  { %v559_v24 = vpop.xlane.xlu0 %558 }
 0x43b   :  { %v575_v22 = vsub.f32 %v3914_v26, %v559_v24 }
 0x43c   :  { %v562_v25 = vpop.xlane.xlu1 %561 }
 0x43d   :  { %v581_v28 = vmul.f32 1.442695, %v575_v22  ;;  %v576_v29 = vsub.f32 %v3916_v30, %v562_v25 }
 0x43f   :  { %3349 = vpow2.f32 %v581_v28  ;;  %v583_v31 = vmul.f32 1.442695, %v576_v29 }
 0x441   :  { %3351 = vpow2.f32 %v583_v31 }
 0x442   :  { %v565_v32 = vpop.xlane.xlu0 %564 }
 0x446   :  { %v568_v33 = vpop.xlane.xlu0 %567 }
 0x447   :  { %v578_v34 = vsub.f32 %v545_v42, %v568_v33 }
 0x449   :  { %v3959_v35 = vpop.eup %3349  ;;  %v587_v36 = vmul.f32 1.442695, %v578_v34 }
 0x44a   :  { %v593_v38 = vsel %vm556_vm5, %v3959_v35, 0.0  ;;  %v571_v15 = vpop.xlane.xlu1 %570 }
 0x44b   :  { %v3963_v41 = vpop.eup %3351  ;;  %3353 = vpow2.f32 %v587_v36  ;;  %594 = vadd.xlane.f32.xlu1 %v593_v38  ;;  %v579_v11 = vsub.f32 %v3939_v45, %v571_v15 }
 0x44c   :  { %v574_v26 = vpop.xlane.xlu0 %573  ;;  %v596_v30 = vsel %vm556_vm5, %v3963_v41, 0.0 }
 0x44d   :  { %v580_v44 = vsub.f32 %v553_v52, %v574_v26  ;;  %597 = vadd.xlane.f32.xlu0 %v596_v30  ;;  %v589_v20 = vmul.f32 1.442695, %v579_v11 }
 0x44f   :  { %v591_v2 = vmul.f32 1.442695, %v580_v44 }
 0x451   :  { %3355 = vpow2.f32 %v591_v2 }
 0x452   :  { %v790_v43 = vpop.xlane.xlu1 %789 }
 0x453   :  { %v806_v21 = vsub.f32 %v3944_v58, %v790_v43 }
 0x454   :  { %v793_v42 = vpop.xlane.xlu0 %792 }
 0x455   :  { %v3967_v17 = vpop.eup %3353  ;;  %v807_v27 = vsub.f32 %v769_v61, %v793_v42  ;;  %v812_v45 = vmul.f32 1.442695, %v806_v21 }
 0x456   :  { %v602_v49 = vsel %vm556_vm5, %v3967_v17, 0.0 }
 0x457   :  { %v814_v50 = vmul.f32 1.442695, %v807_v27  ;;  %603 = vadd.xlane.f32.xlu0 %v602_v49 }
 0x459   :  { %3357 = vpow2.f32 %v814_v50 }
 0x45a   :  { %v796_v53 = vpop.xlane.xlu1 %795 }
 0x45b   :  { %v3971_v54 = vpop.eup %3355  ;;  %v808_v56 = vsub.f32 %v774_v5, %v796_v53 }
 0x45c   :  { %857 = vrot.lane.b32.xlu1 %v3848_v51, %s3532_s1  ;;  %v799_v52 = vpop.xlane.xlu0 %798  ;;  %v608_v57 = vsel %vm556_vm5, %v3971_v54, 0.0 }
 0x45d   :  { %v816_v59 = vmul.f32 1.442695, %v808_v56  ;;  %v809_v60 = vsub.f32 %v777_v6, %v799_v52  ;;  %609 = vadd.xlane.f32.xlu0 %v608_v57  ;;  %v577_v6 = vsub.f32 %v3928_v37, %v565_v32 }
 0x45f   :  { %3359 = vpow2.f32 %v816_v59  ;;  %v818_v61 = vmul.f32 1.442695, %v809_v60  ;;  %v585_v18 = vmul.f32 1.442695, %v577_v6 }
 0x461   :  { %3361 = vpow2.f32 %v818_v61 }
 0x462   :  { %v802_v62 = vpop.xlane.xlu1 %801 }
 0x463   :  { %v3977_v63 = vpop.eup %3357  ;;  %v810_v0 = vsub.f32 %v782_v13, %v802_v62 }
 0x464   :  { %v805_v4 = vpop.xlane.xlu0 %804  ;;  %v827_v5 = vsel %vm556_vm5, %v3977_v63, 0.0 }
 0x465   :  { %v820_v9 = vmul.f32 1.442695, %v810_v0  ;;  %v811_v51 = vsub.f32 %v785_v19, %v805_v4  ;;  %828 = vadd.xlane.f32.xlu0 %v827_v5 }
 0x466   :  { %v631_v13 = vpop.permute.xlu1 %630 }
 0x467   :  { %3363 = vpow2.f32 %v820_v9  ;;  %v822_v40 = vmul.f32 1.442695, %v811_v51 }
 0x468   :  { %v629_v8 = vpop.permute.xlu0 %628 }
 0x469   :  { %v3981_v48 = vpop.eup %3359  ;;  %3365 = vpow2.f32 %v822_v40  ;;  %3002 = vmatpush3.bf16.msra.mxu1 %v629_v8 }
 0x46a   :  { %v830_v10 = vsel %vm556_vm5, %v3981_v48, 0.0  ;;  %3003 = vmatprep.subr.bf16.mxu1 %v3525_v3  ;;  %3367 = vpow2.f32 %v585_v18 }
 0x46b   :  { %v3987_v12 = vpop.eup %3361  ;;  %831 = vadd.xlane.f32.xlu0 %v830_v10  ;;  %3369 = vpow2.f32 %v589_v20 }
 0x46c   :  { %v833_v19 = vsel %vm556_vm5, %v3987_v12, 0.0  ;;  %3371 = vpow2.f32 %v812_v45 }
 0x46d   :  { %3004 = vmatpush3.bf16.msra.mxu1 %v631_v13 }
 0x46e   :  { %3035 = vmatprep.subr.bf16.mxu1 %v3525_v3 }
 0x46f   :  { %834 = vadd.xlane.f32.xlu0 %v833_v19 }
 0x471   :  { %v3993_v37 = vpop.eup %3363 }
 0x472   :  { %v836_v23 = vsel %vm556_vm5, %v3993_v37, 0.0 }
 0x473   :  { %v3998_v24 = vpop.eup %3365  ;;  %837 = vadd.xlane.f32.xlu0 %v836_v23 }
 0x474   :  { %v839_v22 = vsel %vm556_vm5, %v3998_v24, 0.0  ;;  %v3368_v25 = vpop.eup %3367 }
 0x475   :  { %v599_v28 = vsel %vm556_vm5, %v3368_v25, 0.0  ;;  %v3370_v29 = vpop.eup %3369 }
 0x476   :  { %v605_v58 = vsel %vm556_vm5, %v3370_v29, 0.0  ;;  %v3372_v31 = vpop.eup %3371 }
 0x477   :  { %840 = vadd.xlane.f32.xlu0 %v839_v22  ;;  %v824_v32 = vsel %vm556_vm5, %v3372_v31, 0.0 }
 0x480   :  { %600 = vadd.xlane.f32.xlu1 %v599_v28 }
 0x484   :  { %606 = vadd.xlane.f32.xlu1 %v605_v58 }
 0x488   :  { %825 = vadd.xlane.f32.xlu1 %v824_v32 }
 0x48d   :  { %859 = vrot.lane.b32.xlu0 %v3852_v39, %s3532_s1 }
 0x499   :  { %861 = vrot.lane.b32.xlu1 %v3858_v1, %s3532_s1 }
 0x4d8   :  { %v595_v33 = vpop.xlane.xlu1 %594 }
 0x4d9   :  { %3373 = vrcp.f32 %v595_v33 }
 0x4da   :  { %v598_v34 = vpop.xlane.xlu0 %597 }
 0x4db   :  { %3375 = vrcp.f32 %v598_v34 }
 0x4dc   :  { %v858_v2 = vpop.permute.xlu1 %857 }
 0x4e3   :  { %v3374_v36 = vpop.eup %3373 }
 0x4e4   :  { %v617_v26 = vmul.f32 %v3374_v36, %v3959_v35  ;;  %v604_v39 = vpop.xlane.xlu0 %603 }
 0x4e5   :  { %v3376_v38 = vpop.eup %3375  ;;  %3377 = vrcp.f32 %v604_v39 }
 0x4e6   :  { %v618_v30 = vmul.f32 %v3376_v38, %v3963_v41 }
 0x4e8   :  { %v623_v44 = vpack.c.bf16 %v618_v30, %v617_v26 }
 0x4ea   :  { %3006 = vmatmul.mubr.msk.bf16.vlgmr.msra.gmra.mrb[12].mxu1 %vm556_vm5, %v623_v44  ;;  %v610_v1 = vpop.xlane.xlu0 %609 }
 0x4eb   :  { %3036 = vmatpush3.bf16.msra.mxu1 %v858_v2  ;;  %3009 = vmatprep.mubr.msk.bf16.mxu1 %vm3526_vm1, %v3525_v3 }
 0x4ec   :  { %3037 = vmatprep.subr.bf16.mxu1 %v3525_v3 }
 0x4ef   :  { %v3378_v56 = vpop.eup %3377 }
 0x4f0   :  { %v620_v60 = vmul.f32 %v3378_v56, %v3967_v17 }
 0x4f2   :  { %v829_v15 = vpop.xlane.xlu0 %828 }
 0x4f8   :  { %v832_v42 = vpop.xlane.xlu0 %831 }
 0x4fc   :  { %v835_v27 = vpop.xlane.xlu0 %834 }
 0x500   :  { %v838_v43 = vpop.xlane.xlu0 %837 }
 0x504   :  { %v841_v49 = vpop.xlane.xlu0 %840 }
 0x508   :  { %v860_v35 = vpop.permute.xlu0 %859 }
 0x509   :  { %3038 = vmatpush3.bf16.msra.mxu1 %v860_v35 }
 0x50a   :  { %3039 = vmatprep.subr.bf16.mxu1 %v3525_v3 }
 0x50d   :  { %v601_v41 = vpop.xlane.xlu1 %600 }
 0x50e   :  { %3379 = vrcp.f32 %v601_v41 }
 0x511   :  { %v607_v50 = vpop.xlane.xlu1 %606 }
 0x512   :  { %3381 = vrcp.f32 %v607_v50 }
 0x513   :  { %3383 = vrcp.f32 %v610_v1 }
 0x515   :  { %v826_v53 = vpop.xlane.xlu1 %825 }
 0x516   :  { %3385 = vrcp.f32 %v826_v53 }
 0x517   :  { %3387 = vrcp.f32 %v829_v15 }
 0x518   :  { %v3380_v52 = vpop.eup %3379  ;;  %3389 = vrcp.f32 %v835_v27 }
 0x519   :  { %v862_v57 = vpop.permute.xlu1 %861  ;;  %v619_v59 = vmul.f32 %v3380_v52, %v3368_v25  ;;  %3391 = vrcp.f32 %v832_v42 }
 0x51a   :  { %3040 = vmatpush3.bf16.msra.mxu1 %v862_v57  ;;  %3393 = vrcp.f32 %v841_v49 }
 0x51b   :  { %v624_v61 = vpack.c.bf16 %v620_v60, %v619_v59  ;;  %3269 = vmatprep.subr.bf16.mxu1 %v3525_v3  ;;  %3395 = vrcp.f32 %v838_v43 }
 0x51c   :  { %v3382_v62 = vpop.eup %3381 }
 0x51d   :  { %3010 = vmatmul.mubr.msk.bf16.gmra.mrb[16].mxu1 %vm556_vm5, %v624_v61  ;;  %v3384_v0 = vpop.eup %3383  ;;  %v621_v4 = vmul.f32 %v3382_v62, %v3370_v29 }
 0x51e   :  { %3013 = vmatprep.mubr.msk.bf16.mxu1 %vm3526_vm1, %v3525_v3  ;;  %v622_v5 = vmul.f32 %v3384_v0, %v3971_v54 }
 0x520   :  { %v625_v9 = vpack.c.bf16 %v622_v5, %v621_v4  ;;  %v3386_v51 = vpop.eup %3385 }
 0x521   :  { %v3388_v17 = vpop.eup %3387  ;;  %v848_v40 = vmul.f32 %v3386_v51, %v3372_v31 }
 0x522   :  { %v849_v8 = vmul.f32 %v3388_v17, %v3977_v63  ;;  %v3390_v10 = vpop.eup %3389 }
 0x523   :  { %v3392_v54 = vpop.eup %3391  ;;  %v851_v13 = vmul.f32 %v3390_v10, %v3987_v12  ;;  %v3320_v12 = vld [vmem:[%s4614_s11 + $0x8] sm:$0xff]   ;;  %v2750_v10 = vld [vmem:[%s4615_s12] ss:$0 sm:$0xff] }
 0x524   :  { %v854_v6 = vpack.c.bf16 %v849_v8, %v848_v40  ;;  %v850_v18 = vmul.f32 %v3392_v54, %v3981_v48  ;;  %v3394_v19 = vpop.eup %3393  ;;  %v3319_v48 = vld [vmem:[%s4614_s11] sm:$0xff]  }
 0x525   :  { %3014 = vmatmul.mubr.msk.bf16.gmra.mrb[20].mxu1 %vm556_vm5, %v625_v9  ;;  %v3396_v20 = vpop.eup %3395  ;;  %v853_v63 = vmul.f32 %v3394_v19, %v3998_v24  ;;  %3054 = vmatpush3.bf16.msra.mxu0 %v3319_v48 }
 0x526   :  { %3041 = vmatprep.mubr.msk.bf16.mxu1 %vm3526_vm1, %v3525_v3  ;;  %v855_v11 = vpack.c.bf16 %v851_v13, %v850_v18  ;;  %v852_v21 = vmul.f32 %v3396_v20, %v3993_v37  ;;  %3055 = vmatprep.subr.bf16.mxu0 %v3525_v3 }
 0x528   :  { %v856_v23 = vpack.c.bf16 %v853_v63, %v852_v21 }
 0x529   :  { %3056 = vmatpush3.bf16.msra.mxu0 %v3320_v12 }
 0x52a   :  { %3085 = vmatprep.subr.bf16.mxu0 %v3525_v3 }
 0x52d   :  { %3042 = vmatmul.mubr.msk.bf16.vlgmr.msra.gmra.mrb[24].mxu1 %vm556_vm5, %v854_v6 }
 0x52e   :  { %3045 = vmatprep.mubr.msk.bf16.mxu1 %vm3526_vm1, %v3525_v3  ;;  %3271 = vmatpush3.bf16.msra.mxu1 %v3319_v48 }
 0x52f   :  { %3270 = vmatprep.subr.bf16.mxu1 %v3525_v3 }
 0x532   :  { %3272 = vmatpush3.bf16.msra.mxu1 %v3320_v12 }
 0x533   :  { %3069 = vmatprep.subr.bf16.mxu1 %v3525_v3 }
 0x535   :  { %3046 = vmatmul.mubr.msk.bf16.gmra.mrb[28].mxu1 %vm556_vm5, %v855_v11 }
 0x536   :  { %3049 = vmatprep.mubr.msk.bf16.mxu1 %vm3526_vm1, %v3525_v3 }
 0x53d   :  { %3050 = vmatmul.mubr.msk.bf16.gmra.mrb[32].mxu1 %vm556_vm5, %v856_v23 }
 0x53e   :  { %3065 = vmatprep.mubr.msk.bf16.mxu1 %vm3526_vm1, %v3525_v3 }
 0x5bd   :  { %v678_v37 = vpop.f32.mrb[12].mxu1 }
 0x5be   :  { %v3007_v24 = vpop.f32.mrb[13].mxu1 }
 0x5bf   :  { %v681_v45 = vpop.f32.mrb[14].mxu1 }
 0x5c0   :  { %v3008_v22 = vpop.f32.mrb[15].mxu1 }
 0x5f0   :  { %v686_v25 = vpop.f32.mrb[16].mxu1 }
 0x5f1   :  { %v3011_v28 = vpop.f32.mrb[17].mxu1 }
 0x5f2   :  { %v689_v29 = vpop.f32.mrb[18].mxu1 }
 0x5f3   :  { %v3012_v58 = vpop.f32.mrb[19].mxu1 }
 0x5f8   :  { %v694_v31 = vpop.f32.mrb[20].mxu1 }
 0x5f9   :  { %v3015_v32 = vpop.f32.mrb[21].mxu1 }
 0x5fa   :  { %v697_v33 = vpop.f32.mrb[22].mxu1 }
 0x5fb   :  { %v3016_v34 = vpop.f32.mrb[23].mxu1 }
 0x600   :  { %v909_v36 = vpop.f32.mrb[24].mxu1 }
 0x601   :  { %v3043_v38 = vpop.f32.mrb[25].mxu1 }
 0x602   :  { %v912_v26 = vpop.f32.mrb[26].mxu1 }
 0x603   :  { %v3285_v30 = vpack.i.bf16 %v912_v26, %v909_v36  ;;  %v3044_v44 = vpop.f32.mrb[27].mxu1 }
 0x605   :  { %3286 = vrot.lane.b32.xlu1 %v3285_v30, %s3533_s25 }
 0x608   :  { %v917_v2 = vpop.f32.mrb[28].mxu1 }
 0x609   :  { %v3047_v39 = vpop.f32.mrb[29].mxu1 }
 0x60a   :  { %v920_v1 = vpop.f32.mrb[30].mxu1 }
 0x60b   :  { %v3290_v15 = vpack.i.bf16 %v920_v1, %v917_v2  ;;  %v3048_v42 = vpop.f32.mrb[31].mxu1 }
 0x60d   :  { %3291 = vrot.lane.b32.xlu1 %v3290_v15, %s3533_s25 }
 0x610   :  { %v925_v27 = vpop.f32.mrb[32].mxu1 }
 0x611   :  { %v3051_v43 = vpop.f32.mrb[33].mxu1 }
 0x612   :  { %v928_v49 = vpop.f32.mrb[34].mxu1 }
 0x613   :  { %v3295_v35 = vpack.i.bf16 %v928_v49, %v925_v27  ;;  %v3052_v41 = vpop.f32.mrb[35].mxu1 }
 0x615   :  { %3296 = vrot.lane.b32.xlu1 %v3295_v35, %s3533_s25 }
 0x677   :  { %v3287_v50 = vpop.permute.xlu1 %3286 }
 0x678   :  { %v3289_v53 = vunpack.i.h.bf16 %v3287_v50  ;;  %v3288_v56 = vunpack.i.l.bf16 %v3287_v50 }
 0x67a   :  { %v957_v52 = vsel %vm480_vm4, %v681_v45, %v3289_v53  ;;  %v956_v57 = vsel %vm480_vm4, %v678_v37, %v3288_v56 }
 0x67b   :  { %v962_v59 = vpack.c.bf16 %v957_v52, %v956_v57 }
 0x67d   :  { %3058 = vmatmul.mubr.msk.bf16.vlgmr.msra.gmra.mrb[36].mxu0 %vm77_vm0, %v962_v59 }
 0x67e   :  { %3061 = vmatprep.mubr.msk.bf16.mxu0 %vm3526_vm1, %v3525_v3 }
 0x67f   :  { %v3292_v60 = vpop.permute.xlu1 %3291 }
 0x680   :  { %v3294_v61 = vunpack.i.h.bf16 %v3292_v60  ;;  %v3293_v62 = vunpack.i.l.bf16 %v3292_v60 }
 0x682   :  { %v959_v0 = vsel %vm480_vm4, %v689_v29, %v3294_v61  ;;  %v958_v4 = vsel %vm480_vm4, %v686_v25, %v3293_v62 }
 0x683   :  { %v963_v5 = vpack.c.bf16 %v959_v0, %v958_v4 }
 0x685   :  { %3062 = vmatmul.mubr.msk.bf16.gmra.mrb[40].mxu0 %vm77_vm0, %v963_v5 }
 0x686   :  { %3093 = vmatprep.mubr.msk.bf16.mxu0 %vm3526_vm1, %v3525_v3 }
 0x687   :  { %v3297_v9 = vpop.permute.xlu1 %3296 }
 0x688   :  { %v3299_v51 = vunpack.i.h.bf16 %v3297_v9  ;;  %v3298_v17 = vunpack.i.l.bf16 %v3297_v9 }
 0x68a   :  { %v961_v40 = vsel %vm480_vm4, %v697_v33, %v3299_v51  ;;  %v960_v8 = vsel %vm480_vm4, %v694_v31, %v3298_v17 }
 0x68b   :  { %v964_v6 = vpack.c.bf16 %v961_v40, %v960_v8  ;;  %v3321_v8 = vld [vmem:[%s4616_s15] sm:$0xff]  }
 0x68d   :  { %3066 = vmatmul.mubr.msk.bf16.vlgmr.msra.gmra.mrb[36].mxu1 %vm77_vm0, %v964_v6  ;;  %v3322_v6 = vld [vmem:[%s4616_s15 + $0x8] sm:$0xff]  }
 0x68e   :  { %3073 = vmatprep.mubr.msk.bf16.mxu1 %vm3526_vm1, %v3525_v3  ;;  %3070 = vmatpush3.bf16.msra.mxu1 %v3321_v8 }
 0x68f   :  { %3071 = vmatprep.subr.bf16.mxu1 %v3525_v3 }
 0x692   :  { %3072 = vmatpush3.bf16.msra.mxu1 %v3322_v6 }
 0x693   :  { %3105 = vmatprep.subr.bf16.mxu1 %v3525_v3 }
 0x750   :  { %v1031_v54 = vpop.f32.mrb[36].mxu0 }
 0x751   :  { %v1032_v13 = vadd.f32 %v2750_v10, %v1031_v54  ;;  %v3059_v18 = vpop.f32.mrb[37].mxu0 }
 0x752   :  { %v1034_v11 = vpop.f32.mrb[38].mxu0 }
 0x753   :  { %v1035_v19 = vadd.f32 %v2750_v10, %v1034_v11  ;;  %v3060_v20 = vpop.f32.mrb[39].mxu0  ;;  %v1054_v63 = vadd.f32 %v1032_v13, %v3812_v7 }
 0x755   :  { %v1062_v21 = vsel %vm77_vm0, %v1054_v63, 0.0  ;;  %v1055_v23 = vadd.f32 %v1035_v19, %v3814_v47 }
 0x756   :  { %1063 = vadd.xlane.f32.xlu1 %v1062_v21 }
 0x757   :  { %v1065_v48 = vsel %vm77_vm0, %v1055_v23, 0.0 }
 0x758   :  { %1066 = vadd.xlane.f32.xlu0 %v1065_v48  ;;  %v1039_v12 = vpop.f32.mrb[40].mxu0 }
 0x759   :  { %v1040_v37 = vadd.f32 %v2750_v10, %v1039_v12  ;;  %v3063_v24 = vpop.f32.mrb[41].mxu0 }
 0x75a   :  { %v1042_v45 = vpop.f32.mrb[42].mxu0  ;;  %v2756_v24 = vld [vmem:[%s4617_s13] ss:$0 sm:$0xff] }
 0x75b   :  { %v1043_v22 = vadd.f32 %v2750_v10, %v1042_v45  ;;  %v3064_v25 = vpop.f32.mrb[43].mxu0  ;;  %v1056_v28 = vadd.f32 %v1040_v37, %v3824_v16 }
 0x75d   :  { %v1068_v29 = vsel %vm77_vm0, %v1056_v28, 0.0  ;;  %v1057_v7 = vadd.f32 %v1043_v22, %v3822_v14 }
 0x75e   :  { %1069 = vadd.xlane.f32.xlu0 %v1068_v29 }
 0x75f   :  { %v1071_v58 = vsel %vm77_vm0, %v1057_v7, 0.0 }
 0x760   :  { %1072 = vadd.xlane.f32.xlu1 %v1071_v58  ;;  %v1047_v47 = vpop.f32.mrb[36].mxu1 }
 0x761   :  { %v1048_v31 = vadd.f32 %v2750_v10, %v1047_v47  ;;  %v3067_v32 = vpop.f32.mrb[37].mxu1 }
 0x762   :  { %v1050_v33 = vpop.f32.mrb[38].mxu1  ;;  %v2757_v32 = vld [vmem:[%s4618_s14] ss:$0 sm:$0xff] }
 0x763   :  { %v1051_v34 = vadd.f32 %v2750_v10, %v1050_v33  ;;  %v3068_v36 = vpop.f32.mrb[39].mxu1  ;;  %v1058_v38 = vadd.f32 %v1048_v31, %v3836_v46 }
 0x765   :  { %v1074_v26 = vsel %vm77_vm0, %v1058_v38, 0.0  ;;  %v1059_v16 = vadd.f32 %v1051_v34, %v3838_v55 }
 0x766   :  { %1075 = vadd.xlane.f32.xlu0 %v1074_v26 }
 0x767   :  { %v1077_v30 = vsel %vm77_vm0, %v1059_v16, 0.0 }
 0x768   :  { %1078 = vadd.xlane.f32.xlu1 %v1077_v30 }
 0x7e3   :  { %v1064_v14 = vpop.xlane.xlu1 %1063 }
 0x7e4   :  { %v1080_v44 = vmul.f32 0.03125, %v1064_v14 }
 0x7e5   :  { %v1067_v2 = vpop.xlane.xlu0 %1066 }
 0x7e6   :  { %v1086_v39 = vsub.f32 %v1054_v63, %v1080_v44  ;;  %v1081_v1 = vmul.f32 0.03125, %v1067_v2 }
 0x7e8   :  { %v4082_v15 = vsub.f32 %v1055_v23, %v1081_v1  ;;  %v1092_v42 = vmul.f32 %v1086_v39, %v1086_v39 }
 0x7ea   :  { %v1098_v27 = vsel %vm77_vm0, %v1092_v42, 0.0  ;;  %v1093_v46 = vmul.f32 %v4082_v15, %v4082_v15 }
 0x7eb   :  { %v1070_v43 = vpop.xlane.xlu0 %1069  ;;  %1099 = vadd.xlane.f32.xlu0 %v1098_v27 }
 0x7ec   :  { %v1082_v55 = vmul.f32 0.03125, %v1070_v43  ;;  %v1101_v49 = vsel %vm77_vm0, %v1093_v46, 0.0 }
 0x7ed   :  { %v1073_v35 = vpop.xlane.xlu1 %1072  ;;  %1102 = vadd.xlane.f32.xlu1 %v1101_v49 }
 0x7ee   :  { %v4088_v41 = vsub.f32 %v1056_v28, %v1082_v55  ;;  %v1083_v50 = vmul.f32 0.03125, %v1073_v35 }
 0x7f0   :  { %v4090_v53 = vsub.f32 %v1057_v7, %v1083_v50  ;;  %v1094_v56 = vmul.f32 %v4088_v41, %v4088_v41 }
 0x7f2   :  { %v1104_v52 = vsel %vm77_vm0, %v1094_v56, 0.0  ;;  %v1095_v57 = vmul.f32 %v4090_v53, %v4090_v53  ;;  %v3323_v56 = vld [vmem:[%s4619_s17] sm:$0xff]  }
 0x7f3   :  { %1105 = vadd.xlane.f32.xlu0 %v1104_v52  ;;  %v1076_v59 = vpop.xlane.xlu0 %1075  ;;  %3086 = vmatpush3.bf16.msra.mxu0 %v3323_v56  ;;  %v3324_v52 = vld [vmem:[%s4619_s17 + $0x8] sm:$0xff]  }
 0x7f4   :  { %v1084_v60 = vmul.f32 0.03125, %v1076_v59  ;;  %v1107_v61 = vsel %vm77_vm0, %v1095_v57, 0.0  ;;  %3087 = vmatprep.subr.bf16.mxu0 %v3525_v3  ;;  %v3325_v57 = vld [vmem:[%s4619_s17 + $0x10] sm:$0xff]   ;;  %v3326_v59 = vld [vmem:[%s4619_s17 + $0x18] sm:$0xff]  }
 0x7f5   :  { %1108 = vadd.xlane.f32.xlu1 %v1107_v61  ;;  %v1079_v62 = vpop.xlane.xlu1 %1078 }
 0x7f6   :  { %v4098_v0 = vsub.f32 %v1058_v38, %v1084_v60  ;;  %v1085_v4 = vmul.f32 0.03125, %v1079_v62  ;;  %v2758_v60 = vld [vmem:[%s4620_s16] ss:$0 sm:$0xff] }
 0x7f7   :  { %3088 = vmatpush3.bf16.msra.mxu0 %v3324_v52 }
 0x7f8   :  { %v4100_v5 = vsub.f32 %v1059_v16, %v1085_v4  ;;  %v1096_v9 = vmul.f32 %v4098_v0, %v4098_v0  ;;  %3089 = vmatprep.subr.bf16.mxu0 %v3525_v3 }
 0x7fa   :  { %v1110_v51 = vsel %vm77_vm0, %v1096_v9, 0.0  ;;  %v1097_v17 = vmul.f32 %v4100_v5, %v4100_v5 }
 0x7fb   :  { %1111 = vadd.xlane.f32.xlu0 %v1110_v51  ;;  %3090 = vmatpush3.bf16.msra.mxu0 %v3325_v57 }
 0x7fc   :  { %v1113_v40 = vsel %vm77_vm0, %v1097_v17, 0.0  ;;  %3091 = vmatprep.subr.bf16.mxu0 %v3525_v3 }
 0x7fd   :  { %1114 = vadd.xlane.f32.xlu1 %v1113_v40 }
 0x7ff   :  { %3092 = vmatpush3.bf16.msra.mxu0 %v3326_v59 }
 0x800   :  { %3121 = vmatprep.subr.bf16.mxu0 %v3525_v3 }
 0x878   :  { %v1100_v10 = vpop.xlane.xlu0 %1099 }
 0x879   :  { %v1116_v54 = vmul.f32 0.03125, %v1100_v10 }
 0x87a   :  { %v1103_v13 = vpop.xlane.xlu1 %1102 }
 0x87b   :  { %v1122_v18 = vadd.f32 1e-12, %v1116_v54  ;;  %v1117_v11 = vmul.f32 0.03125, %v1103_v13 }
 0x87d   :  { %3397 = vrsqrt.f32 %v1122_v18  ;;  %v1123_v19 = vadd.f32 1e-12, %v1117_v11 }
 0x87f   :  { %3399 = vrsqrt.f32 %v1123_v19 }
 0x880   :  { %v1106_v20 = vpop.xlane.xlu0 %1105 }
 0x881   :  { %v1118_v63 = vmul.f32 0.03125, %v1106_v20 }
 0x882   :  { %v1109_v21 = vpop.xlane.xlu1 %1108 }
 0x883   :  { %v1124_v23 = vadd.f32 1e-12, %v1118_v63  ;;  %v1119_v48 = vmul.f32 0.03125, %v1109_v21 }
 0x885   :  { %3401 = vrsqrt.f32 %v1124_v23  ;;  %v1125_v12 = vadd.f32 1e-12, %v1119_v48 }
 0x887   :  { %v3398_v37 = vpop.eup %3397  ;;  %3403 = vrsqrt.f32 %v1125_v12 }
 0x888   :  { %v1134_v45 = vmul.f32 %v3398_v37, %v1086_v39  ;;  %v1112_v22 = vpop.xlane.xlu0 %1111 }
 0x889   :  { %v3400_v25 = vpop.eup %3399  ;;  %v1120_v28 = vmul.f32 0.03125, %v1112_v22 }
 0x88a   :  { %v1146_v29 = vmul.f32 %v2756_v24, %v1134_v45  ;;  %v1135_v7 = vmul.f32 %v3400_v25, %v4082_v15  ;;  %v1115_v58 = vpop.xlane.xlu1 %1114 }
 0x88b   :  { %v1126_v47 = vadd.f32 1e-12, %v1120_v28  ;;  %v1121_v31 = vmul.f32 0.03125, %v1115_v58 }
 0x88c   :  { %v1147_v33 = vmul.f32 %v2756_v24, %v1135_v7  ;;  %v4123_v36 = vadd.f32 %v2757_v32, %v1146_v29 }
 0x88d   :  { %3405 = vrsqrt.f32 %v1126_v47  ;;  %v1127_v34 = vadd.f32 1e-12, %v1121_v31 }
 0x88e   :  { %v4125_v38 = vadd.f32 %v2757_v32, %v1147_v33 }
 0x88f   :  { %v3402_v26 = vpop.eup %3401  ;;  %3407 = vrsqrt.f32 %v1127_v34 }
 0x890   :  { %v1136_v16 = vmul.f32 %v3402_v26, %v4088_v41  ;;  %v1164_v30 = vpack.c.bf16 %v4125_v38, %v4123_v36 }
 0x891   :  { %v3404_v14 = vpop.eup %3403 }
 0x892   :  { %v1137_v44 = vmul.f32 %v3404_v14, %v4090_v53  ;;  %3074 = vmatmul.mubr.msk.bf16.vlgmr.msra.gmra.mrb[40].mxu1 %vm77_vm0, %v1164_v30  ;;  %v1148_v2 = vmul.f32 %v2756_v24, %v1136_v16 }
 0x893   :  { %3077 = vmatprep.mubr.msk.bf16.mxu1 %vm3526_vm1, %v3525_v3 }
 0x894   :  { %v1149_v39 = vmul.f32 %v2756_v24, %v1137_v44  ;;  %v4134_v1 = vadd.f32 %v2757_v32, %v1148_v2 }
 0x896   :  { %v4136_v15 = vadd.f32 %v2757_v32, %v1149_v39 }
 0x897   :  { %v3406_v42 = vpop.eup %3405 }
 0x898   :  { %v1138_v27 = vmul.f32 %v3406_v42, %v4098_v0  ;;  %v1165_v46 = vpack.c.bf16 %v4136_v15, %v4134_v1 }
 0x899   :  { %v3408_v43 = vpop.eup %3407 }
 0x89a   :  { %v1139_v55 = vmul.f32 %v3408_v43, %v4100_v5  ;;  %3078 = vmatmul.mubr.msk.bf16.gmra.mrb[44].mxu1 %vm77_vm0, %v1165_v46  ;;  %v1150_v49 = vmul.f32 %v2756_v24, %v1138_v27 }
 0x89b   :  { %3081 = vmatprep.mubr.msk.bf16.mxu1 %vm3526_vm1, %v3525_v3 }
 0x89c   :  { %v1151_v35 = vmul.f32 %v2756_v24, %v1139_v55  ;;  %v4145_v41 = vadd.f32 %v2757_v32, %v1150_v49 }
 0x89e   :  { %v4147_v50 = vadd.f32 %v2757_v32, %v1151_v35 }
 0x8a0   :  { %v1166_v53 = vpack.c.bf16 %v4147_v50, %v4145_v41 }
 0x8a2   :  { %3082 = vmatmul.mubr.msk.bf16.gmra.mrb[48].mxu1 %vm77_vm0, %v1166_v53  ;;  %v2764_v53 = vld [vmem:[%s4621_s18] ss:$0 sm:$0xff] }
 0x8a3   :  { %3109 = vmatprep.mubr.msk.bf16.mxu1 %vm3526_vm1, %v3525_v3 }
 0x965   :  { %v1233_v61 = vpop.f32.mrb[40].mxu1 }
 0x966   :  { %v1234_v62 = vadd.f32 %v2758_v60, %v1233_v61  ;;  %v3075_v0 = vpop.f32.mrb[41].mxu1 }
 0x967   :  { %v1236_v4 = vpop.f32.mrb[42].mxu1 }
 0x968   :  { %v1262_v5 = vmul.f32 0.70710677, %v1234_v62  ;;  %v1237_v9 = vadd.f32 %v2758_v60, %v1236_v4  ;;  %v3076_v51 = vpop.f32.mrb[43].mxu1  ;;  %v1256_v12 = vmul.f32 0.5, %v1234_v62 }
 0x96a   :  { %3409 = verf.f32 %v1262_v5  ;;  %v1263_v17 = vmul.f32 0.70710677, %v1237_v9  ;;  %v1257_v37 = vmul.f32 0.5, %v1237_v9 }
 0x96c   :  { %3411 = verf.f32 %v1263_v17 }
 0x96d   :  { %v1241_v40 = vpop.f32.mrb[44].mxu1 }
 0x96e   :  { %v1242_v8 = vadd.f32 %v2758_v60, %v1241_v40  ;;  %v3079_v6 = vpop.f32.mrb[45].mxu1 }
 0x96f   :  { %v1244_v10 = vpop.f32.mrb[46].mxu1 }
 0x970   :  { %v1264_v54 = vmul.f32 0.70710677, %v1242_v8  ;;  %v1245_v13 = vadd.f32 %v2758_v60, %v1244_v10  ;;  %v3080_v18 = vpop.f32.mrb[47].mxu1  ;;  %v1258_v34 = vmul.f32 0.5, %v1242_v8 }
 0x972   :  { %3413 = verf.f32 %v1264_v54  ;;  %v1265_v11 = vmul.f32 0.70710677, %v1245_v13  ;;  %v1259_v26 = vmul.f32 0.5, %v1245_v13 }
 0x974   :  { %v3410_v19 = vpop.eup %3409  ;;  %3415 = verf.f32 %v1265_v11 }
 0x975   :  { %v1274_v20 = vadd.f32 1.0, %v3410_v19  ;;  %v1249_v63 = vpop.f32.mrb[48].mxu1 }
 0x976   :  { %v3412_v21 = vpop.eup %3411  ;;  %v1250_v23 = vadd.f32 %v2758_v60, %v1249_v63  ;;  %v3083_v48 = vpop.f32.mrb[49].mxu1 }
 0x977   :  { %v1275_v24 = vadd.f32 1.0, %v3412_v21  ;;  %v1252_v45 = vpop.f32.mrb[50].mxu1  ;;  %v1280_v29 = vmul.f32 %v1274_v20, %v1256_v12 }
 0x978   :  { %v1266_v22 = vmul.f32 0.70710677, %v1250_v23  ;;  %v1253_v25 = vadd.f32 %v2758_v60, %v1252_v45  ;;  %v3084_v28 = vpop.f32.mrb[51].mxu1  ;;  %v1260_v27 = vmul.f32 0.5, %v1250_v23 }
 0x979   :  { %v1281_v7 = vmul.f32 %v1275_v24, %v1257_v37 }
 0x97a   :  { %3417 = verf.f32 %v1266_v22  ;;  %v1267_v58 = vmul.f32 0.70710677, %v1253_v25  ;;  %v1261_v46 = vmul.f32 0.5, %v1253_v25 }
 0x97b   :  { %v1286_v47 = vpack.c.bf16 %v1281_v7, %v1280_v29 }
 0x97c   :  { %v3414_v31 = vpop.eup %3413  ;;  %3419 = verf.f32 %v1267_v58 }
 0x97d   :  { %v1276_v32 = vadd.f32 1.0, %v3414_v31  ;;  %3094 = vmatmul.mubr.msk.bf16.vlgmr.msra.gmra.mrb[44].mxu0 %vm1328_vm6, %v1286_v47 }
 0x97e   :  { %v3416_v33 = vpop.eup %3415  ;;  %3097 = vmatprep.mubr.msk.bf16.mxu0 %vm3526_vm1, %v3525_v3 }
 0x97f   :  { %v1277_v16 = vadd.f32 1.0, %v3416_v33  ;;  %v1282_v30 = vmul.f32 %v1276_v32, %v1258_v34 }
 0x981   :  { %v1283_v14 = vmul.f32 %v1277_v16, %v1259_v26 }
 0x983   :  { %v1287_v44 = vpack.c.bf16 %v1283_v14, %v1282_v30 }
 0x984   :  { %v3418_v2 = vpop.eup %3417 }
 0x985   :  { %v1278_v39 = vadd.f32 1.0, %v3418_v2  ;;  %3098 = vmatmul.mubr.msk.bf16.gmra.mrb[48].mxu0 %vm1328_vm6, %v1287_v44 }
 0x986   :  { %v3420_v42 = vpop.eup %3419  ;;  %3101 = vmatprep.mubr.msk.bf16.mxu0 %vm3526_vm1, %v3525_v3 }
 0x987   :  { %v1279_v43 = vadd.f32 1.0, %v3420_v42  ;;  %v1284_v55 = vmul.f32 %v1278_v39, %v1260_v27 }
 0x989   :  { %v1285_v49 = vmul.f32 %v1279_v43, %v1261_v46 }
 0x98b   :  { %v1288_v35 = vpack.c.bf16 %v1285_v49, %v1284_v55  ;;  %v3327_v49 = vld [vmem:[%s4641_s27 + $0x10] sm:$0xff]  }
 0x98c   :  { %3106 = vmatpush3.bf16.msra.mxu1 %v3327_v49 }
 0x98d   :  { %3102 = vmatmul.mubr.msk.bf16.gmra.mrb[52].mxu0 %vm1328_vm6, %v1288_v35  ;;  %3107 = vmatprep.subr.bf16.mxu1 %v3525_v3  ;;  %v3328_v35 = vld [vmem:[%s4641_s27 + $0x18] sm:$0xff]  }
 0x98e   :  { %3127 = vmatprep.mubr.msk.bf16.mxu0 %vm3526_vm1, %v3525_v3 }
 0x990   :  { %3108 = vmatpush3.bf16.msra.mxu1 %v3328_v35 }
 0x991   :  { %3139 = vmatprep.subr.bf16.mxu1 %v3525_v3 }
 0xa50   :  { %v1372_v56 = vpop.f32.mrb[44].mxu0 }
 0xa51   :  { %v1373_v52 = vadd.f32 %v2764_v53, %v1372_v56  ;;  %v3095_v57 = vpop.f32.mrb[45].mxu0 }
 0xa52   :  { %v1375_v59 = vpop.f32.mrb[46].mxu0 }
 0xa53   :  { %v1376_v60 = vadd.f32 %v2764_v53, %v1375_v59  ;;  %v3096_v61 = vpop.f32.mrb[47].mxu0  ;;  %v1395_v62 = vadd.f32 %v1373_v52, %v4123_v36 }
 0xa55   :  { %v1403_v0 = vsel %vm77_vm0, %v1395_v62, 0.0  ;;  %v1396_v4 = vadd.f32 %v1376_v60, %v4125_v38 }
 0xa56   :  { %1404 = vadd.xlane.f32.xlu0 %v1403_v0 }
 0xa57   :  { %v1406_v5 = vsel %vm77_vm0, %v1396_v4, 0.0 }
 0xa58   :  { %1407 = vadd.xlane.f32.xlu1 %v1406_v5  ;;  %v1380_v9 = vpop.f32.mrb[48].mxu0 }
 0xa59   :  { %v1381_v51 = vadd.f32 %v2764_v53, %v1380_v9  ;;  %v3099_v17 = vpop.f32.mrb[49].mxu0 }
 0xa5a   :  { %v1383_v40 = vpop.f32.mrb[50].mxu0  ;;  %v2772_v17 = vld [vmem:[%s4622_s19] ss:$0 sm:$0xff] }
 0xa5b   :  { %v1384_v8 = vadd.f32 %v2764_v53, %v1383_v40  ;;  %v3100_v6 = vpop.f32.mrb[51].mxu0  ;;  %v1397_v10 = vadd.f32 %v1381_v51, %v4134_v1 }
 0xa5d   :  { %v1409_v54 = vsel %vm77_vm0, %v1397_v10, 0.0  ;;  %v1398_v36 = vadd.f32 %v1384_v8, %v4136_v15 }
 0xa5e   :  { %1410 = vadd.xlane.f32.xlu0 %v1409_v54 }
 0xa5f   :  { %v1412_v13 = vsel %vm77_vm0, %v1398_v36, 0.0 }
 0xa60   :  { %1413 = vadd.xlane.f32.xlu1 %v1412_v13  ;;  %v1388_v38 = vpop.f32.mrb[52].mxu0 }
 0xa61   :  { %v1389_v18 = vadd.f32 %v2764_v53, %v1388_v38  ;;  %v3103_v11 = vpop.f32.mrb[53].mxu0  ;;  %v2773_v38 = vld [vmem:[%s4623_s20] ss:$0 sm:$0xff] }
 0xa62   :  { %v1391_v19 = vpop.f32.mrb[54].mxu0 }
 0xa63   :  { %v1392_v20 = vadd.f32 %v2764_v53, %v1391_v19  ;;  %v3104_v63 = vpop.f32.mrb[55].mxu0  ;;  %v1399_v21 = vadd.f32 %v1389_v18, %v4145_v41 }
 0xa65   :  { %v1415_v23 = vsel %vm77_vm0, %v1399_v21, 0.0  ;;  %v1400_v1 = vadd.f32 %v1392_v20, %v4147_v50 }
 0xa66   :  { %1416 = vadd.xlane.f32.xlu0 %v1415_v23 }
 0xa67   :  { %v1418_v48 = vsel %vm77_vm0, %v1400_v1, 0.0 }
 0xa68   :  { %1419 = vadd.xlane.f32.xlu1 %v1418_v48 }
 0xae3   :  { %v1405_v15 = vpop.xlane.xlu0 %1404 }
 0xae4   :  { %v1421_v12 = vmul.f32 0.03125, %v1405_v15 }
 0xae5   :  { %v1408_v37 = vpop.xlane.xlu1 %1407 }
 0xae6   :  { %v1427_v24 = vsub.f32 %v1395_v62, %v1421_v12  ;;  %v1422_v45 = vmul.f32 0.03125, %v1408_v37 }
 0xae8   :  { %v1428_v22 = vsub.f32 %v1396_v4, %v1422_v45  ;;  %v1433_v25 = vmul.f32 %v1427_v24, %v1427_v24 }
 0xaea   :  { %v1439_v28 = vsel %vm77_vm0, %v1433_v25, 0.0  ;;  %v1434_v29 = vmul.f32 %v1428_v22, %v1428_v22 }
 0xaeb   :  { %v1411_v7 = vpop.xlane.xlu0 %1410  ;;  %1440 = vadd.xlane.f32.xlu0 %v1439_v28 }
 0xaec   :  { %v1423_v41 = vmul.f32 0.03125, %v1411_v7  ;;  %v1442_v58 = vsel %vm77_vm0, %v1434_v29, 0.0 }
 0xaed   :  { %v1414_v50 = vpop.xlane.xlu1 %1413  ;;  %1443 = vadd.xlane.f32.xlu1 %v1442_v58 }
 0xaee   :  { %v4199_v47 = vsub.f32 %v1397_v10, %v1423_v41  ;;  %v1424_v31 = vmul.f32 0.03125, %v1414_v50 }
 0xaf0   :  { %v4201_v32 = vsub.f32 %v1398_v36, %v1424_v31  ;;  %v1435_v33 = vmul.f32 %v4199_v47, %v4199_v47 }
 0xaf2   :  { %v1445_v34 = vsel %vm77_vm0, %v1435_v33, 0.0  ;;  %v1436_v26 = vmul.f32 %v4201_v32, %v4201_v32  ;;  %v2779_v33 = vld [vmem:[%s4612_s10 + $0x1] ss:$0 sm:$0xff] }
 0xaf3   :  { %1446 = vadd.xlane.f32.xlu0 %v1445_v34  ;;  %v1417_v16 = vpop.xlane.xlu0 %1416 }
 0xaf4   :  { %v1425_v30 = vmul.f32 0.03125, %v1417_v16  ;;  %v1448_v14 = vsel %vm77_vm0, %v1436_v26, 0.0 }
 0xaf5   :  { %1449 = vadd.xlane.f32.xlu1 %v1448_v14  ;;  %v1420_v44 = vpop.xlane.xlu1 %1419 }
 0xaf6   :  { %v4209_v2 = vsub.f32 %v1399_v21, %v1425_v30  ;;  %v1426_v39 = vmul.f32 0.03125, %v1420_v44 }
 0xaf8   :  { %v4211_v42 = vsub.f32 %v1400_v1, %v1426_v39  ;;  %v1437_v27 = vmul.f32 %v4209_v2, %v4209_v2 }
 0xafa   :  { %v1451_v46 = vsel %vm77_vm0, %v1437_v27, 0.0  ;;  %v1438_v43 = vmul.f32 %v4211_v42, %v4211_v42 }
 0xafb   :  { %1452 = vadd.xlane.f32.xlu0 %v1451_v46 }
 0xafc   :  { %v1454_v55 = vsel %vm77_vm0, %v1438_v43, 0.0 }
 0xafd   :  { %1455 = vadd.xlane.f32.xlu1 %v1454_v55 }
 0xb78   :  { %v1441_v53 = vpop.xlane.xlu0 %1440 }
 0xb79   :  { %v1457_v56 = vmul.f32 0.03125, %v1441_v53 }
 0xb7a   :  { %v1444_v52 = vpop.xlane.xlu1 %1443 }
 0xb7b   :  { %v1463_v57 = vadd.f32 1e-12, %v1457_v56  ;;  %v1458_v59 = vmul.f32 0.03125, %v1444_v52 }
 0xb7d   :  { %3421 = vrsqrt.f32 %v1463_v57  ;;  %v1464_v60 = vadd.f32 1e-12, %v1458_v59 }
 0xb7f   :  { %3423 = vrsqrt.f32 %v1464_v60 }
 0xb80   :  { %v1447_v61 = vpop.xlane.xlu0 %1446 }
 0xb81   :  { %v1459_v62 = vmul.f32 0.03125, %v1447_v61 }
 0xb82   :  { %v1450_v0 = vpop.xlane.xlu1 %1449 }
 0xb83   :  { %v1465_v4 = vadd.f32 1e-12, %v1459_v62  ;;  %v1460_v5 = vmul.f32 0.03125, %v1450_v0 }
 0xb85   :  { %3425 = vrsqrt.f32 %v1465_v4  ;;  %v1466_v9 = vadd.f32 1e-12, %v1460_v5 }
 0xb87   :  { %v3422_v51 = vpop.eup %3421  ;;  %3427 = vrsqrt.f32 %v1466_v9 }
 0xb88   :  { %v1475_v40 = vmul.f32 %v3422_v51, %v1427_v24  ;;  %v1453_v8 = vpop.xlane.xlu0 %1452 }
 0xb89   :  { %v3424_v6 = vpop.eup %3423  ;;  %v1461_v10 = vmul.f32 0.03125, %v1453_v8 }
 0xb8a   :  { %v1487_v54 = vmul.f32 %v2772_v17, %v1475_v40  ;;  %v1476_v36 = vmul.f32 %v3424_v6, %v1428_v22  ;;  %v1456_v13 = vpop.xlane.xlu1 %1455 }
 0xb8b   :  { %v1467_v18 = vadd.f32 1e-12, %v1461_v10  ;;  %v1462_v11 = vmul.f32 0.03125, %v1456_v13 }
 0xb8c   :  { %v1488_v19 = vmul.f32 %v2772_v17, %v1476_v36  ;;  %v4233_v63 = vadd.f32 %v2773_v38, %v1487_v54 }
 0xb8d   :  { %3429 = vrsqrt.f32 %v1467_v18  ;;  %v1468_v20 = vadd.f32 1e-12, %v1462_v11  ;;  %v3519_v11 = vld [vmem:[%s4613_s3] sm:$0xff] }
 0xb8e   :  { %v4235_v21 = vadd.f32 %v2773_v38, %v1488_v19 }
 0xb8f   :  { %v3426_v23 = vpop.eup %3425  ;;  %3431 = vrsqrt.f32 %v1468_v20 }
 0xb90   :  { %v1477_v1 = vmul.f32 %v3426_v23, %v4199_v47  ;;  %v1505_v48 = vpack.c.bf16 %v4235_v21, %v4233_v63 }
 0xb91   :  { %v3428_v15 = vpop.eup %3427 }
 0xb92   :  { %v1478_v12 = vmul.f32 %v3428_v15, %v4201_v32  ;;  %3110 = vmatmul.mubr.msk.bf16.vlgmr.msra.gmra.mrb[52].mxu1 %vm77_vm0, %v1505_v48  ;;  %v1489_v37 = vmul.f32 %v2772_v17, %v1477_v1  ;;  %v3520_v1 = vld [vmem:[%s4613_s3 + $0x8] sm:$0xff] }
 0xb93   :  { %3113 = vmatprep.mubr.msk.bf16.mxu1 %vm3526_vm1, %v3525_v3 }
 0xb94   :  { %v1490_v24 = vmul.f32 %v2772_v17, %v1478_v12  ;;  %v4244_v45 = vadd.f32 %v2773_v38, %v1489_v37 }
 0xb96   :  { %v4246_v22 = vadd.f32 %v2773_v38, %v1490_v24 }
 0xb97   :  { %v3430_v25 = vpop.eup %3429 }
 0xb98   :  { %v1479_v28 = vmul.f32 %v3430_v25, %v4209_v2  ;;  %v1506_v29 = vpack.c.bf16 %v4246_v22, %v4244_v45  ;;  %v3521_v25 = vld [vmem:[%s4613_s3 + $0x10] sm:$0xff] }
 0xb99   :  { %v3432_v7 = vpop.eup %3431 }
 0xb9a   :  { %v1480_v41 = vmul.f32 %v3432_v7, %v4211_v42  ;;  %3114 = vmatmul.mubr.msk.bf16.gmra.mrb[56].mxu1 %vm77_vm0, %v1506_v29  ;;  %v1491_v58 = vmul.f32 %v2772_v17, %v1479_v28 }
 0xb9b   :  { %3117 = vmatprep.mubr.msk.bf16.mxu1 %vm3526_vm1, %v3525_v3 }
 0xb9c   :  { %v1492_v50 = vmul.f32 %v2772_v17, %v1480_v41  ;;  %v4255_v47 = vadd.f32 %v2773_v38, %v1491_v58  ;;  %v3522_v41 = vld [vmem:[%s4613_s3 + $0x18] sm:$0xff] }
 0xb9e   :  { %v4257_v31 = vadd.f32 %v2773_v38, %v1492_v50 }
 0xba0   :  { %v1507_v32 = vpack.c.bf16 %v4257_v31, %v4255_v47 }
 0xba2   :  { %3118 = vmatmul.mubr.msk.bf16.gmra.mrb[60].mxu1 %vm77_vm0, %v1507_v32 }
 0xba3   :  { %3145 = vmatprep.mubr.msk.bf16.mxu1 %vm3526_vm1, %v3525_v3 }
 0xc65   :  { %v1576_v34 = vpop.f32.mrb[52].mxu1 }
 0xc66   :  { %v3111_v26 = vpop.f32.mrb[53].mxu1  ;;  %v1577_v30 = vadd.f32 %v2779_v33, %v1576_v34 }
 0xc67   :  { %v1579_v16 = vpop.f32.mrb[54].mxu1  ;;  %v3523_v26 = vld [vmem:[%s4613_s3 + $0x20] sm:$0xff] }
 0xc68   :  { %v1580_v14 = vadd.f32 %v2779_v33, %v1579_v16  ;;  %v3112_v44 = vpop.f32.mrb[55].mxu1 }
 0xc69   :  { %v3524_v44 = vld [vmem:[%s4613_s3 + $0x28] sm:$0xff] }
 0xc6a   :  { %v4267_v2 = vpack.c.bf16 %v1580_v14, %v1577_v30 }
 0xc6c   :  { %1605 = vrot.lane.b32.xlu0 %v4267_v2, %s3528_s22 }
 0xc6d   :  { %v1584_v39 = vpop.f32.mrb[56].mxu1 }
 0xc6e   :  { %v3115_v42 = vpop.f32.mrb[57].mxu1  ;;  %v1585_v46 = vadd.f32 %v2779_v33, %v1584_v39 }
 0xc6f   :  { %v1587_v27 = vpop.f32.mrb[58].mxu1 }
 0xc70   :  { %v1588_v43 = vadd.f32 %v2779_v33, %v1587_v27  ;;  %1836 = vrot.lane.b32.xlu0 %v4267_v2, %s3529_s23  ;;  %v3116_v55 = vpop.f32.mrb[59].mxu1 }
 0xc72   :  { %v4273_v49 = vpack.c.bf16 %v1588_v43, %v1585_v46 }
 0xc74   :  { %1607 = vrot.lane.b32.xlu1 %v4273_v49, %s3528_s22 }
 0xc75   :  { %v1592_v35 = vpop.f32.mrb[60].mxu1 }
 0xc76   :  { %v3119_v53 = vpop.f32.mrb[61].mxu1  ;;  %v1593_v52 = vadd.f32 %v2779_v33, %v1592_v35 }
 0xc77   :  { %v1595_v56 = vpop.f32.mrb[62].mxu1 }
 0xc78   :  { %v1596_v57 = vadd.f32 %v2779_v33, %v1595_v56  ;;  %v3120_v59 = vpop.f32.mrb[63].mxu1 }
 0xc7a   :  { %v4277_v60 = vpack.c.bf16 %v1596_v57, %v1593_v52 }
 0xc7c   :  { %1840 = vrot.lane.b32.xlu0 %v4277_v60, %s3529_s23  ;;  %1609 = vrot.lane.b32.xlu1 %v4277_v60, %s3528_s22 }
 0xc80   :  { %1832 = vrot.lane.b32.xlu0 %v4273_v49, %s3530_s7  ;;  %1838 = vrot.lane.b32.xlu1 %v4273_v49, %s3529_s23 }
 0xc84   :  { %1830 = vrot.lane.b32.xlu1 %v4267_v2, %s3530_s7 }
 0xc88   :  { %1834 = vrot.lane.b32.xlu1 %v4277_v60, %s3530_s7 }
 0xc8c   :  { %1755 = vrot.lane.b32.xlu1 %v4267_v2, %s3531_s24 }
 0xcde   :  { %v1606_v61 = vpop.permute.xlu0 %1605 }
 0xcdf   :  { %v1621_v62 = vsel %vm480_vm4, %v1606_v61, 0 }
 0xce0   :  { %3122 = vmatpush3.bf16.xpose.msra.mxu0 %v1621_v62 }
 0xce1   :  { %3123 = vmatprep.subr.bf16.mxu0 %v3525_v3 }
 0xce2   :  { %v1837_v17 = vpop.permute.xlu0 %1836 }
 0xce3   :  { %v1852_v8 = vsel %vm480_vm4, %v1837_v17, 0 }
 0xce6   :  { %v1608_v0 = vpop.permute.xlu1 %1607 }
 0xce7   :  { %v1624_v4 = vsel %vm480_vm4, %v1608_v0, 0 }
 0xce8   :  { %3124 = vmatpush3.bf16.xpose.msra.mxu0 %v1624_v4 }
 0xce9   :  { %3125 = vmatprep.subr.bf16.mxu0 %v3525_v3 }
 0xcee   :  { %v1610_v5 = vpop.permute.xlu1 %1609  ;;  %v1841_v36 = vpop.permute.xlu0 %1840 }
 0xcef   :  { %v1627_v9 = vsel %vm480_vm4, %v1610_v5, 0  ;;  %v1858_v13 = vsel %vm480_vm4, %v1841_v36, 0 }
 0xcf0   :  { %3126 = vmatpush3.bf16.xpose.msra.mxu0 %v1627_v9 }
 0xcf1   :  { %3157 = vmatprep.subr.bf16.mxu0 %v3525_v3 }
 0xcf2   :  { %v1839_v51 = vpop.permute.xlu1 %1838  ;;  %v1833_v38 = vpop.permute.xlu0 %1832 }
 0xcf3   :  { %v1855_v54 = vsel %vm480_vm4, %v1839_v51, 0 }
 0xcf6   :  { %v1831_v40 = vpop.permute.xlu1 %1830 }
 0xcf7   :  { %3128 = vmatmul.mubr.msk.bf16.vlgmr.msra.gmra.mrb[56].mxu0 %vm480_vm4, %v4267_v2 }
 0xcf8   :  { %3158 = vmatpush3.bf16.xpose.msra.mxu0 %v1852_v8  ;;  %3131 = vmatprep.mubr.msk.bf16.mxu0 %vm3526_vm1, %v3525_v3 }
 0xcf9   :  { %3159 = vmatprep.subr.bf16.mxu0 %v3525_v3 }
 0xcfa   :  { %v1835_v6 = vpop.permute.xlu1 %1834 }
 0xcfe   :  { %v1756_v10 = vpop.permute.xlu1 %1755 }
 0xcff   :  { %3132 = vmatmul.mubr.msk.bf16.gmra.mrb[60].mxu0 %vm480_vm4, %v4273_v49  ;;  %3140 = vmatpush3.bf16.msra.mxu1 %v1756_v10 }
 0xd00   :  { %3160 = vmatpush3.bf16.xpose.msra.mxu0 %v1855_v54  ;;  %3135 = vmatprep.mubr.msk.bf16.mxu0 %vm3526_vm1, %v3525_v3 }
 0xd01   :  { %3161 = vmatprep.subr.bf16.mxu0 %v3525_v3  ;;  %3141 = vmatprep.subr.bf16.mxu1 %v3525_v3 }
 0xd07   :  { %3136 = vmatmul.mubr.msk.bf16.gmra.mrb[64].mxu0 %vm480_vm4, %v4277_v60 }
 0xd08   :  { %3162 = vmatpush3.bf16.xpose.msra.mxu0 %v1858_v13  ;;  %3163 = vmatprep.mubr.msk.bf16.mxu0 %vm3526_vm1, %v3525_v3 }
 0xd09   :  { %3193 = vmatprep.subr.bf16.mxu0 %v3525_v3 }
 0xd0f   :  { %3164 = vmatmul.mubr.msk.bf16.vlgmr.msra.gmra.mrb[68].mxu0 %vm480_vm4, %v1831_v40 }
 0xd10   :  { %3167 = vmatprep.mubr.msk.bf16.mxu0 %vm3526_vm1, %v3525_v3 }
 0xd17   :  { %3168 = vmatmul.mubr.msk.bf16.gmra.mrb[72].mxu0 %vm480_vm4, %v1833_v38 }
 0xd18   :  { %3171 = vmatprep.mubr.msk.bf16.mxu0 %vm3526_vm1, %v3525_v3 }
 0xd1f   :  { %3172 = vmatmul.mubr.msk.bf16.gmra.mrb[76].mxu0 %vm480_vm4, %v1835_v6 }
 0xd20   :  { %3197 = vmatprep.mubr.msk.bf16.mxu0 %vm3526_vm1, %v3525_v3 }
 0xdca   :  { %v1663_v18 = vpop.f32.mrb[56].mxu0 }
 0xdcb   :  { %v4330_v19 = vadd.f32 %v3519_v11, %v1663_v18  ;;  %v3129_v20 = vpop.f32.mrb[57].mxu0 }
 0xdcc   :  { %v1666_v23 = vpop.f32.mrb[58].mxu0 }
 0xdcd   :  { %v4335_v48 = vadd.f32 %v3520_v1, %v1666_v23  ;;  %v3130_v15 = vpop.f32.mrb[59].mxu0  ;;  %v1686_v12 = vsel %vm556_vm5, %v4330_v19, -inf }
 0xdce   :  { %1687 = vmax.xlane.f32.xlu0 %v1686_v12 }
 0xdcf   :  { %v1689_v37 = vsel %vm556_vm5, %v4335_v48, -inf }
 0xdd0   :  { %1690 = vmax.xlane.f32.xlu1 %v1689_v37 }
 0xdd2   :  { %v1671_v24 = vpop.f32.mrb[60].mxu0 }
 0xdd3   :  { %v4344_v28 = vadd.f32 %v3521_v25, %v1671_v24  ;;  %v3133_v29 = vpop.f32.mrb[61].mxu0 }
 0xdd4   :  { %v1674_v7 = vpop.f32.mrb[62].mxu0 }
 0xdd5   :  { %v1675_v58 = vadd.f32 %v3522_v41, %v1674_v7  ;;  %v3134_v50 = vpop.f32.mrb[63].mxu0  ;;  %v1692_v32 = vsel %vm556_vm5, %v4344_v28, -inf }
 0xdd6   :  { %1693 = vmax.xlane.f32.xlu0 %v1692_v32 }
 0xdd7   :  { %v1695_v33 = vsel %vm556_vm5, %v1675_v58, -inf }
 0xdda   :  { %1696 = vmax.xlane.f32.xlu0 %v1695_v33  ;;  %v1679_v34 = vpop.f32.mrb[64].mxu0 }
 0xddb   :  { %v4355_v16 = vadd.f32 %v3523_v26, %v1679_v34  ;;  %v3137_v30 = vpop.f32.mrb[65].mxu0 }
 0xddc   :  { %v1682_v14 = vpop.f32.mrb[66].mxu0 }
 0xddd   :  { %v1683_v39 = vadd.f32 %v3524_v44, %v1682_v14  ;;  %v3138_v42 = vpop.f32.mrb[67].mxu0  ;;  %v1698_v27 = vsel %vm556_vm5, %v4355_v16, -inf }
 0xdde   :  { %1699 = vmax.xlane.f32.xlu1 %v1698_v27 }
 0xddf   :  { %v1701_v46 = vsel %vm556_vm5, %v1683_v39, -inf }
 0xde0   :  { %1702 = vmax.xlane.f32.xlu0 %v1701_v46 }
 0xde2   :  { %v1894_v43 = vpop.f32.mrb[68].mxu0 }
 0xde3   :  { %v4363_v55 = vadd.f32 %v3519_v11, %v1894_v43  ;;  %v3165_v35 = vpop.f32.mrb[69].mxu0 }
 0xde4   :  { %v1897_v53 = vpop.f32.mrb[70].mxu0 }
 0xde5   :  { %v1898_v56 = vadd.f32 %v3520_v1, %v1897_v53  ;;  %v3166_v52 = vpop.f32.mrb[71].mxu0  ;;  %v1917_v57 = vsel %vm556_vm5, %v4363_v55, -inf }
 0xde6   :  { %1918 = vmax.xlane.f32.xlu1 %v1917_v57 }
 0xde7   :  { %v1920_v59 = vsel %vm556_vm5, %v1898_v56, -inf }
 0xde8   :  { %1921 = vmax.xlane.f32.xlu0 %v1920_v59 }
 0xdea   :  { %v1902_v61 = vpop.f32.mrb[72].mxu0 }
 0xdeb   :  { %v1903_v62 = vadd.f32 %v3521_v25, %v1902_v61  ;;  %v3169_v0 = vpop.f32.mrb[73].mxu0 }
 0xdec   :  { %v1905_v4 = vpop.f32.mrb[74].mxu0 }
 0xded   :  { %v1906_v5 = vadd.f32 %v3522_v41, %v1905_v4  ;;  %v3170_v9 = vpop.f32.mrb[75].mxu0  ;;  %v1923_v51 = vsel %vm556_vm5, %v1903_v62, -inf }
 0xdee   :  { %1924 = vmax.xlane.f32.xlu1 %v1923_v51 }
 0xdef   :  { %v1926_v17 = vsel %vm556_vm5, %v1906_v5, -inf }
 0xdf0   :  { %1927 = vmax.xlane.f32.xlu0 %v1926_v17 }
 0xdf2   :  { %v1910_v40 = vpop.f32.mrb[76].mxu0 }
 0xdf3   :  { %v1911_v8 = vadd.f32 %v3523_v26, %v1910_v40  ;;  %v3173_v6 = vpop.f32.mrb[77].mxu0 }
 0xdf4   :  { %v1913_v10 = vpop.f32.mrb[78].mxu0 }
 0xdf5   :  { %v1914_v54 = vadd.f32 %v3524_v44, %v1913_v10  ;;  %v3174_v36 = vpop.f32.mrb[79].mxu0  ;;  %v1929_v13 = vsel %vm556_vm5, %v1911_v8, -inf }
 0xdf6   :  { %1930 = vmax.xlane.f32.xlu1 %v1929_v13 }
 0xdf7   :  { %v1932_v38 = vsel %vm556_vm5, %v1914_v54, -inf }
 0xdf8   :  { %1933 = vmax.xlane.f32.xlu0 %v1932_v38 }
 0xe07   :  { %1759 = vrot.lane.b32.xlu1 %v4277_v60, %s3531_s24 }
 0xe0e   :  { %1757 = vrot.lane.b32.xlu0 %v4273_v49, %s3531_s24 }
 0xe5b   :  { %v1688_v18 = vpop.xlane.xlu0 %1687 }
 0xe5c   :  { %v1704_v11 = vsub.f32 %v4330_v19, %v1688_v18 }
 0xe5d   :  { %v1691_v20 = vpop.xlane.xlu1 %1690 }
 0xe5e   :  { %v1710_v23 = vmul.f32 1.442695, %v1704_v11  ;;  %v1705_v1 = vsub.f32 %v4335_v48, %v1691_v20 }
 0xe60   :  { %3433 = vpow2.f32 %v1710_v23  ;;  %v1712_v15 = vmul.f32 1.442695, %v1705_v1 }
 0xe62   :  { %3435 = vpow2.f32 %v1712_v15 }
 0xe63   :  { %v1694_v12 = vpop.xlane.xlu0 %1693 }
 0xe67   :  { %v1697_v37 = vpop.xlane.xlu0 %1696 }
 0xe68   :  { %v1707_v24 = vsub.f32 %v1675_v58, %v1697_v37 }
 0xe6a   :  { %v4378_v25 = vpop.eup %3433  ;;  %v1716_v29 = vmul.f32 1.442695, %v1707_v24 }
 0xe6b   :  { %v1722_v7 = vsel %vm556_vm5, %v4378_v25, 0.0  ;;  %v1700_v33 = vpop.xlane.xlu1 %1699 }
 0xe6c   :  { %v4382_v41 = vpop.eup %3435  ;;  %3437 = vpow2.f32 %v1716_v29  ;;  %1723 = vadd.xlane.f32.xlu1 %v1722_v7  ;;  %v1708_v10 = vsub.f32 %v4355_v16, %v1700_v33 }
 0xe6d   :  { %v1703_v19 = vpop.xlane.xlu0 %1702  ;;  %v1725_v48 = vsel %vm556_vm5, %v4382_v41, 0.0 }
 0xe6e   :  { %v1709_v50 = vsub.f32 %v1683_v39, %v1703_v19  ;;  %1726 = vadd.xlane.f32.xlu0 %v1725_v48  ;;  %v1718_v36 = vmul.f32 1.442695, %v1708_v10 }
 0xe70   :  { %v1720_v32 = vmul.f32 1.442695, %v1709_v50 }
 0xe72   :  { %3439 = vpow2.f32 %v1720_v32 }
 0xe73   :  { %v1919_v30 = vpop.xlane.xlu1 %1918 }
 0xe74   :  { %v1935_v13 = vsub.f32 %v4363_v55, %v1919_v30 }
 0xe75   :  { %v1922_v58 = vpop.xlane.xlu0 %1921 }
 0xe76   :  { %v4386_v34 = vpop.eup %3437  ;;  %v1936_v26 = vsub.f32 %v1898_v56, %v1922_v58  ;;  %v1941_v16 = vmul.f32 1.442695, %v1935_v13 }
 0xe77   :  { %v1731_v14 = vsel %vm556_vm5, %v4386_v34, 0.0 }
 0xe78   :  { %v1943_v44 = vmul.f32 1.442695, %v1936_v26  ;;  %1732 = vadd.xlane.f32.xlu0 %v1731_v14 }
 0xe7a   :  { %3441 = vpow2.f32 %v1943_v44 }
 0xe7b   :  { %v1925_v42 = vpop.xlane.xlu1 %1924 }
 0xe7c   :  { %v4390_v27 = vpop.eup %3439  ;;  %v1937_v46 = vsub.f32 %v1903_v62, %v1925_v42 }
 0xe7d   :  { %v1928_v39 = vpop.xlane.xlu0 %1927  ;;  %1986 = vrot.lane.b32.xlu1 %v4267_v2, %s3532_s1  ;;  %v1737_v43 = vsel %vm556_vm5, %v4390_v27, 0.0 }
 0xe7e   :  { %v1945_v35 = vmul.f32 1.442695, %v1937_v46  ;;  %v1938_v53 = vsub.f32 %v1906_v5, %v1928_v39  ;;  %1738 = vadd.xlane.f32.xlu0 %v1737_v43  ;;  %v1706_v5 = vsub.f32 %v4344_v28, %v1694_v12 }
 0xe80   :  { %3443 = vpow2.f32 %v1945_v35  ;;  %v1947_v56 = vmul.f32 1.442695, %v1938_v53  ;;  %v1714_v6 = vmul.f32 1.442695, %v1706_v5 }
 0xe82   :  { %3445 = vpow2.f32 %v1947_v56 }
 0xe83   :  { %v1931_v52 = vpop.xlane.xlu1 %1930 }
 0xe84   :  { %v4396_v57 = vpop.eup %3441  ;;  %v1939_v59 = vsub.f32 %v1911_v8, %v1931_v52 }
 0xe85   :  { %v1934_v61 = vpop.xlane.xlu0 %1933  ;;  %v1956_v62 = vsel %vm556_vm5, %v4396_v57, 0.0 }
 0xe86   :  { %v1949_v0 = vmul.f32 1.442695, %v1939_v59  ;;  %v1940_v4 = vsub.f32 %v1914_v54, %v1934_v61  ;;  %1957 = vadd.xlane.f32.xlu0 %v1956_v62 }
 0xe87   :  { %v1760_v8 = vpop.permute.xlu1 %1759 }
 0xe88   :  { %3447 = vpow2.f32 %v1949_v0  ;;  %v1951_v2 = vmul.f32 1.442695, %v1940_v4 }
 0xe89   :  { %v1758_v9 = vpop.permute.xlu0 %1757 }
 0xe8a   :  { %v4400_v51 = vpop.eup %3443  ;;  %3449 = vpow2.f32 %v1951_v2  ;;  %3142 = vmatpush3.bf16.msra.mxu1 %v1758_v9 }
 0xe8b   :  { %v1959_v17 = vsel %vm556_vm5, %v4400_v51, 0.0  ;;  %3143 = vmatprep.subr.bf16.mxu1 %v3525_v3  ;;  %3451 = vpow2.f32 %v1714_v6 }
 0xe8c   :  { %v4406_v40 = vpop.eup %3445  ;;  %1960 = vadd.xlane.f32.xlu0 %v1959_v17  ;;  %3453 = vpow2.f32 %v1718_v36 }
 0xe8d   :  { %v1962_v54 = vsel %vm556_vm5, %v4406_v40, 0.0  ;;  %3455 = vpow2.f32 %v1941_v16 }
 0xe8e   :  { %3144 = vmatpush3.bf16.msra.mxu1 %v1760_v8 }
 0xe8f   :  { %3175 = vmatprep.subr.bf16.mxu1 %v3525_v3 }
 0xe90   :  { %1963 = vadd.xlane.f32.xlu0 %v1962_v54 }
 0xe92   :  { %v4412_v28 = vpop.eup %3447 }
 0xe93   :  { %v1965_v38 = vsel %vm556_vm5, %v4412_v28, 0.0 }
 0xe94   :  { %v4417_v18 = vpop.eup %3449  ;;  %1966 = vadd.xlane.f32.xlu0 %v1965_v38 }
 0xe95   :  { %v1968_v11 = vsel %vm556_vm5, %v4417_v18, 0.0  ;;  %v3452_v20 = vpop.eup %3451 }
 0xe96   :  { %v1728_v23 = vsel %vm556_vm5, %v3452_v20, 0.0  ;;  %v3454_v1 = vpop.eup %3453 }
 0xe97   :  { %v1734_v55 = vsel %vm556_vm5, %v3454_v1, 0.0  ;;  %v3456_v15 = vpop.eup %3455 }
 0xe98   :  { %1969 = vadd.xlane.f32.xlu0 %v1968_v11  ;;  %v1953_v12 = vsel %vm556_vm5, %v3456_v15, 0.0 }
 0xea1   :  { %1729 = vadd.xlane.f32.xlu1 %v1728_v23 }
 0xea5   :  { %1735 = vadd.xlane.f32.xlu1 %v1734_v55 }
 0xea9   :  { %1954 = vadd.xlane.f32.xlu1 %v1953_v12 }
 0xeae   :  { %1988 = vrot.lane.b32.xlu0 %v4273_v49, %s3532_s1 }
 0xeba   :  { %1990 = vrot.lane.b32.xlu1 %v4277_v60, %s3532_s1 }
 0xef9   :  { %v1724_v37 = vpop.xlane.xlu1 %1723 }
 0xefa   :  { %3457 = vrcp.f32 %v1724_v37 }
 0xefb   :  { %v1727_v24 = vpop.xlane.xlu0 %1726 }
 0xefc   :  { %3459 = vrcp.f32 %v1727_v24 }
 0xefd   :  { %v1987_v32 = vpop.permute.xlu1 %1986 }
 0xf04   :  { %v3458_v29 = vpop.eup %3457 }
 0xf05   :  { %v1746_v19 = vmul.f32 %v3458_v29, %v4378_v25  ;;  %v1733_v49 = vpop.xlane.xlu0 %1732 }
 0xf06   :  { %v3460_v7 = vpop.eup %3459  ;;  %3461 = vrcp.f32 %v1733_v49 }
 0xf07   :  { %v1747_v48 = vmul.f32 %v3460_v7, %v4382_v41 }
 0xf09   :  { %v1752_v50 = vpack.c.bf16 %v1747_v48, %v1746_v19 }
 0xf0b   :  { %3146 = vmatmul.mubr.msk.bf16.vlgmr.msra.gmra.mrb[64].mxu1 %vm556_vm5, %v1752_v50  ;;  %v1739_v60 = vpop.xlane.xlu0 %1738 }
 0xf0c   :  { %3176 = vmatpush3.bf16.msra.mxu1 %v1987_v32  ;;  %3149 = vmatprep.mubr.msk.bf16.mxu1 %vm3526_vm1, %v3525_v3 }
 0xf0d   :  { %3177 = vmatprep.subr.bf16.mxu1 %v3525_v3 }
 0xf10   :  { %v3462_v46 = vpop.eup %3461 }
 0xf11   :  { %v1749_v53 = vmul.f32 %v3462_v46, %v4386_v34 }
 0xf13   :  { %v1958_v33 = vpop.xlane.xlu0 %1957 }
 0xf19   :  { %v1961_v58 = vpop.xlane.xlu0 %1960 }
 0xf1d   :  { %v1964_v26 = vpop.xlane.xlu0 %1963 }
 0xf21   :  { %v1967_v30 = vpop.xlane.xlu0 %1966 }
 0xf25   :  { %v1970_v14 = vpop.xlane.xlu0 %1969 }
 0xf29   :  { %v1989_v25 = vpop.permute.xlu0 %1988 }
 0xf2a   :  { %3178 = vmatpush3.bf16.msra.mxu1 %v1989_v25 }
 0xf2b   :  { %3179 = vmatprep.subr.bf16.mxu1 %v3525_v3 }
 0xf2e   :  { %v1730_v41 = vpop.xlane.xlu1 %1729 }
 0xf2f   :  { %3463 = vrcp.f32 %v1730_v41 }
 0xf32   :  { %v1736_v44 = vpop.xlane.xlu1 %1735 }
 0xf33   :  { %3465 = vrcp.f32 %v1736_v44 }
 0xf34   :  { %3467 = vrcp.f32 %v1739_v60 }
 0xf36   :  { %v1955_v42 = vpop.xlane.xlu1 %1954 }
 0xf37   :  { %3469 = vrcp.f32 %v1955_v42 }
 0xf38   :  { %3471 = vrcp.f32 %v1958_v33 }
 0xf39   :  { %v3464_v39 = vpop.eup %3463  ;;  %3473 = vrcp.f32 %v1964_v26 }
 0xf3a   :  { %v1991_v43 = vpop.permute.xlu1 %1990  ;;  %v1748_v35 = vmul.f32 %v3464_v39, %v3452_v20  ;;  %3475 = vrcp.f32 %v1961_v58 }
 0xf3b   :  { %3180 = vmatpush3.bf16.msra.mxu1 %v1991_v43  ;;  %3477 = vrcp.f32 %v1970_v14 }
 0xf3c   :  { %v1753_v56 = vpack.c.bf16 %v1749_v53, %v1748_v35  ;;  %3209 = vmatprep.subr.bf16.mxu1 %v3525_v3  ;;  %3479 = vrcp.f32 %v1967_v30 }
 0xf3d   :  { %v3466_v52 = vpop.eup %3465 }
 0xf3e   :  { %3150 = vmatmul.mubr.msk.bf16.gmra.mrb[68].mxu1 %vm556_vm5, %v1753_v56  ;;  %v3468_v59 = vpop.eup %3467  ;;  %v1750_v61 = vmul.f32 %v3466_v52, %v3454_v1 }
 0xf3f   :  { %3153 = vmatprep.mubr.msk.bf16.mxu1 %vm3526_vm1, %v3525_v3  ;;  %v1751_v62 = vmul.f32 %v3468_v59, %v4390_v27 }
 0xf41   :  { %v1754_v0 = vpack.c.bf16 %v1751_v62, %v1750_v61  ;;  %v3470_v4 = vpop.eup %3469 }
 0xf42   :  { %v3472_v34 = vpop.eup %3471  ;;  %v1977_v2 = vmul.f32 %v3470_v4, %v3456_v15 }
 0xf43   :  { %v1978_v9 = vmul.f32 %v3472_v34, %v4396_v57  ;;  %v3474_v17 = vpop.eup %3473 }
 0xf44   :  { %v3476_v27 = vpop.eup %3475  ;;  %v1980_v8 = vmul.f32 %v3474_v17, %v4406_v40  ;;  %v3330_v40 = vld [vmem:[%s4614_s11 + $0x18] sm:$0xff]   ;;  %v2802_v17 = vld [vmem:[%s4615_s12 + $0x1] ss:$0 sm:$0xff] }
 0xf45   :  { %v1983_v5 = vpack.c.bf16 %v1978_v9, %v1977_v2  ;;  %v1979_v6 = vmul.f32 %v3476_v27, %v4400_v51  ;;  %v3478_v54 = vpop.eup %3477  ;;  %v3329_v51 = vld [vmem:[%s4614_s11 + $0x10] sm:$0xff]  }
 0xf46   :  { %3154 = vmatmul.mubr.msk.bf16.gmra.mrb[72].mxu1 %vm556_vm5, %v1754_v0  ;;  %v3480_v36 = vpop.eup %3479  ;;  %v1982_v57 = vmul.f32 %v3478_v54, %v4417_v18  ;;  %3194 = vmatpush3.bf16.msra.mxu0 %v3329_v51 }
 0xf47   :  { %3181 = vmatprep.mubr.msk.bf16.mxu1 %vm3526_vm1, %v3525_v3  ;;  %v1984_v10 = vpack.c.bf16 %v1980_v8, %v1979_v6  ;;  %v1981_v13 = vmul.f32 %v3480_v36, %v4412_v28  ;;  %3195 = vmatprep.subr.bf16.mxu0 %v3525_v3 }
 0xf49   :  { %v1985_v38 = vpack.c.bf16 %v1982_v57, %v1981_v13 }
 0xf4a   :  { %3196 = vmatpush3.bf16.msra.mxu0 %v3330_v40 }
 0xf4b   :  { %3225 = vmatprep.subr.bf16.mxu0 %v3525_v3 }
 0xf4e   :  { %3182 = vmatmul.mubr.msk.bf16.vlgmr.msra.gmra.mrb[76].mxu1 %vm556_vm5, %v1983_v5 }
 0xf4f   :  { %3185 = vmatprep.mubr.msk.bf16.mxu1 %vm3526_vm1, %v3525_v3 }
 0xf56   :  { %3186 = vmatmul.mubr.msk.bf16.gmra.mrb[80].mxu1 %vm556_vm5, %v1984_v10 }
 0xf57   :  { %3189 = vmatprep.mubr.msk.bf16.mxu1 %vm3526_vm1, %v3525_v3 }
 0xf5e   :  { %3190 = vmatmul.mubr.msk.bf16.gmra.mrb[84].mxu1 %vm556_vm5, %v1985_v38 }
 0xf5f   :  { %3213 = vmatprep.mubr.msk.bf16.mxu1 %vm3526_vm1, %v3525_v3 }
 0xfde   :  { %v1807_v28 = vpop.f32.mrb[64].mxu1 }
 0xfdf   :  { %v3147_v18 = vpop.f32.mrb[65].mxu1 }
 0xfe0   :  { %v1810_v16 = vpop.f32.mrb[66].mxu1 }
 0xfe1   :  { %v3148_v11 = vpop.f32.mrb[67].mxu1 }
0x1011   :  { %v1815_v20 = vpop.f32.mrb[68].mxu1 }
0x1012   :  { %v3151_v23 = vpop.f32.mrb[69].mxu1 }
0x1013   :  { %v1818_v1 = vpop.f32.mrb[70].mxu1 }
0x1014   :  { %v3152_v55 = vpop.f32.mrb[71].mxu1 }
0x1019   :  { %v1823_v15 = vpop.f32.mrb[72].mxu1 }
0x101a   :  { %v3155_v12 = vpop.f32.mrb[73].mxu1 }
0x101b   :  { %v1826_v37 = vpop.f32.mrb[74].mxu1 }
0x101c   :  { %v3156_v24 = vpop.f32.mrb[75].mxu1 }
0x1021   :  { %v2038_v29 = vpop.f32.mrb[76].mxu1 }
0x1022   :  { %v3183_v7 = vpop.f32.mrb[77].mxu1 }
0x1023   :  { %v2041_v19 = vpop.f32.mrb[78].mxu1 }
0x1024   :  { %v3300_v48 = vpack.i.bf16 %v2041_v19, %v2038_v29  ;;  %v3184_v50 = vpop.f32.mrb[79].mxu1 }
0x1026   :  { %3301 = vrot.lane.b32.xlu1 %v3300_v48, %s3533_s25 }
0x1029   :  { %v2046_v32 = vpop.f32.mrb[80].mxu1 }
0x102a   :  { %v3187_v49 = vpop.f32.mrb[81].mxu1 }
0x102b   :  { %v2049_v60 = vpop.f32.mrb[82].mxu1 }
0x102c   :  { %v3305_v33 = vpack.i.bf16 %v2049_v60, %v2046_v32  ;;  %v3188_v58 = vpop.f32.mrb[83].mxu1 }
0x102e   :  { %3306 = vrot.lane.b32.xlu1 %v3305_v33, %s3533_s25 }
0x1031   :  { %v2054_v26 = vpop.f32.mrb[84].mxu1 }
0x1032   :  { %v3191_v30 = vpop.f32.mrb[85].mxu1 }
0x1033   :  { %v2057_v14 = vpop.f32.mrb[86].mxu1 }
0x1034   :  { %v3310_v25 = vpack.i.bf16 %v2057_v14, %v2054_v26  ;;  %v3192_v41 = vpop.f32.mrb[87].mxu1 }
0x1036   :  { %3311 = vrot.lane.b32.xlu1 %v3310_v25, %s3533_s25 }
0x1098   :  { %v3302_v44 = vpop.permute.xlu1 %3301 }
0x1099   :  { %v3304_v42 = vunpack.i.h.bf16 %v3302_v44  ;;  %v3303_v46 = vunpack.i.l.bf16 %v3302_v44 }
0x109b   :  { %v2086_v39 = vsel %vm480_vm4, %v1810_v16, %v3304_v42  ;;  %v2085_v43 = vsel %vm480_vm4, %v1807_v28, %v3303_v46 }
0x109c   :  { %v2091_v35 = vpack.c.bf16 %v2086_v39, %v2085_v43 }
0x109e   :  { %3198 = vmatmul.mubr.msk.bf16.vlgmr.msra.gmra.mrb[80].mxu0 %vm77_vm0, %v2091_v35 }
0x109f   :  { %3201 = vmatprep.mubr.msk.bf16.mxu0 %vm3526_vm1, %v3525_v3 }
0x10a0   :  { %v3307_v53 = vpop.permute.xlu1 %3306 }
0x10a1   :  { %v3309_v56 = vunpack.i.h.bf16 %v3307_v53  ;;  %v3308_v52 = vunpack.i.l.bf16 %v3307_v53 }
0x10a3   :  { %v2088_v59 = vsel %vm480_vm4, %v1818_v1, %v3309_v56  ;;  %v2087_v61 = vsel %vm480_vm4, %v1815_v20, %v3308_v52 }
0x10a4   :  { %v2092_v62 = vpack.c.bf16 %v2088_v59, %v2087_v61 }
0x10a6   :  { %3202 = vmatmul.mubr.msk.bf16.gmra.mrb[84].mxu0 %vm77_vm0, %v2092_v62 }
0x10a7   :  { %3205 = vmatprep.mubr.msk.bf16.mxu0 %vm3526_vm1, %v3525_v3 }
0x10a8   :  { %v3312_v0 = vpop.permute.xlu1 %3311 }
0x10a9   :  { %v3314_v4 = vunpack.i.h.bf16 %v3312_v0  ;;  %v3313_v34 = vunpack.i.l.bf16 %v3312_v0 }
0x10ab   :  { %v2090_v2 = vsel %vm480_vm4, %v1826_v37, %v3314_v4  ;;  %v2089_v9 = vsel %vm480_vm4, %v1823_v15, %v3313_v34 }
0x10ac   :  { %v2093_v5 = vpack.c.bf16 %v2090_v2, %v2089_v9  ;;  %v3331_v9 = vld [vmem:[%s4616_s15 + $0x10] sm:$0xff]  }
0x10ad   :  { %3210 = vmatpush3.bf16.msra.mxu1 %v3331_v9 }
0x10ae   :  { %3206 = vmatmul.mubr.msk.bf16.gmra.mrb[88].mxu0 %vm77_vm0, %v2093_v5  ;;  %3211 = vmatprep.subr.bf16.mxu1 %v3525_v3  ;;  %v3332_v5 = vld [vmem:[%s4616_s15 + $0x18] sm:$0xff]  }
0x10af   :  { %3233 = vmatprep.mubr.msk.bf16.mxu0 %vm3526_vm1, %v3525_v3 }
0x10b1   :  { %3212 = vmatpush3.bf16.msra.mxu1 %v3332_v5 }
0x1171   :  { %v2162_v27 = vpop.f32.mrb[80].mxu0 }
0x1172   :  { %v2163_v8 = vadd.f32 %v2802_v17, %v2162_v27  ;;  %v3199_v6 = vpop.f32.mrb[81].mxu0 }
0x1173   :  { %v2165_v10 = vpop.f32.mrb[82].mxu0 }
0x1174   :  { %v2185_v54 = vadd.f32 %v2163_v8, %v4233_v63  ;;  %v2166_v36 = vadd.f32 %v2802_v17, %v2165_v10  ;;  %v3200_v57 = vpop.f32.mrb[83].mxu0 }
0x1176   :  { %v2186_v13 = vadd.f32 %v2166_v36, %v4235_v21  ;;  %v2195_v38 = vsel %vm77_vm0, %v2185_v54, 0.0 }
0x1177   :  { %2196 = vadd.xlane.f32.xlu1 %v2195_v38 }
0x1178   :  { %v2198_v51 = vsel %vm77_vm0, %v2186_v13, 0.0 }
0x1179   :  { %2199 = vadd.xlane.f32.xlu0 %v2198_v51  ;;  %v2170_v40 = vpop.f32.mrb[84].mxu0 }
0x117a   :  { %v2171_v28 = vadd.f32 %v2802_v17, %v2170_v40  ;;  %v3203_v18 = vpop.f32.mrb[85].mxu0 }
0x117b   :  { %v2173_v16 = vpop.f32.mrb[86].mxu0  ;;  %v2810_v18 = vld [vmem:[%s4617_s13 + $0x1] ss:$0 sm:$0xff] }
0x117c   :  { %v2187_v11 = vadd.f32 %v2171_v28, %v4244_v45  ;;  %v2174_v20 = vadd.f32 %v2802_v17, %v2173_v16  ;;  %v3204_v23 = vpop.f32.mrb[87].mxu0 }
0x117e   :  { %v2188_v63 = vadd.f32 %v2174_v20, %v4246_v22  ;;  %v2201_v1 = vsel %vm77_vm0, %v2187_v11, 0.0 }
0x117f   :  { %2202 = vadd.xlane.f32.xlu0 %v2201_v1 }
0x1180   :  { %v2204_v21 = vsel %vm77_vm0, %v2188_v63, 0.0 }
0x1181   :  { %2205 = vadd.xlane.f32.xlu1 %v2204_v21  ;;  %v2178_v55 = vpop.f32.mrb[88].mxu0 }
0x1182   :  { %v2179_v15 = vadd.f32 %v2802_v17, %v2178_v55  ;;  %v3207_v12 = vpop.f32.mrb[89].mxu0  ;;  %v2811_v55 = vld [vmem:[%s4618_s14 + $0x1] ss:$0 sm:$0xff] }
0x1183   :  { %v2181_v37 = vpop.f32.mrb[90].mxu0 }
0x1184   :  { %v2189_v24 = vadd.f32 %v2179_v15, %v4255_v47  ;;  %v2182_v29 = vadd.f32 %v2802_v17, %v2181_v37  ;;  %v3208_v7 = vpop.f32.mrb[91].mxu0 }
0x1186   :  { %v2190_v45 = vadd.f32 %v2182_v29, %v4257_v31  ;;  %v2207_v19 = vsel %vm77_vm0, %v2189_v24, 0.0 }
0x1187   :  { %2208 = vadd.xlane.f32.xlu0 %v2207_v19 }
0x1188   :  { %v2210_v22 = vsel %vm77_vm0, %v2190_v45, 0.0 }
0x1189   :  { %2211 = vadd.xlane.f32.xlu1 %v2210_v22 }
0x1204   :  { %v2197_v48 = vpop.xlane.xlu1 %2196 }
0x1205   :  { %v2213_v50 = vmul.f32 0.03125, %v2197_v48 }
0x1206   :  { %v2200_v32 = vpop.xlane.xlu0 %2199 }
0x1207   :  { %v2219_v49 = vsub.f32 %v2185_v54, %v2213_v50  ;;  %v2214_v60 = vmul.f32 0.03125, %v2200_v32 }
0x1209   :  { %v2220_v33 = vsub.f32 %v2186_v13, %v2214_v60  ;;  %v2225_v58 = vmul.f32 %v2219_v49, %v2219_v49 }
0x120b   :  { %v2231_v26 = vsel %vm77_vm0, %v2225_v58, 0.0  ;;  %v2226_v47 = vmul.f32 %v2220_v33, %v2220_v33 }
0x120c   :  { %v2203_v30 = vpop.xlane.xlu0 %2202  ;;  %2232 = vadd.xlane.f32.xlu0 %v2231_v26 }
0x120d   :  { %v2215_v14 = vmul.f32 0.03125, %v2203_v30  ;;  %v2234_v31 = vsel %vm77_vm0, %v2226_v47, 0.0 }
0x120e   :  { %v2206_v25 = vpop.xlane.xlu1 %2205  ;;  %2235 = vadd.xlane.f32.xlu1 %v2234_v31 }
0x120f   :  { %v2221_v41 = vsub.f32 %v2187_v11, %v2215_v14  ;;  %v2216_v44 = vmul.f32 0.03125, %v2206_v25 }
0x1211   :  { %v2222_v42 = vsub.f32 %v2188_v63, %v2216_v44  ;;  %v2227_v46 = vmul.f32 %v2221_v41, %v2221_v41 }
0x1213   :  { %v2237_v39 = vsel %vm77_vm0, %v2227_v46, 0.0  ;;  %v2228_v43 = vmul.f32 %v2222_v42, %v2222_v42  ;;  %v3333_v46 = vld [vmem:[%s4619_s17 + $0x20] sm:$0xff]  }
0x1214   :  { %2238 = vadd.xlane.f32.xlu0 %v2237_v39  ;;  %v2209_v35 = vpop.xlane.xlu0 %2208  ;;  %3226 = vmatpush3.bf16.msra.mxu0 %v3333_v46  ;;  %v3334_v39 = vld [vmem:[%s4619_s17 + $0x28] sm:$0xff]  }
0x1215   :  { %v2217_v53 = vmul.f32 0.03125, %v2209_v35  ;;  %v2240_v56 = vsel %vm77_vm0, %v2228_v43, 0.0  ;;  %3227 = vmatprep.subr.bf16.mxu0 %v3525_v3  ;;  %v3335_v43 = vld [vmem:[%s4619_s17 + $0x30] sm:$0xff]   ;;  %v3336_v35 = vld [vmem:[%s4619_s17 + $0x38] sm:$0xff]  }
0x1216   :  { %2241 = vadd.xlane.f32.xlu1 %v2240_v56  ;;  %v2212_v52 = vpop.xlane.xlu1 %2211 }
0x1217   :  { %v2223_v59 = vsub.f32 %v2189_v24, %v2217_v53  ;;  %v2218_v61 = vmul.f32 0.03125, %v2212_v52  ;;  %v2817_v53 = vld [vmem:[%s4620_s16 + $0x1] ss:$0 sm:$0xff] }
0x1218   :  { %3228 = vmatpush3.bf16.msra.mxu0 %v3334_v39 }
0x1219   :  { %v2224_v62 = vsub.f32 %v2190_v45, %v2218_v61  ;;  %v2229_v0 = vmul.f32 %v2223_v59, %v2223_v59  ;;  %3229 = vmatprep.subr.bf16.mxu0 %v3525_v3 }
0x121b   :  { %v2243_v4 = vsel %vm77_vm0, %v2229_v0, 0.0  ;;  %v2230_v34 = vmul.f32 %v2224_v62, %v2224_v62 }
0x121c   :  { %2244 = vadd.xlane.f32.xlu0 %v2243_v4  ;;  %3230 = vmatpush3.bf16.msra.mxu0 %v3335_v43 }
0x121d   :  { %v2246_v2 = vsel %vm77_vm0, %v2230_v34, 0.0  ;;  %3231 = vmatprep.subr.bf16.mxu0 %v3525_v3 }
0x121e   :  { %2247 = vadd.xlane.f32.xlu1 %v2246_v2 }
0x1220   :  { %3232 = vmatpush3.bf16.msra.mxu0 %v3336_v35 }
0x1299   :  { %v2233_v17 = vpop.xlane.xlu0 %2232 }
0x129a   :  { %v2249_v27 = vmul.f32 0.03125, %v2233_v17 }
0x129b   :  { %v2236_v8 = vpop.xlane.xlu1 %2235 }
0x129c   :  { %v2255_v6 = vadd.f32 1e-12, %v2249_v27  ;;  %v2250_v10 = vmul.f32 0.03125, %v2236_v8 }
0x129e   :  { %3481 = vrsqrt.f32 %v2255_v6  ;;  %v2256_v54 = vadd.f32 1e-12, %v2250_v10 }
0x12a0   :  { %3483 = vrsqrt.f32 %v2256_v54 }
0x12a1   :  { %v2239_v36 = vpop.xlane.xlu0 %2238 }
0x12a2   :  { %v2251_v57 = vmul.f32 0.03125, %v2239_v36 }
0x12a3   :  { %v2242_v13 = vpop.xlane.xlu1 %2241 }
0x12a4   :  { %v2257_v38 = vadd.f32 1e-12, %v2251_v57  ;;  %v2252_v51 = vmul.f32 0.03125, %v2242_v13 }
0x12a6   :  { %3485 = vrsqrt.f32 %v2257_v38  ;;  %v2258_v40 = vadd.f32 1e-12, %v2252_v51 }
0x12a8   :  { %v3482_v28 = vpop.eup %3481  ;;  %3487 = vrsqrt.f32 %v2258_v40 }
0x12a9   :  { %v2267_v16 = vmul.f32 %v3482_v28, %v2219_v49  ;;  %v2245_v11 = vpop.xlane.xlu0 %2244 }
0x12aa   :  { %v3484_v20 = vpop.eup %3483  ;;  %v2253_v23 = vmul.f32 0.03125, %v2245_v11 }
0x12ab   :  { %v2279_v63 = vmul.f32 %v2810_v18, %v2267_v16  ;;  %v2268_v1 = vmul.f32 %v3484_v20, %v2220_v33  ;;  %v2248_v21 = vpop.xlane.xlu1 %2247 }
0x12ac   :  { %v2259_v15 = vadd.f32 1e-12, %v2253_v23  ;;  %v2254_v12 = vmul.f32 0.03125, %v2248_v21 }
0x12ad   :  { %v2280_v37 = vmul.f32 %v2810_v18, %v2268_v1  ;;  %v4518_v29 = vadd.f32 %v2811_v55, %v2279_v63 }
0x12ae   :  { %3489 = vrsqrt.f32 %v2259_v15  ;;  %v2260_v24 = vadd.f32 1e-12, %v2254_v12 }
0x12af   :  { %v4520_v7 = vadd.f32 %v2811_v55, %v2280_v37 }
0x12b0   :  { %v3486_v45 = vpop.eup %3485  ;;  %3491 = vrsqrt.f32 %v2260_v24 }
0x12b1   :  { %v2269_v19 = vmul.f32 %v3486_v45, %v2221_v41  ;;  %v2297_v22 = vpack.c.bf16 %v4520_v7, %v4518_v29 }
0x12b2   :  { %v3488_v48 = vpop.eup %3487 }
0x12b3   :  { %v2270_v50 = vmul.f32 %v3488_v48, %v2222_v42  ;;  %3214 = vmatmul.mubr.msk.bf16.vlgmr.msra.gmra.mrb[88].mxu1 %vm77_vm0, %v2297_v22  ;;  %v2281_v32 = vmul.f32 %v2810_v18, %v2269_v19 }
0x12b4   :  { %3217 = vmatprep.mubr.msk.bf16.mxu1 %vm3526_vm1, %v3525_v3 }
0x12b5   :  { %v2282_v49 = vmul.f32 %v2810_v18, %v2270_v50  ;;  %v4527_v60 = vadd.f32 %v2811_v55, %v2281_v32 }
0x12b7   :  { %v4529_v33 = vadd.f32 %v2811_v55, %v2282_v49 }
0x12b8   :  { %v3490_v58 = vpop.eup %3489 }
0x12b9   :  { %v2271_v26 = vmul.f32 %v3490_v58, %v2223_v59  ;;  %v2298_v47 = vpack.c.bf16 %v4529_v33, %v4527_v60 }
0x12ba   :  { %v3492_v30 = vpop.eup %3491 }
0x12bb   :  { %v2272_v14 = vmul.f32 %v3492_v30, %v2224_v62  ;;  %3218 = vmatmul.mubr.msk.bf16.gmra.mrb[92].mxu1 %vm77_vm0, %v2298_v47  ;;  %v2283_v31 = vmul.f32 %v2810_v18, %v2271_v26 }
0x12bc   :  { %3221 = vmatprep.mubr.msk.bf16.mxu1 %vm3526_vm1, %v3525_v3 }
0x12bd   :  { %v2284_v25 = vmul.f32 %v2810_v18, %v2272_v14  ;;  %v4536_v41 = vadd.f32 %v2811_v55, %v2283_v31 }
0x12bf   :  { %v4538_v44 = vadd.f32 %v2811_v55, %v2284_v25 }
0x12c1   :  { %v2299_v42 = vpack.c.bf16 %v4538_v44, %v4536_v41 }
0x12c3   :  { %3222 = vmatmul.mubr.msk.bf16.gmra.mrb[96].mxu1 %vm77_vm0, %v2299_v42  ;;  %v2832_v42 = vld [vmem:[%s4621_s18 + $0x1] ss:$0 sm:$0xff] }
0x12c4   :  { %3257 = vmatprep.mubr.msk.f32.mxu1 %vm3526_vm1, %v3525_v3 }
0x1386   :  { %v2368_v56 = vpop.f32.mrb[88].mxu1 }
0x1387   :  { %v2369_v52 = vadd.f32 %v2817_v53, %v2368_v56  ;;  %v3215_v59 = vpop.f32.mrb[89].mxu1 }
0x1388   :  { %v2371_v61 = vpop.f32.mrb[90].mxu1 }
0x1389   :  { %v2397_v62 = vmul.f32 0.70710677, %v2369_v52  ;;  %v2372_v0 = vadd.f32 %v2817_v53, %v2371_v61  ;;  %v3216_v4 = vpop.f32.mrb[91].mxu1  ;;  %v2391_v40 = vmul.f32 0.5, %v2369_v52 }
0x138b   :  { %3493 = verf.f32 %v2397_v62  ;;  %v2398_v34 = vmul.f32 0.70710677, %v2372_v0  ;;  %v2392_v28 = vmul.f32 0.5, %v2372_v0 }
0x138d   :  { %3495 = verf.f32 %v2398_v34 }
0x138e   :  { %v2376_v2 = vpop.f32.mrb[92].mxu1 }
0x138f   :  { %v2377_v9 = vadd.f32 %v2817_v53, %v2376_v2  ;;  %v3219_v5 = vpop.f32.mrb[93].mxu1 }
0x1390   :  { %v2379_v17 = vpop.f32.mrb[94].mxu1 }
0x1391   :  { %v2399_v27 = vmul.f32 0.70710677, %v2377_v9  ;;  %v2380_v8 = vadd.f32 %v2817_v53, %v2379_v17  ;;  %v3220_v6 = vpop.f32.mrb[95].mxu1  ;;  %v2393_v24 = vmul.f32 0.5, %v2377_v9 }
0x1393   :  { %3497 = verf.f32 %v2399_v27  ;;  %v2400_v10 = vmul.f32 0.70710677, %v2380_v8  ;;  %v2394_v45 = vmul.f32 0.5, %v2380_v8 }
0x1395   :  { %v3494_v54 = vpop.eup %3493  ;;  %3499 = verf.f32 %v2400_v10 }
0x1396   :  { %v2409_v36 = vadd.f32 1.0, %v3494_v54  ;;  %v2384_v57 = vpop.f32.mrb[96].mxu1 }
0x1397   :  { %v3496_v13 = vpop.eup %3495  ;;  %v2385_v38 = vadd.f32 %v2817_v53, %v2384_v57  ;;  %v3223_v51 = vpop.f32.mrb[97].mxu1 }
0x1398   :  { %v2410_v18 = vadd.f32 1.0, %v3496_v13  ;;  %v2387_v16 = vpop.f32.mrb[98].mxu1  ;;  %v2415_v63 = vmul.f32 %v2409_v36, %v2391_v40 }
0x1399   :  { %v2401_v11 = vmul.f32 0.70710677, %v2385_v38  ;;  %v2388_v20 = vadd.f32 %v2817_v53, %v2387_v16  ;;  %v3224_v23 = vpop.f32.mrb[99].mxu1  ;;  %v2395_v26 = vmul.f32 0.5, %v2385_v38 }
0x139a   :  { %v2416_v1 = vmul.f32 %v2410_v18, %v2392_v28 }
0x139b   :  { %3501 = verf.f32 %v2401_v11  ;;  %v2402_v21 = vmul.f32 0.70710677, %v2388_v20  ;;  %v2396_v47 = vmul.f32 0.5, %v2388_v20 }
0x139c   :  { %v2421_v55 = vpack.c.bf16 %v2416_v1, %v2415_v63 }
0x139d   :  { %v3498_v15 = vpop.eup %3497  ;;  %3503 = verf.f32 %v2402_v21 }
0x139e   :  { %v2411_v12 = vadd.f32 1.0, %v3498_v15  ;;  %3234 = vmatmul.mubr.msk.bf16.vlgmr.msra.gmra.mrb[92].mxu0 %vm1328_vm6, %v2421_v55 }
0x139f   :  { %v3500_v37 = vpop.eup %3499  ;;  %3237 = vmatprep.mubr.msk.bf16.mxu0 %vm3526_vm1, %v3525_v3 }
0x13a0   :  { %v2412_v19 = vadd.f32 1.0, %v3500_v37  ;;  %v2417_v22 = vmul.f32 %v2411_v12, %v2393_v24 }
0x13a2   :  { %v2418_v48 = vmul.f32 %v2412_v19, %v2394_v45 }
0x13a4   :  { %v2422_v50 = vpack.c.bf16 %v2418_v48, %v2417_v22 }
0x13a5   :  { %v3502_v32 = vpop.eup %3501 }
0x13a6   :  { %v2413_v49 = vadd.f32 1.0, %v3502_v32  ;;  %3238 = vmatmul.mubr.msk.bf16.gmra.mrb[96].mxu0 %vm1328_vm6, %v2422_v50 }
0x13a7   :  { %v3504_v58 = vpop.eup %3503  ;;  %3241 = vmatprep.mubr.msk.bf16.mxu0 %vm3526_vm1, %v3525_v3 }
0x13a8   :  { %v2414_v30 = vadd.f32 1.0, %v3504_v58  ;;  %v2419_v14 = vmul.f32 %v2413_v49, %v2395_v26 }
0x13aa   :  { %v2420_v31 = vmul.f32 %v2414_v30, %v2396_v47 }
0x13ac   :  { %v2423_v25 = vpack.c.bf16 %v2420_v31, %v2419_v14  ;;  %v3534_v14 = vmov 0.0|0.0  }
0x13ad   :  { %3260 = vmatprep.subr.bf16.mxu1 %v3534_v14 }
0x13ae   :  { %3242 = vmatmul.mubr.msk.bf16.gmra.mrb[100].mxu0 %vm1328_vm6, %v2423_v25 }
0x1471   :  { %v2508_v46 = vpop.f32.mrb[92].mxu0 }
0x1472   :  { %v2509_v39 = vadd.f32 %v2832_v42, %v2508_v46  ;;  %v3235_v43 = vpop.f32.mrb[93].mxu0 }
0x1473   :  { %v2511_v35 = vpop.f32.mrb[94].mxu0 }
0x1474   :  { %v2531_v53 = vadd.f32 %v2509_v39, %v4518_v29  ;;  %v2512_v56 = vadd.f32 %v2832_v42, %v2511_v35  ;;  %v3236_v3 = vpop.f32.mrb[95].mxu0 }
0x1476   :  { %v2532_v52 = vadd.f32 %v2512_v56, %v4520_v7  ;;  %v2541_v59 = vsel %vm77_vm0, %v2531_v53, 0.0 }
0x1477   :  { %2542 = vadd.xlane.f32.xlu0 %v2541_v59 }
0x1478   :  { %v2544_v61 = vsel %vm77_vm0, %v2532_v52, 0.0 }
0x1479   :  { %2545 = vadd.xlane.f32.xlu1 %v2544_v61  ;;  %v2516_v62 = vpop.f32.mrb[96].mxu0 }
0x147a   :  { %v2517_v0 = vadd.f32 %v2832_v42, %v2516_v62  ;;  %v3239_v4 = vpop.f32.mrb[97].mxu0  ;;  %v2842_v62 = vld [vmem:[%s4622_s19 + $0x1] ss:$0 sm:$0xff] }
0x147b   :  { %v2519_v34 = vpop.f32.mrb[98].mxu0 }
0x147c   :  { %v2533_v2 = vadd.f32 %v2517_v0, %v4527_v60  ;;  %v2520_v9 = vadd.f32 %v2832_v42, %v2519_v34  ;;  %v3240_v5 = vpop.f32.mrb[99].mxu0 }
0x147e   :  { %v2534_v29 = vadd.f32 %v2520_v9, %v4529_v33  ;;  %v2547_v17 = vsel %vm77_vm0, %v2533_v2, 0.0 }
0x147f   :  { %2548 = vadd.xlane.f32.xlu0 %v2547_v17 }
0x1480   :  { %v2550_v7 = vsel %vm77_vm0, %v2534_v29, 0.0 }
0x1481   :  { %2551 = vadd.xlane.f32.xlu1 %v2550_v7  ;;  %v2524_v27 = vpop.f32.mrb[100].mxu0 }
0x1482   :  { %v2525_v8 = vadd.f32 %v2832_v42, %v2524_v27  ;;  %v3243_v6 = vpop.f32.mrb[101].mxu0  ;;  %v2843_v27 = vld [vmem:[%s4623_s20 + $0x1] ss:$0 sm:$0xff] }
0x1483   :  { %v2527_v10 = vpop.f32.mrb[102].mxu0 }
0x1484   :  { %v2535_v54 = vadd.f32 %v2525_v8, %v4536_v41  ;;  %v2528_v36 = vadd.f32 %v2832_v42, %v2527_v10  ;;  %v3244_v57 = vpop.f32.mrb[103].mxu0 }
0x1486   :  { %v2536_v60 = vadd.f32 %v2528_v36, %v4538_v44  ;;  %v2553_v13 = vsel %vm77_vm0, %v2535_v54, 0.0 }
0x1487   :  { %2554 = vadd.xlane.f32.xlu0 %v2553_v13 }
0x1488   :  { %v2556_v33 = vsel %vm77_vm0, %v2536_v60, 0.0 }
0x1489   :  { %2557 = vadd.xlane.f32.xlu1 %v2556_v33 }
0x1504   :  { %v2543_v38 = vpop.xlane.xlu0 %2542 }
0x1505   :  { %v2559_v51 = vmul.f32 0.03125, %v2543_v38 }
0x1506   :  { %v2546_v40 = vpop.xlane.xlu1 %2545 }
0x1507   :  { %v2565_v28 = vsub.f32 %v2531_v53, %v2559_v51  ;;  %v2560_v18 = vmul.f32 0.03125, %v2546_v40 }
0x1509   :  { %v2566_v16 = vsub.f32 %v2532_v52, %v2560_v18  ;;  %v2571_v11 = vmul.f32 %v2565_v28, %v2565_v28 }
0x150b   :  { %v2577_v20 = vsel %vm77_vm0, %v2571_v11, 0.0  ;;  %v2572_v41 = vmul.f32 %v2566_v16, %v2566_v16 }
0x150c   :  { %v2549_v23 = vpop.xlane.xlu0 %2548  ;;  %2578 = vadd.xlane.f32.xlu0 %v2577_v20 }
0x150d   :  { %v2561_v63 = vmul.f32 0.03125, %v2549_v23  ;;  %v2580_v44 = vsel %vm77_vm0, %v2572_v41, 0.0 }
0x150e   :  { %v2552_v1 = vpop.xlane.xlu1 %2551  ;;  %2581 = vadd.xlane.f32.xlu1 %v2580_v44 }
0x150f   :  { %v2567_v21 = vsub.f32 %v2533_v2, %v2561_v63  ;;  %v2562_v55 = vmul.f32 0.03125, %v2552_v1 }
0x1511   :  { %v2568_v15 = vsub.f32 %v2534_v29, %v2562_v55  ;;  %v2573_v12 = vmul.f32 %v2567_v21, %v2567_v21  ;;  %v2643_v55 = vld [vmem:[%s4624_s4] sm:$0xf] }
0x1513   :  { %v2583_v37 = vsel %vm77_vm0, %v2573_v12, 0.0  ;;  %v2574_v24 = vmul.f32 %v2568_v15, %v2568_v15 }
0x1514   :  { %2584 = vadd.xlane.f32.xlu0 %v2583_v37  ;;  %v2555_v45 = vpop.xlane.xlu0 %2554 }
0x1515   :  { %v2563_v19 = vmul.f32 0.03125, %v2555_v45  ;;  %v2586_v22 = vsel %vm77_vm0, %v2574_v24, 0.0 }
0x1516   :  { %2587 = vadd.xlane.f32.xlu1 %v2586_v22  ;;  %v2558_v48 = vpop.xlane.xlu1 %2557 }
0x1517   :  { %v2569_v50 = vsub.f32 %v2535_v54, %v2563_v19  ;;  %v2564_v32 = vmul.f32 0.03125, %v2558_v48 }
0x1519   :  { %v2570_v49 = vsub.f32 %v2536_v60, %v2564_v32  ;;  %v2575_v58 = vmul.f32 %v2569_v50, %v2569_v50 }
0x151b   :  { %v2589_v26 = vsel %vm77_vm0, %v2575_v58, 0.0  ;;  %v2576_v47 = vmul.f32 %v2570_v49, %v2570_v49 }
0x151c   :  { %2590 = vadd.xlane.f32.xlu0 %v2589_v26 }
0x151d   :  { %v2592_v30 = vsel %vm77_vm0, %v2576_v47, 0.0 }
0x151e   :  { %2593 = vadd.xlane.f32.xlu1 %v2592_v30 }
0x1599   :  { %v2579_v31 = vpop.xlane.xlu0 %2578 }
0x159a   :  { %v2595_v25 = vmul.f32 0.03125, %v2579_v31 }
0x159b   :  { %v2582_v42 = vpop.xlane.xlu1 %2581 }
0x159c   :  { %v2601_v46 = vadd.f32 1e-12, %v2595_v25  ;;  %v2596_v39 = vmul.f32 0.03125, %v2582_v42 }
0x159e   :  { %3505 = vrsqrt.f32 %v2601_v46  ;;  %v2602_v43 = vadd.f32 1e-12, %v2596_v39 }
0x15a0   :  { %3507 = vrsqrt.f32 %v2602_v43 }
0x15a1   :  { %v2585_v35 = vpop.xlane.xlu0 %2584 }
0x15a2   :  { %v2597_v53 = vmul.f32 0.03125, %v2585_v35 }
0x15a3   :  { %v2588_v56 = vpop.xlane.xlu1 %2587 }
0x15a4   :  { %v2603_v3 = vadd.f32 1e-12, %v2597_v53  ;;  %v2598_v52 = vmul.f32 0.03125, %v2588_v56 }
0x15a6   :  { %3509 = vrsqrt.f32 %v2603_v3  ;;  %v2604_v59 = vadd.f32 1e-12, %v2598_v52 }
0x15a8   :  { %v3506_v61 = vpop.eup %3505  ;;  %3511 = vrsqrt.f32 %v2604_v59 }
0x15a9   :  { %v2613_v0 = vmul.f32 %v3506_v61, %v2565_v28  ;;  %v2591_v4 = vpop.xlane.xlu0 %2590 }
0x15aa   :  { %v3508_v34 = vpop.eup %3507  ;;  %v2599_v2 = vmul.f32 0.03125, %v2591_v4 }
0x15ab   :  { %v2614_v9 = vmul.f32 %v3508_v34, %v2566_v16  ;;  %v2594_v5 = vpop.xlane.xlu1 %2593  ;;  %v2625_v29 = vmul.f32 %v2842_v62, %v2613_v0 }
0x15ac   :  { %v2605_v17 = vadd.f32 1e-12, %v2599_v2  ;;  %v2600_v7 = vmul.f32 0.03125, %v2594_v5 }
0x15ad   :  { %v2626_v8 = vmul.f32 %v2842_v62, %v2614_v9  ;;  %v2637_v10 = vadd.f32 %v2843_v27, %v2625_v29 }
0x15ae   :  { %3513 = vrsqrt.f32 %v2605_v17  ;;  %v2606_v6 = vadd.f32 1e-12, %v2600_v7 }
0x15af   :  { %v2638_v54 = vadd.f32 %v2843_v27, %v2626_v8 }
0x15b0   :  { %v3510_v36 = vpop.eup %3509  ;;  %3515 = vrsqrt.f32 %v2606_v6 }
0x15b1   :  { %v2615_v57 = vmul.f32 %v3510_v36, %v2567_v21  ;;  %v3261_v60 = vpack.c.bf16 %v2638_v54, %v2637_v10 }
0x15b2   :  { %v3512_v13 = vpop.eup %3511 }
0x15b3   :  { %v2616_v33 = vmul.f32 %v3512_v13, %v2568_v15  ;;  %3262 = vmatpush3.bf16.msra.mxu1 %v3261_v60  ;;  %v2627_v38 = vmul.f32 %v2842_v62, %v2615_v57 }
0x15b4   :  { %3263 = vmatprep.subr.bf16.mxu1 %v3534_v14 }
0x15b5   :  { %v2628_v51 = vmul.f32 %v2842_v62, %v2616_v33  ;;  %v2639_v40 = vadd.f32 %v2843_v27, %v2627_v38 }
0x15b7   :  { %v2640_v28 = vadd.f32 %v2843_v27, %v2628_v51 }
0x15b8   :  { %v3514_v18 = vpop.eup %3513 }
0x15b9   :  { %v2617_v16 = vmul.f32 %v3514_v18, %v2569_v50  ;;  %v3264_v11 = vpack.c.bf16 %v2640_v28, %v2639_v40 }
0x15ba   :  { %v3516_v20 = vpop.eup %3515 }
0x15bb   :  { %v2618_v41 = vmul.f32 %v3516_v20, %v2570_v49  ;;  %3265 = vmatpush3.bf16.msra.mxu1 %v3264_v11  ;;  %v2629_v23 = vmul.f32 %v2842_v62, %v2617_v16 }
0x15bc   :  { %3266 = vmatprep.subr.bf16.mxu1 %v3534_v14 }
0x15bd   :  { %v2630_v63 = vmul.f32 %v2842_v62, %v2618_v41  ;;  %v2641_v44 = vadd.f32 %v2843_v27, %v2629_v23 }
0x15bf   :  { %v2642_v1 = vadd.f32 %v2843_v27, %v2630_v63 }
0x15c1   :  { %v3267_v21 = vpack.c.bf16 %v2642_v1, %v2641_v44 }
0x15c3   :  { %3268 = vmatpush3.bf16.msra.mxu1 %v3267_v21 }
0x15c6   :  { %3258 = vmatmul.mubr.msk.f32.vlgmr.msra.gmra.mrb[100].mxu1 %vm556_vm5, %v2643_v55 }
0x1699   :  { %v2713_v15 = vpop.f32.mrb[100].mxu1 }
0x169a   :  { %3517 = vtanh.f32 %v2713_v15  ;;  %v3259_v12 = vpop.f32.mrb[101].mxu1 }
0x16a4   :  { %v3518_v37 = vpop.eup %3517 }
0x16a5   :  { %2719 = vst.msk [vmem:[%s4625_s21] sm:$0xf] %vm2718_vm7, %v3518_v37 }

</bundles_post_ra>
